<compile_context>
chip_gen: v6e
topology: v6e:2x2x1
jax: 0.10.0
libtpu: 0.0.40
codegen_flags: <defaults>
</compile_context>

<pallas_src>
import functools

import jax
import jax.numpy as jnp
from jax.experimental import pallas as pl
from jax.experimental.pallas import tpu as pltpu


# (in_channels, out_channels, kernel_size) of the four conv+ReLU layers.
LAYER_CFG = [(7, 16, 3), (16, 32, 4), (32, 8, 4), (8, 3, 3)]

_SUBLANE = 8          # f32 sublane group size
_MXU_K = 256          # native MXU contraction length (v6e/v7x); ok on v5e too
_MAX_BATCH_TILE = 8   # cap on images folded onto the lane axis per grid step


def _round_up(x, m):
    return (x + m - 1) // m * m


def _padded_layer_cfg():
    """LAYER_CFG with in_channels rounded up to a full sublane group."""
    cfg = []
    for cin, cout, k in LAYER_CFG:
        cin_pad = _round_up(cin, _SUBLANE)
        taps_per_chunk = max(1, _MXU_K // cin_pad)
        cfg.append((cin_pad, cout, k, taps_per_chunk))
    return cfg


def _assert_stride_slab_safe(H, W, ksizes):
    """Static proof that keeping the original row stride (and folding batch
    onto lanes) is safe: every read made by a VALID output of each layer stays
    inside that image's H*W-lane window (no wrap, no cross-image read), and
    lands inside the previous layer's valid region (true by construction for
    VALID convs at original stride)."""
    h, w = H, W
    for k in ksizes:
        ho, wo = h - k + 1, w - k + 1
        assert ho >= 1 and wo >= 1, "input too small for this layer chain"
        max_read = (ho - 1) * W + (wo - 1) + (k - 1) * W + (k - 1)
        assert max_read < H * W, (
            "valid output would read past the image's lane window; "
            "stride-W slab trick does not apply to this configuration")
        h, w = ho, wo
    return h, w


# ----------------------------------------------------------------------------
# Kernel
# ----------------------------------------------------------------------------

def _conv_relu_layer(a, wmat, bias, *, cin, ksize, row_stride, flat_len,
                     taps_per_chunk):
    """VALID stride-1 conv + ReLU on a (cin, flat_len) activation slab.

    Taps are built as lane rotations (XLU) and grouped into chunks whose
    contraction length is <= the MXU-native K; each chunk is one matmul,
    accumulated into a (cout, flat_len) f32 accumulator.  Columns outside a
    layer's valid output window hold garbage that is provably never read by a
    valid output of any later layer (see _assert_stride_slab_safe).
    """
    shifts = [kh * row_stride + kw for kh in range(ksize) for kw in range(ksize)]
    n_taps = len(shifts)
    acc = None
    for c0 in range(0, n_taps, taps_per_chunk):
        taps = shifts[c0:c0 + taps_per_chunk]
        pieces = []
        for s in taps:
            if s == 0:
                pieces.append(a)
            else:
                # rolled[:, p] == a[:, (p + s) % flat_len]
                pieces.append(pltpu.roll(a, shift=flat_len - s, axis=1))
        patches = pieces[0] if len(pieces) == 1 else jnp.concatenate(pieces, axis=0)
        if len(taps) == n_taps:
            wchunk = wmat                                  # whole layer in one chunk
        else:
            wchunk = wmat[:, c0 * cin:(c0 + len(taps)) * cin]
        part = jnp.dot(wchunk, patches, preferred_element_type=jnp.float32)
        acc = part if acc is None else acc + part
    acc = acc + bias                                        # (cout, 1) broadcast
    return jnp.maximum(acc, 0.0)                            # ReLU


def _fused_kernel(*refs, row_stride, layer_cfgs):
    """refs = (x_ref, w1, b1, w2, b2, w3, b3, w4, b4, o_ref)."""
    x_ref, o_ref = refs[0], refs[-1]
    wb_refs = refs[1:-1]
    flat_len = x_ref.shape[-1]

    a = x_ref[0]                                            # (cin0, BT*H*W) f32
    for i, (cin, ksize, taps_per_chunk) in enumerate(layer_cfgs):
        wmat = wb_refs[2 * i][...]
        bias = wb_refs[2 * i + 1][...]
        a = _conv_relu_layer(a, wmat, bias, cin=cin, ksize=ksize,
                             row_stride=row_stride, flat_len=flat_len,
                             taps_per_chunk=taps_per_chunk)
    o_ref[0] = a.astype(o_ref.dtype)                        # lane-dense store


# ----------------------------------------------------------------------------
# Wrapper
# ----------------------------------------------------------------------------

def prepare_params(params):
    """One-time weight re-layout (hoisted out of the forward per review).

    Returns [(wmat, bias_col), ...] with wmat laid out (cout, kh*kw*cin_pad)
    in (kh, kw, cin) contraction order, cin zero-padded to a sublane group.
    """
    prepared = []
    for (cin, cout, k), (w, b) in zip(LAYER_CFG, params):
        assert w.shape == (cout, cin, k, k) and b.shape == (cout,)
        cin_pad = _round_up(cin, _SUBLANE)
        if cin_pad != cin:
            w = jnp.pad(w, ((0, 0), (0, cin_pad - cin), (0, 0), (0, 0)))
        wmat = jnp.transpose(w, (0, 2, 3, 1)).reshape(cout, k * k * cin_pad)
        prepared.append((jnp.asarray(wmat, jnp.float32),
                         jnp.asarray(b, jnp.float32).reshape(cout, 1)))
    return prepared


def _pick_batch_tile(n, cap=_MAX_BATCH_TILE):
    for bt in range(min(n, cap), 0, -1):
        if n % bt == 0:
            return bt
    return 1


def material_model_forward(x_nchw, prepared_params, *, batch_tile=None):
    """x_nchw: (N, 7, H, W) f32; prepared_params from prepare_params()."""
    N, C, H, W = x_nchw.shape
    HW = H * W
    cfg = _padded_layer_cfg()
    cin0 = cfg[0][0]
    cout_last = cfg[-1][1]
    ksizes = [k for (_, _, k, _) in cfg]
    ho, wo = _assert_stride_slab_safe(H, W, ksizes)

    # Zero-pad input channels to a full sublane group (7 -> 8).
    assert C == LAYER_CFG[0][0], f"expected {LAYER_CFG[0][0]} input channels"
    if C < cin0:
        x_nchw = jnp.pad(x_nchw, ((0, 0), (0, cin0 - C), (0, 0), (0, 0)))

    # Fold the batch onto the lane axis: (NT, cin0, BT*H*W), each image's
    # H*W lanes contiguous.  Tiny wrapper-side transpose (KB-scale).
    if batch_tile is None:
        batch_tile = _pick_batch_tile(N)
    assert N % batch_tile == 0
    NT, BT = N // batch_tile, batch_tile
    x_tiled = (x_nchw.reshape(NT, BT, cin0, HW)
               .transpose(0, 2, 1, 3)
               .reshape(NT, cin0, BT * HW))
    lanes = BT * HW

    operands = [x_tiled]
    in_specs = [pl.BlockSpec((1, cin0, lanes), lambda b: (b, 0, 0))]
    for wmat, bias in prepared_params:
        operands.extend([wmat, bias])
        in_specs.append(pl.BlockSpec(wmat.shape, lambda b: (0, 0)))
        in_specs.append(pl.BlockSpec(bias.shape, lambda b: (0, 0)))

    kernel = functools.partial(
        _fused_kernel, row_stride=W,
        layer_cfgs=tuple((cin, k, tpc) for (cin, _, k, tpc) in cfg))

    out_flat = pl.pallas_call(
        kernel,
        out_shape=jax.ShapeDtypeStruct((NT, cout_last, lanes), jnp.float32),
        grid_spec=pltpu.PrefetchScalarGridSpec(
            num_scalar_prefetch=0,
            grid=(NT,),                                   # one step per batch tile
            in_specs=in_specs,
            out_specs=pl.BlockSpec((1, cout_last, lanes), lambda b: (b, 0, 0)),
        ),
        compiler_params=pltpu.CompilerParams(
            dimension_semantics=("arbitrary",)),
    )(*operands)

    # Unfold the batch and crop the stride-W slab to the true valid window.
    out = (out_flat.reshape(NT, cout_last, BT, H, W)
           .transpose(0, 2, 1, 3, 4)
           .reshape(N, cout_last, H, W))
    return out[:, :, :ho, :wo]


# ----------------------------------------------------------------------------
# Reference + init
# ----------------------------------------------------------------------------

def init_params(key):
    """Deterministic init matching the module's layer shapes (OIHW weights)."""
    params = []
    for cin, cout, k in LAYER_CFG:
        key, wkey, bkey = jax.random.split(key, 3)
        fan_in = cin * k * k
        scale = 1.0 / jnp.sqrt(jnp.float32(fan_in))
        w = jax.random.uniform(wkey, (cout, cin, k, k), jnp.float32,
                               minval=-scale, maxval=scale)
        b = jax.random.uniform(bkey, (cout,), jnp.float32,
                               minval=-scale, maxval=scale)
        params.append((w, b))
    return params


def material_model_reference(x_nchw, params):
    """Pure-JAX reference (lax conv) for correctness checking."""
    x = x_nchw
    for w, b in params:
        y = jax.lax.conv_general_dilated(
            x, w, window_strides=(1, 1), padding="VALID",
            dimension_numbers=("NCHW", "OIHW", "NCHW"))
        x = jnp.maximum(y + b.reshape(1, -1, 1, 1), 0.0)
    return x


if __name__ == "__main__":
    key = jax.random.PRNGKey(0)
    key, xkey = jax.random.split(key)

    # Small input consistent with the module: batch=2, in_channels=7, 16x16.
    x = jax.random.normal(xkey, (2, 7, 16, 16), jnp.float32)
    params = init_params(jax.random.PRNGKey(0))

    prepared = prepare_params(params)          # one-time weight re-layout
    fwd = jax.jit(material_model_forward)

    out = jax.block_until_ready(fwd(x, prepared))

    ref = material_model_reference(x, params)
    assert out.shape == (2, 3, 6, 6), out.shape
    assert jnp.allclose(out, ref, rtol=1e-3, atol=1e-3), "mismatch vs reference"

    print("KERNEL_OK")
</pallas_src>

<mosaic_0001>
module attributes {stable_mosaic.version = 11 : i64} {
  func.func @_fused_kernel(%arg0: i32, %arg1: memref<1x8x512xf32, #tpu.memory_space<vmem>>, %arg2: memref<16x72xf32, #tpu.memory_space<vmem>>, %arg3: memref<16x1xf32, #tpu.memory_space<vmem>>, %arg4: memref<32x256xf32, #tpu.memory_space<vmem>>, %arg5: memref<32x1xf32, #tpu.memory_space<vmem>>, %arg6: memref<8x512xf32, #tpu.memory_space<vmem>>, %arg7: memref<8x1xf32, #tpu.memory_space<vmem>>, %arg8: memref<3x72xf32, #tpu.memory_space<vmem>>, %arg9: memref<3x1xf32, #tpu.memory_space<vmem>>, %arg10: memref<1x3x512xf32, #tpu.memory_space<vmem>>) attributes {dimension_semantics = [#tpu.dimension_semantics<arbitrary>], iteration_bounds = array<i64: 1>, scalar_prefetch = 0 : i64, scratch_operands = 0 : i64, tpu.core_type = #tpu.core_type<tc>, window_params = [{transform_indices = @transform_0, window_bounds = array<i64: 1, 8, 512>}, {pipeline_mode = #tpu.pipeline_mode<synchronous>, transform_indices = @transform_1, window_bounds = array<i64: 16, 72>}, {pipeline_mode = #tpu.pipeline_mode<synchronous>, transform_indices = @transform_2, window_bounds = array<i64: 16, 1>}, {pipeline_mode = #tpu.pipeline_mode<synchronous>, transform_indices = @transform_3, window_bounds = array<i64: 32, 256>}, {pipeline_mode = #tpu.pipeline_mode<synchronous>, transform_indices = @transform_4, window_bounds = array<i64: 32, 1>}, {pipeline_mode = #tpu.pipeline_mode<synchronous>, transform_indices = @transform_5, window_bounds = array<i64: 8, 512>}, {pipeline_mode = #tpu.pipeline_mode<synchronous>, transform_indices = @transform_6, window_bounds = array<i64: 8, 1>}, {pipeline_mode = #tpu.pipeline_mode<synchronous>, transform_indices = @transform_7, window_bounds = array<i64: 3, 72>}, {pipeline_mode = #tpu.pipeline_mode<synchronous>, transform_indices = @transform_8, window_bounds = array<i64: 3, 1>}, {transform_indices = @transform_9, window_bounds = array<i64: 1, 3, 512>}]} {
    %c0 = arith.constant 0 : index
    %c0_0 = arith.constant 0 : index
    %c0_1 = arith.constant 0 : index
    %0 = vector.load %arg1[%c0, %c0_0, %c0_1] : memref<1x8x512xf32, #tpu.memory_space<vmem>>, vector<1x8x512xf32>
    %1 = vector.shape_cast %0 : vector<1x8x512xf32> to vector<8x512xf32>
    %c0_2 = arith.constant 0 : index
    %c0_3 = arith.constant 0 : index
    %2 = vector.load %arg2[%c0_2, %c0_3] : memref<16x72xf32, #tpu.memory_space<vmem>>, vector<16x72xf32>
    %c0_4 = arith.constant 0 : index
    %c0_5 = arith.constant 0 : index
    %3 = vector.load %arg3[%c0_4, %c0_5] : memref<16x1xf32, #tpu.memory_space<vmem>>, vector<16x1xf32>
    %c511_i32 = arith.constant 511 : i32
    %4 = tpu.dynamic_rotate %1 by %c511_i32 dim 1 : vector<8x512xf32>, i32 -> vector<8x512xf32>
    %c510_i32 = arith.constant 510 : i32
    %5 = tpu.dynamic_rotate %1 by %c510_i32 dim 1 : vector<8x512xf32>, i32 -> vector<8x512xf32>
    %c496_i32 = arith.constant 496 : i32
    %6 = tpu.dynamic_rotate %1 by %c496_i32 dim 1 : vector<8x512xf32>, i32 -> vector<8x512xf32>
    %c495_i32 = arith.constant 495 : i32
    %7 = tpu.dynamic_rotate %1 by %c495_i32 dim 1 : vector<8x512xf32>, i32 -> vector<8x512xf32>
    %c494_i32 = arith.constant 494 : i32
    %8 = tpu.dynamic_rotate %1 by %c494_i32 dim 1 : vector<8x512xf32>, i32 -> vector<8x512xf32>
    %c480_i32 = arith.constant 480 : i32
    %9 = tpu.dynamic_rotate %1 by %c480_i32 dim 1 : vector<8x512xf32>, i32 -> vector<8x512xf32>
    %c479_i32 = arith.constant 479 : i32
    %10 = tpu.dynamic_rotate %1 by %c479_i32 dim 1 : vector<8x512xf32>, i32 -> vector<8x512xf32>
    %c478_i32 = arith.constant 478 : i32
    %11 = tpu.dynamic_rotate %1 by %c478_i32 dim 1 : vector<8x512xf32>, i32 -> vector<8x512xf32>
    %12 = tpu.concatenate %1, %4, %5, %6, %7, %8, %9, %10, %11 in 0 : vector<8x512xf32>, vector<8x512xf32>, vector<8x512xf32>, vector<8x512xf32>, vector<8x512xf32>, vector<8x512xf32>, vector<8x512xf32>, vector<8x512xf32>, vector<8x512xf32> -> vector<72x512xf32>
    %cst = arith.constant dense<0.000000e+00> : vector<16x512xf32>
    %13 = tpu.matmul %2, %12, %cst {dimension_numbers = #tpu.dot_dimension_numbers<[1], [0], [0], [1], [0, 0, 1, 1], [], []>} : vector<16x72xf32>, vector<72x512xf32>, vector<16x512xf32> -> vector<16x512xf32>
    %14 = vector.broadcast %3 : vector<16x1xf32> to vector<16x512xf32>
    %15 = arith.addf %13, %14 : vector<16x512xf32>
    %cst_6 = arith.constant 0.000000e+00 : f32
    %16 = vector.broadcast %cst_6 : f32 to vector<16x512xf32>
    %17 = arith.maximumf %15, %16 : vector<16x512xf32>
    %c0_7 = arith.constant 0 : index
    %c0_8 = arith.constant 0 : index
    %18 = vector.load %arg4[%c0_7, %c0_8] : memref<32x256xf32, #tpu.memory_space<vmem>>, vector<32x256xf32>
    %c0_9 = arith.constant 0 : index
    %c0_10 = arith.constant 0 : index
    %19 = vector.load %arg5[%c0_9, %c0_10] : memref<32x1xf32, #tpu.memory_space<vmem>>, vector<32x1xf32>
    %c511_i32_11 = arith.constant 511 : i32
    %20 = tpu.dynamic_rotate %17 by %c511_i32_11 dim 1 : vector<16x512xf32>, i32 -> vector<16x512xf32>
    %c510_i32_12 = arith.constant 510 : i32
    %21 = tpu.dynamic_rotate %17 by %c510_i32_12 dim 1 : vector<16x512xf32>, i32 -> vector<16x512xf32>
    %c509_i32 = arith.constant 509 : i32
    %22 = tpu.dynamic_rotate %17 by %c509_i32 dim 1 : vector<16x512xf32>, i32 -> vector<16x512xf32>
    %c496_i32_13 = arith.constant 496 : i32
    %23 = tpu.dynamic_rotate %17 by %c496_i32_13 dim 1 : vector<16x512xf32>, i32 -> vector<16x512xf32>
    %c495_i32_14 = arith.constant 495 : i32
    %24 = tpu.dynamic_rotate %17 by %c495_i32_14 dim 1 : vector<16x512xf32>, i32 -> vector<16x512xf32>
    %c494_i32_15 = arith.constant 494 : i32
    %25 = tpu.dynamic_rotate %17 by %c494_i32_15 dim 1 : vector<16x512xf32>, i32 -> vector<16x512xf32>
    %c493_i32 = arith.constant 493 : i32
    %26 = tpu.dynamic_rotate %17 by %c493_i32 dim 1 : vector<16x512xf32>, i32 -> vector<16x512xf32>
    %c480_i32_16 = arith.constant 480 : i32
    %27 = tpu.dynamic_rotate %17 by %c480_i32_16 dim 1 : vector<16x512xf32>, i32 -> vector<16x512xf32>
    %c479_i32_17 = arith.constant 479 : i32
    %28 = tpu.dynamic_rotate %17 by %c479_i32_17 dim 1 : vector<16x512xf32>, i32 -> vector<16x512xf32>
    %c478_i32_18 = arith.constant 478 : i32
    %29 = tpu.dynamic_rotate %17 by %c478_i32_18 dim 1 : vector<16x512xf32>, i32 -> vector<16x512xf32>
    %c477_i32 = arith.constant 477 : i32
    %30 = tpu.dynamic_rotate %17 by %c477_i32 dim 1 : vector<16x512xf32>, i32 -> vector<16x512xf32>
    %c464_i32 = arith.constant 464 : i32
    %31 = tpu.dynamic_rotate %17 by %c464_i32 dim 1 : vector<16x512xf32>, i32 -> vector<16x512xf32>
    %c463_i32 = arith.constant 463 : i32
    %32 = tpu.dynamic_rotate %17 by %c463_i32 dim 1 : vector<16x512xf32>, i32 -> vector<16x512xf32>
    %c462_i32 = arith.constant 462 : i32
    %33 = tpu.dynamic_rotate %17 by %c462_i32 dim 1 : vector<16x512xf32>, i32 -> vector<16x512xf32>
    %c461_i32 = arith.constant 461 : i32
    %34 = tpu.dynamic_rotate %17 by %c461_i32 dim 1 : vector<16x512xf32>, i32 -> vector<16x512xf32>
    %35 = tpu.concatenate %17, %20, %21, %22, %23, %24, %25, %26, %27, %28, %29, %30, %31, %32, %33, %34 in 0 : vector<16x512xf32>, vector<16x512xf32>, vector<16x512xf32>, vector<16x512xf32>, vector<16x512xf32>, vector<16x512xf32>, vector<16x512xf32>, vector<16x512xf32>, vector<16x512xf32>, vector<16x512xf32>, vector<16x512xf32>, vector<16x512xf32>, vector<16x512xf32>, vector<16x512xf32>, vector<16x512xf32>, vector<16x512xf32> -> vector<256x512xf32>
    %cst_19 = arith.constant dense<0.000000e+00> : vector<32x512xf32>
    %36 = tpu.matmul %18, %35, %cst_19 {dimension_numbers = #tpu.dot_dimension_numbers<[1], [0], [0], [1], [0, 0, 1, 1], [], []>} : vector<32x256xf32>, vector<256x512xf32>, vector<32x512xf32> -> vector<32x512xf32>
    %37 = vector.broadcast %19 : vector<32x1xf32> to vector<32x512xf32>
    %38 = arith.addf %36, %37 : vector<32x512xf32>
    %cst_20 = arith.constant 0.000000e+00 : f32
    %39 = vector.broadcast %cst_20 : f32 to vector<32x512xf32>
    %40 = arith.maximumf %38, %39 : vector<32x512xf32>
    %c0_21 = arith.constant 0 : index
    %c0_22 = arith.constant 0 : index
    %41 = vector.load %arg6[%c0_21, %c0_22] : memref<8x512xf32, #tpu.memory_space<vmem>>, vector<8x512xf32>
    %c0_23 = arith.constant 0 : index
    %c0_24 = arith.constant 0 : index
    %42 = vector.load %arg7[%c0_23, %c0_24] : memref<8x1xf32, #tpu.memory_space<vmem>>, vector<8x1xf32>
    %c511_i32_25 = arith.constant 511 : i32
    %43 = tpu.dynamic_rotate %40 by %c511_i32_25 dim 1 : vector<32x512xf32>, i32 -> vector<32x512xf32>
    %c510_i32_26 = arith.constant 510 : i32
    %44 = tpu.dynamic_rotate %40 by %c510_i32_26 dim 1 : vector<32x512xf32>, i32 -> vector<32x512xf32>
    %c509_i32_27 = arith.constant 509 : i32
    %45 = tpu.dynamic_rotate %40 by %c509_i32_27 dim 1 : vector<32x512xf32>, i32 -> vector<32x512xf32>
    %c496_i32_28 = arith.constant 496 : i32
    %46 = tpu.dynamic_rotate %40 by %c496_i32_28 dim 1 : vector<32x512xf32>, i32 -> vector<32x512xf32>
    %c495_i32_29 = arith.constant 495 : i32
    %47 = tpu.dynamic_rotate %40 by %c495_i32_29 dim 1 : vector<32x512xf32>, i32 -> vector<32x512xf32>
    %c494_i32_30 = arith.constant 494 : i32
    %48 = tpu.dynamic_rotate %40 by %c494_i32_30 dim 1 : vector<32x512xf32>, i32 -> vector<32x512xf32>
    %c493_i32_31 = arith.constant 493 : i32
    %49 = tpu.dynamic_rotate %40 by %c493_i32_31 dim 1 : vector<32x512xf32>, i32 -> vector<32x512xf32>
    %50 = tpu.concatenate %40, %43, %44, %45, %46, %47, %48, %49 in 0 : vector<32x512xf32>, vector<32x512xf32>, vector<32x512xf32>, vector<32x512xf32>, vector<32x512xf32>, vector<32x512xf32>, vector<32x512xf32>, vector<32x512xf32> -> vector<256x512xf32>
    %51 = vector.extract_strided_slice %41 {offsets = [0, 0], sizes = [8, 256], strides = [1, 1]} : vector<8x512xf32> to vector<8x256xf32>
    %cst_32 = arith.constant dense<0.000000e+00> : vector<8x512xf32>
    %52 = tpu.matmul %51, %50, %cst_32 {dimension_numbers = #tpu.dot_dimension_numbers<[1], [0], [0], [1], [0, 0, 1, 1], [], []>} : vector<8x256xf32>, vector<256x512xf32>, vector<8x512xf32> -> vector<8x512xf32>
    %c480_i32_33 = arith.constant 480 : i32
    %53 = tpu.dynamic_rotate %40 by %c480_i32_33 dim 1 : vector<32x512xf32>, i32 -> vector<32x512xf32>
    %c479_i32_34 = arith.constant 479 : i32
    %54 = tpu.dynamic_rotate %40 by %c479_i32_34 dim 1 : vector<32x512xf32>, i32 -> vector<32x512xf32>
    %c478_i32_35 = arith.constant 478 : i32
    %55 = tpu.dynamic_rotate %40 by %c478_i32_35 dim 1 : vector<32x512xf32>, i32 -> vector<32x512xf32>
    %c477_i32_36 = arith.constant 477 : i32
    %56 = tpu.dynamic_rotate %40 by %c477_i32_36 dim 1 : vector<32x512xf32>, i32 -> vector<32x512xf32>
    %c464_i32_37 = arith.constant 464 : i32
    %57 = tpu.dynamic_rotate %40 by %c464_i32_37 dim 1 : vector<32x512xf32>, i32 -> vector<32x512xf32>
    %c463_i32_38 = arith.constant 463 : i32
    %58 = tpu.dynamic_rotate %40 by %c463_i32_38 dim 1 : vector<32x512xf32>, i32 -> vector<32x512xf32>
    %c462_i32_39 = arith.constant 462 : i32
    %59 = tpu.dynamic_rotate %40 by %c462_i32_39 dim 1 : vector<32x512xf32>, i32 -> vector<32x512xf32>
    %c461_i32_40 = arith.constant 461 : i32
    %60 = tpu.dynamic_rotate %40 by %c461_i32_40 dim 1 : vector<32x512xf32>, i32 -> vector<32x512xf32>
    %61 = tpu.concatenate %53, %54, %55, %56, %57, %58, %59, %60 in 0 : vector<32x512xf32>, vector<32x512xf32>, vector<32x512xf32>, vector<32x512xf32>, vector<32x512xf32>, vector<32x512xf32>, vector<32x512xf32>, vector<32x512xf32> -> vector<256x512xf32>
    %62 = vector.extract_strided_slice %41 {offsets = [0, 256], sizes = [8, 256], strides = [1, 1]} : vector<8x512xf32> to vector<8x256xf32>
    %cst_41 = arith.constant dense<0.000000e+00> : vector<8x512xf32>
    %63 = tpu.matmul %62, %61, %cst_41 {dimension_numbers = #tpu.dot_dimension_numbers<[1], [0], [0], [1], [0, 0, 1, 1], [], []>} : vector<8x256xf32>, vector<256x512xf32>, vector<8x512xf32> -> vector<8x512xf32>
    %64 = arith.addf %52, %63 : vector<8x512xf32>
    %65 = vector.broadcast %42 : vector<8x1xf32> to vector<8x512xf32>
    %66 = arith.addf %64, %65 : vector<8x512xf32>
    %cst_42 = arith.constant 0.000000e+00 : f32
    %67 = vector.broadcast %cst_42 : f32 to vector<8x512xf32>
    %68 = arith.maximumf %66, %67 : vector<8x512xf32>
    %c0_43 = arith.constant 0 : index
    %c0_44 = arith.constant 0 : index
    %69 = vector.load %arg8[%c0_43, %c0_44] : memref<3x72xf32, #tpu.memory_space<vmem>>, vector<3x72xf32>
    %c0_45 = arith.constant 0 : index
    %c0_46 = arith.constant 0 : index
    %70 = vector.load %arg9[%c0_45, %c0_46] : memref<3x1xf32, #tpu.memory_space<vmem>>, vector<3x1xf32>
    %c511_i32_47 = arith.constant 511 : i32
    %71 = tpu.dynamic_rotate %68 by %c511_i32_47 dim 1 : vector<8x512xf32>, i32 -> vector<8x512xf32>
    %c510_i32_48 = arith.constant 510 : i32
    %72 = tpu.dynamic_rotate %68 by %c510_i32_48 dim 1 : vector<8x512xf32>, i32 -> vector<8x512xf32>
    %c496_i32_49 = arith.constant 496 : i32
    %73 = tpu.dynamic_rotate %68 by %c496_i32_49 dim 1 : vector<8x512xf32>, i32 -> vector<8x512xf32>
    %c495_i32_50 = arith.constant 495 : i32
    %74 = tpu.dynamic_rotate %68 by %c495_i32_50 dim 1 : vector<8x512xf32>, i32 -> vector<8x512xf32>
    %c494_i32_51 = arith.constant 494 : i32
    %75 = tpu.dynamic_rotate %68 by %c494_i32_51 dim 1 : vector<8x512xf32>, i32 -> vector<8x512xf32>
    %c480_i32_52 = arith.constant 480 : i32
    %76 = tpu.dynamic_rotate %68 by %c480_i32_52 dim 1 : vector<8x512xf32>, i32 -> vector<8x512xf32>
    %c479_i32_53 = arith.constant 479 : i32
    %77 = tpu.dynamic_rotate %68 by %c479_i32_53 dim 1 : vector<8x512xf32>, i32 -> vector<8x512xf32>
    %c478_i32_54 = arith.constant 478 : i32
    %78 = tpu.dynamic_rotate %68 by %c478_i32_54 dim 1 : vector<8x512xf32>, i32 -> vector<8x512xf32>
    %79 = tpu.concatenate %68, %71, %72, %73, %74, %75, %76, %77, %78 in 0 : vector<8x512xf32>, vector<8x512xf32>, vector<8x512xf32>, vector<8x512xf32>, vector<8x512xf32>, vector<8x512xf32>, vector<8x512xf32>, vector<8x512xf32>, vector<8x512xf32> -> vector<72x512xf32>
    %cst_55 = arith.constant dense<0.000000e+00> : vector<3x512xf32>
    %80 = tpu.matmul %69, %79, %cst_55 {dimension_numbers = #tpu.dot_dimension_numbers<[1], [0], [0], [1], [0, 0, 1, 1], [], []>} : vector<3x72xf32>, vector<72x512xf32>, vector<3x512xf32> -> vector<3x512xf32>
    %81 = vector.broadcast %70 : vector<3x1xf32> to vector<3x512xf32>
    %82 = arith.addf %80, %81 : vector<3x512xf32>
    %cst_56 = arith.constant 0.000000e+00 : f32
    %83 = vector.broadcast %cst_56 : f32 to vector<3x512xf32>
    %84 = arith.maximumf %82, %83 : vector<3x512xf32>
    %c0_57 = arith.constant 0 : index
    %c0_58 = arith.constant 0 : index
    %c0_59 = arith.constant 0 : index
    %85 = vector.load %arg10[%c0_57, %c0_58, %c0_59] : memref<1x3x512xf32, #tpu.memory_space<vmem>>, vector<1x3x512xf32>
    %86 = vector.shape_cast %85 : vector<1x3x512xf32> to vector<3x512xf32>
    %87 = vector.shape_cast %84 : vector<3x512xf32> to vector<1x3x512xf32>
    tpu.vector_store %arg10[%c0_57, %c0_58, %c0_59], %87 {strides = array<i32>} : memref<1x3x512xf32, #tpu.memory_space<vmem>>, vector<1x3x512xf32>,
    return
  }
  func.func @transform_0(%arg0: i32) -> (i32, i32, i32) {
    %c0_i32 = arith.constant 0 : i32
    %c0_i32_0 = arith.constant 0 : i32
    %c0_i32_1 = arith.constant 0 : i32
    return %arg0, %c0_i32, %c0_i32_0 : i32, i32, i32
  }
  func.func @transform_1(%arg0: i32) -> (i32, i32) {
    %c0_i32 = arith.constant 0 : i32
    %c0_i32_0 = arith.constant 0 : i32
    %c0_i32_1 = arith.constant 0 : i32
    return %c0_i32, %c0_i32_0 : i32, i32
  }
  func.func @transform_2(%arg0: i32) -> (i32, i32) {
    %c0_i32 = arith.constant 0 : i32
    %c0_i32_0 = arith.constant 0 : i32
    %c0_i32_1 = arith.constant 0 : i32
    return %c0_i32, %c0_i32_0 : i32, i32
  }
  func.func @transform_3(%arg0: i32) -> (i32, i32) {
    %c0_i32 = arith.constant 0 : i32
    %c0_i32_0 = arith.constant 0 : i32
    %c0_i32_1 = arith.constant 0 : i32
    return %c0_i32, %c0_i32_0 : i32, i32
  }
  func.func @transform_4(%arg0: i32) -> (i32, i32) {
    %c0_i32 = arith.constant 0 : i32
    %c0_i32_0 = arith.constant 0 : i32
    %c0_i32_1 = arith.constant 0 : i32
    return %c0_i32, %c0_i32_0 : i32, i32
  }
  func.func @transform_5(%arg0: i32) -> (i32, i32) {
    %c0_i32 = arith.constant 0 : i32
    %c0_i32_0 = arith.constant 0 : i32
    %c0_i32_1 = arith.constant 0 : i32
    return %c0_i32, %c0_i32_0 : i32, i32
  }
  func.func @transform_6(%arg0: i32) -> (i32, i32) {
    %c0_i32 = arith.constant 0 : i32
    %c0_i32_0 = arith.constant 0 : i32
    %c0_i32_1 = arith.constant 0 : i32
    return %c0_i32, %c0_i32_0 : i32, i32
  }
  func.func @transform_7(%arg0: i32) -> (i32, i32) {
    %c0_i32 = arith.constant 0 : i32
    %c0_i32_0 = arith.constant 0 : i32
    %c0_i32_1 = arith.constant 0 : i32
    return %c0_i32, %c0_i32_0 : i32, i32
  }
  func.func @transform_8(%arg0: i32) -> (i32, i32) {
    %c0_i32 = arith.constant 0 : i32
    %c0_i32_0 = arith.constant 0 : i32
    %c0_i32_1 = arith.constant 0 : i32
    return %c0_i32, %c0_i32_0 : i32, i32
  }
  func.func @transform_9(%arg0: i32) -> (i32, i32, i32) {
    %c0_i32 = arith.constant 0 : i32
    %c0_i32_0 = arith.constant 0 : i32
    %c0_i32_1 = arith.constant 0 : i32
    return %arg0, %c0_i32, %c0_i32_0 : i32, i32, i32
  }
}

</mosaic_0001>

<bundles_post_ra>
// kernel: material_model_forward.1
= control target key start
LH: loop header
LB: loop body
LE: loop exit
PB: predicated region body
PF: predicated region fallthrough
CT: control target
= control target key end

     0   :  { %s2231_s13 = smov 94   ;;  %s2232_s18 = smov 95   ;;  %v5232_v4 = vmov 0.0   ;;  %v2239_v5 = vmov 0   ;;  %v48_v12 = vlaneseq  ;;  %vm156_vm8 = vcmask 588800   ;;  %s5222_s0 = inlined_call_operand.vmem [shape: f32[1,8,512], index: 0, kind: input, shape index: {}]   ;;  %s5223_s2 = inlined_call_operand.vmem [shape: f32[16,1], index: 2, kind: input, shape index: {}]   ;;  %s5224_s4 = inlined_call_operand.vmem [shape: f32[32,1], index: 4, kind: input, shape index: {}]   ;;  %s5225_s1 = inlined_call_operand.vmem [shape: f32[16,72], index: 1, kind: input, shape index: {}]   ;;  %s5226_s3 = inlined_call_operand.vmem [shape: f32[32,256], index: 3, kind: input, shape index: {}]   ;;  %s5227_s5 = inlined_call_operand.vmem [shape: f32[8,512], index: 5, kind: input, shape index: {}]   ;;  %s5228_s6 = inlined_call_operand.vmem [shape: f32[8,1], index: 6, kind: input, shape index: {}]   ;;  %s5229_s8 = inlined_call_operand.vmem [shape: f32[3,1], index: 8, kind: input, shape index: {}]   ;;  %s5230_s7 = inlined_call_operand.vmem [shape: f32[3,72], index: 7, kind: input, shape index: {}]   ;;  %s5231_s9 = inlined_call_operand.vmem [shape: f32[1,3,512], index: 9, kind: output, shape index: {}]  }
   0x1   :  { %v2301_v0 = vld [vmem:[%s5222_s0 + $0x10] sm:$0xff]  ;;  %v2306_v1 = vld [vmem:[%s5222_s0] sm:$0xff]  ;;  %v2315_v2 = vld [vmem:[%s5222_s0 + $0x18] sm:$0xff]  ;;  %s2234_s19 = smov 110   ;;  %s2235_s20 = smov 111   ;;  %227 = vmatprep.mubr.f32.mxu0 %v5232_v4  ;;  %304 = vmatprep.mubr.f32.mxu1 %v5232_v4 }
   0x2   :  { %137 = vrot.lane.b32.xlu1 %v2301_v0, %s2231_s13  ;;  %133 = vrot.lane.b32.xlu0 %v2306_v1, %s2231_s13  ;;  %v2320_v3 = vld [vmem:[%s5222_s0 + $0x8] sm:$0xff]  ;;  %s2233_s0 = smov 96   ;;  %s2236_s21 = smov 112   ;;  %v38_v6 = vld [vmem:[%s5223_s2] sm:$0xff]  ;;  %v2402_v13 = vand.u32 127, %v48_v12 }
   0x3   :  { %s2237_s22 = smov 126   ;;  %2230 = vset.pattern.permute.xlu1 %v2239_v5  ;;  %2229 = vset.pattern.permute.xlu0 %v2239_v5  ;;  %s2240_s23 = smov 127   ;;  %v39_v7 = vld [vmem:[%s5223_s2 + $0x8] sm:$0xff]  ;;  %v336_v8 = vld [vmem:[%s5224_s4 + $0x18] sm:$0xff]  ;;  %v335_v9 = vld [vmem:[%s5224_s4 + $0x10] sm:$0xff] }
   0x4   :  { %v334_v10 = vld [vmem:[%s5224_s4 + $0x8] sm:$0xff]  ;;  %v333_v11 = vld [vmem:[%s5224_s4] sm:$0xff]  ;;  %vm141_vm0 = vcmp.lt.s32.totalorder %v2402_v13, 94  ;;  %vm128_vm1 = vcmp.lt.s32.totalorder %v2402_v13, 95  ;;  %vm115_vm2 = vcmp.lt.s32.totalorder %v2402_v13, 96  ;;  %vm102_vm3 = vcmp.lt.s32.totalorder %v2402_v13, 110 }
   0x5   :  { %vm89_vm4 = vcmp.lt.s32.totalorder %v2402_v13, 111  ;;  %vm76_vm5 = vcmp.lt.s32.totalorder %v2402_v13, 112  ;;  %vm63_vm6 = vcmp.lt.s32.totalorder %v2402_v13, 126  ;;  %vm50_vm7 = vcmp.lt.s32.totalorder %v2402_v13, 127  ;;  %s2241_s24 = smov 109   ;;  %s2243_s25 = smov 77  }
   0x6   :  { %139 = vrot.lane.b32.xlu1 %v2315_v2, %s2231_s13  ;;  %135 = vrot.lane.b32.xlu0 %v2320_v3, %s2231_s13  ;;  %s2244_s26 = smov 78   ;;  %s2245_s27 = smov 79   ;;  %vm498_vm9 = vcmp.lt.s32.totalorder %v2402_v13, 109  ;;  %vm401_vm10 = vcmp.lt.s32.totalorder %v2402_v13, 125  ;;  %vm695_vm11 = vcmp.lt.s32.totalorder %v2402_v13, 77  ;;  %vm670_vm12 = vcmp.lt.s32.totalorder %v2402_v13, 78 }
   0x7   :  { %s2246_s28 = smov 80   ;;  %s2247_s29 = smov 93   ;;  %vm645_vm13 = vcmp.lt.s32.totalorder %v2402_v13, 79  ;;  %vm620_vm14 = vcmp.lt.s32.totalorder %v2402_v13, 80  ;;  %vm595_vm15 = vcmp.lt.s32.totalorder %v2402_v13, 93 }
   0xa   :  { %122 = vrot.lane.b32.xlu1 %v2320_v3, %s2232_s18  ;;  %120 = vrot.lane.b32.xlu0 %v2306_v1, %s2232_s18 }
   0xe   :  { %126 = vrot.lane.b32.xlu1 %v2315_v2, %s2232_s18  ;;  %124 = vrot.lane.b32.xlu0 %v2301_v0, %s2232_s18 }
  0x12   :  { %109 = vrot.lane.b32.xlu1 %v2320_v3, %s2233_s0  ;;  %107 = vrot.lane.b32.xlu0 %v2306_v1, %s2233_s0 }
  0x16   :  { %113 = vrot.lane.b32.xlu1 %v2315_v2, %s2233_s0  ;;  %111 = vrot.lane.b32.xlu0 %v2301_v0, %s2233_s0 }
  0x1a   :  { %96 = vrot.lane.b32.xlu1 %v2320_v3, %s2234_s19  ;;  %94 = vrot.lane.b32.xlu0 %v2306_v1, %s2234_s19 }
  0x1e   :  { %100 = vrot.lane.b32.xlu1 %v2315_v2, %s2234_s19  ;;  %98 = vrot.lane.b32.xlu0 %v2301_v0, %s2234_s19 }
  0x22   :  { %83 = vrot.lane.b32.xlu1 %v2320_v3, %s2235_s20  ;;  %81 = vrot.lane.b32.xlu0 %v2306_v1, %s2235_s20 }
  0x26   :  { %87 = vrot.lane.b32.xlu1 %v2315_v2, %s2235_s20  ;;  %85 = vrot.lane.b32.xlu0 %v2301_v0, %s2235_s20 }
  0x2a   :  { %70 = vrot.lane.b32.xlu1 %v2320_v3, %s2236_s21  ;;  %68 = vrot.lane.b32.xlu0 %v2306_v1, %s2236_s21 }
  0x2e   :  { %74 = vrot.lane.b32.xlu1 %v2315_v2, %s2236_s21  ;;  %72 = vrot.lane.b32.xlu0 %v2301_v0, %s2236_s21 }
  0x32   :  { %57 = vrot.lane.b32.xlu1 %v2320_v3, %s2237_s22  ;;  %55 = vrot.lane.b32.xlu0 %v2306_v1, %s2237_s22 }
  0x36   :  { %61 = vrot.lane.b32.xlu1 %v2315_v2, %s2237_s22  ;;  %59 = vrot.lane.b32.xlu0 %v2301_v0, %s2237_s22 }
  0x3a   :  { %42 = vrot.lane.b32.xlu1 %v2320_v3, %s2240_s23  ;;  %40 = vrot.lane.b32.xlu0 %v2306_v1, %s2240_s23 }
  0x3e   :  { %46 = vrot.lane.b32.xlu1 %v2315_v2, %s2240_s23  ;;  %44 = vrot.lane.b32.xlu0 %v2301_v0, %s2240_s23 }
  0x42   :  { %148 = vperm.xlu1 %2230, %v38_v6   ;;  %153 = vperm.xlu0 %2229, %v39_v7  }
  0x46   :  { %721 = vperm.xlu1 %2230, %v336_v8   ;;  %716 = vperm.xlu0 %2229, %v335_v9  }
  0x4a   :  { %711 = vperm.xlu1 %2230, %v334_v10   ;;  %706 = vperm.xlu0 %2229, %v333_v11  }
  0x74   :  { %v138_v14 = vpop.permute.xlu1 %137  ;;  %v134_v15 = vpop.permute.xlu0 %133 }
  0x78   :  { %v140_v16 = vpop.permute.xlu1 %139  ;;  %v136_v17 = vpop.permute.xlu0 %135 }
  0x79   :  { %v143_v18 = vsel %vm141_vm0, %v136_v17, %v138_v14  ;;  %v145_v19 = vsel %vm141_vm0, %v140_v16, %v134_v15  ;;  %v144_v20 = vsel %vm141_vm0, %v134_v15, %v136_v17  ;;  %v142_v21 = vsel %vm141_vm0, %v138_v14, %v140_v16 }
  0x7a   :  { %177 = vmatprep.subr.mxu0 %v143_v18  ;;  %254 = vmatprep.subr.mxu1 %v145_v19 }
  0x7b   :  { %178 = vmatpush1.msra.mxu0 %v144_v20  ;;  %255 = vmatpush1.msra.mxu1 %v142_v21  ;;  %v36_v20 = vld [vmem:[%s5225_s1] sm:$0xff]  ;;  %v37_v21 = vld [vmem:[%s5225_s1 + $0x8] sm:$0xff]  ;;  %s2242_s1 = smov 125  }
  0x7c   :  { %v123_v22 = vpop.permute.xlu1 %122  ;;  %v121_v23 = vpop.permute.xlu0 %120 }
  0x7d   :  { %v131_v29 = vsel %vm128_vm1, %v121_v23, %v123_v22 }
  0x80   :  { %v127_v24 = vpop.permute.xlu1 %126  ;;  %v125_v25 = vpop.permute.xlu0 %124 }
  0x81   :  { %v130_v26 = vsel %vm128_vm1, %v123_v22, %v125_v25  ;;  %v132_v27 = vsel %vm128_vm1, %v127_v24, %v121_v23  ;;  %v129_v28 = vsel %vm128_vm1, %v125_v25, %v127_v24 }
  0x82   :  { %179 = vmatprep.subr.mxu0 %v130_v26  ;;  %256 = vmatprep.subr.mxu1 %v132_v27 }
  0x83   :  { %180 = vmatpush1.msra.mxu0 %v131_v29  ;;  %257 = vmatpush1.msra.mxu1 %v129_v28 }
  0x84   :  { %v110_v30 = vpop.permute.xlu1 %109  ;;  %v108_v31 = vpop.permute.xlu0 %107 }
  0x85   :  { %v118_v37 = vsel %vm115_vm2, %v108_v31, %v110_v30 }
  0x88   :  { %v114_v32 = vpop.permute.xlu1 %113  ;;  %v112_v33 = vpop.permute.xlu0 %111 }
  0x89   :  { %v117_v34 = vsel %vm115_vm2, %v110_v30, %v112_v33  ;;  %v119_v35 = vsel %vm115_vm2, %v114_v32, %v108_v31  ;;  %v116_v36 = vsel %vm115_vm2, %v112_v33, %v114_v32 }
  0x8a   :  { %181 = vmatprep.subr.mxu0 %v117_v34  ;;  %258 = vmatprep.subr.mxu1 %v119_v35 }
  0x8b   :  { %182 = vmatpush1.msra.mxu0 %v118_v37  ;;  %259 = vmatpush1.msra.mxu1 %v116_v36 }
  0x8c   :  { %v97_v38 = vpop.permute.xlu1 %96  ;;  %v95_v39 = vpop.permute.xlu0 %94 }
  0x8d   :  { %v105_v45 = vsel %vm102_vm3, %v95_v39, %v97_v38 }
  0x90   :  { %v101_v40 = vpop.permute.xlu1 %100  ;;  %v99_v41 = vpop.permute.xlu0 %98 }
  0x91   :  { %v104_v42 = vsel %vm102_vm3, %v97_v38, %v99_v41  ;;  %v106_v43 = vsel %vm102_vm3, %v101_v40, %v95_v39  ;;  %v103_v44 = vsel %vm102_vm3, %v99_v41, %v101_v40 }
  0x92   :  { %183 = vmatprep.subr.mxu0 %v104_v42  ;;  %260 = vmatprep.subr.mxu1 %v106_v43 }
  0x93   :  { %184 = vmatpush1.msra.mxu0 %v105_v45  ;;  %261 = vmatpush1.msra.mxu1 %v103_v44 }
  0x94   :  { %v84_v46 = vpop.permute.xlu1 %83  ;;  %v82_v47 = vpop.permute.xlu0 %81 }
  0x95   :  { %v92_v53 = vsel %vm89_vm4, %v82_v47, %v84_v46 }
  0x98   :  { %v88_v48 = vpop.permute.xlu1 %87  ;;  %v86_v49 = vpop.permute.xlu0 %85 }
  0x99   :  { %v91_v50 = vsel %vm89_vm4, %v84_v46, %v86_v49  ;;  %v93_v51 = vsel %vm89_vm4, %v88_v48, %v82_v47  ;;  %v90_v52 = vsel %vm89_vm4, %v86_v49, %v88_v48 }
  0x9a   :  { %185 = vmatprep.subr.mxu0 %v91_v50  ;;  %262 = vmatprep.subr.mxu1 %v93_v51 }
  0x9b   :  { %186 = vmatpush1.msra.mxu0 %v92_v53  ;;  %263 = vmatpush1.msra.mxu1 %v90_v52 }
  0x9c   :  { %v71_v54 = vpop.permute.xlu1 %70  ;;  %v69_v55 = vpop.permute.xlu0 %68 }
  0x9d   :  { %v79_v61 = vsel %vm76_vm5, %v69_v55, %v71_v54 }
  0xa0   :  { %v75_v56 = vpop.permute.xlu1 %74  ;;  %v73_v57 = vpop.permute.xlu0 %72 }
  0xa1   :  { %v78_v58 = vsel %vm76_vm5, %v71_v54, %v73_v57  ;;  %v80_v59 = vsel %vm76_vm5, %v75_v56, %v69_v55  ;;  %v77_v60 = vsel %vm76_vm5, %v73_v57, %v75_v56 }
  0xa2   :  { %187 = vmatprep.subr.mxu0 %v78_v58  ;;  %264 = vmatprep.subr.mxu1 %v80_v59 }
  0xa3   :  { %188 = vmatpush1.msra.mxu0 %v79_v61  ;;  %265 = vmatpush1.msra.mxu1 %v77_v60 }
  0xa4   :  { %v58_v62 = vpop.permute.xlu1 %57  ;;  %v56_v63 = vpop.permute.xlu0 %55 }
  0xa5   :  { %v66_v10 = vsel %vm63_vm6, %v56_v63, %v58_v62 }
  0xa8   :  { %v62_v5 = vpop.permute.xlu1 %61  ;;  %v60_v6 = vpop.permute.xlu0 %59 }
  0xa9   :  { %v65_v7 = vsel %vm63_vm6, %v58_v62, %v60_v6  ;;  %v67_v8 = vsel %vm63_vm6, %v62_v5, %v56_v63  ;;  %v64_v9 = vsel %vm63_vm6, %v60_v6, %v62_v5 }
  0xaa   :  { %189 = vmatprep.subr.mxu0 %v65_v7  ;;  %266 = vmatprep.subr.mxu1 %v67_v8 }
  0xab   :  { %190 = vmatpush1.msra.mxu0 %v66_v10  ;;  %267 = vmatpush1.msra.mxu1 %v64_v9 }
  0xac   :  { %v43_v11 = vpop.permute.xlu1 %42  ;;  %v41_v12 = vpop.permute.xlu0 %40 }
  0xad   :  { %v53_v19 = vsel %vm50_vm7, %v41_v12, %v43_v11 }
  0xb0   :  { %v47_v14 = vpop.permute.xlu1 %46  ;;  %v45_v15 = vpop.permute.xlu0 %44 }
  0xb1   :  { %v52_v16 = vsel %vm50_vm7, %v43_v11, %v45_v15  ;;  %v54_v17 = vsel %vm50_vm7, %v47_v14, %v41_v12  ;;  %v51_v18 = vsel %vm50_vm7, %v45_v15, %v47_v14 }
  0xb2   :  { %191 = vmatprep.subr.mxu0 %v52_v16  ;;  %268 = vmatprep.subr.mxu1 %v54_v17 }
  0xb3   :  { %192 = vmatpush1.msra.mxu0 %v53_v19  ;;  %269 = vmatpush1.msra.mxu1 %v51_v18 }
  0xb4   :  { %193 = vmatprep.subr.mxu0 %v2320_v3  ;;  %270 = vmatprep.subr.mxu1 %v2315_v2 }
  0xb5   :  { %194 = vmatpush1.msra.mxu0 %v2306_v1  ;;  %271 = vmatpush1.msra.mxu1 %v2301_v0 }
  0xb6   :  { %2206 = vmatmul.mubr.msk.f32.vlgmr.msra.gmra.mxu0 %vm156_vm8, %v36_v20  ;;  %2208 = vmatmul.mubr.msk.f32.vlgmr.msra.gmra.mxu1 %vm156_vm8, %v36_v20 }
  0xb7   :  { %233 = vmatprep.mubr.f32.mxu0 %v5232_v4  ;;  %310 = vmatprep.mubr.f32.mxu1 %v5232_v4 }
  0xba   :  { %2207 = vmatmul.mubr.msk.f32.gmra.mxu0 %vm156_vm8, %v37_v21  ;;  %2209 = vmatmul.mubr.msk.f32.gmra.mxu1 %vm156_vm8, %v37_v21 }
  0xbd   :  { %v149_v2 = vpop.permute.xlu1 %148  ;;  %v154_v31 = vpop.permute.xlu0 %153 }
  0xc1   :  { %v2604_v32 = vpop.permute.xlu1 %721  ;;  %v2608_v33 = vpop.permute.xlu0 %716 }
  0xc2   :  { %5373 = vst [vmem:[#allocation2_spill] sm:$0xff] %v2604_v32  ;;  %5374 = vst [vmem:[#allocation3_spill] sm:$0xff] %v2608_v33 }
  0xc5   :  { %v2614_v35 = vpop.permute.xlu1 %711  ;;  %v2618_v36 = vpop.permute.xlu0 %706 }
  0xc6   :  { %5375 = vst [vmem:[#allocation4_spill] sm:$0xff] %v2614_v35  ;;  %5376 = vst [vmem:[#allocation5_spill] sm:$0xff] %v2618_v36 }
 0x176   :  { %v229_v1 = vpop.f32.mrf.mxu0  ;;  %v306_v3 = vpop.f32.mrf.mxu1 }
 0x177   :  { %v230_v0 = vadd.f32 %v229_v1, %v149_v2  ;;  %v307_v25 = vadd.f32 %v306_v3, %v149_v2 }
 0x178   :  { %v231_v22 = vpop.f32.mrf.mxu0  ;;  %v308_v23 = vpop.f32.mrf.mxu1 }
 0x179   :  { %v2492_v24 = vmax.f32 %v230_v0, 0.0  ;;  %v232_v26 = vadd.f32 %v231_v22, %v149_v2  ;;  %v309_v28 = vadd.f32 %v308_v23, %v149_v2  ;;  %v2498_v29 = vmax.f32 %v307_v25, 0.0 }
 0x17a   :  { %v235_v34 = vpop.f32.mrf.mxu0  ;;  %v312_v37 = vpop.f32.mrf.mxu1 }
 0x17b   :  { %v2494_v27 = vmax.f32 %v232_v26, 0.0  ;;  %482 = vrot.lane.b32.xlu1 %v2492_v24, %s2241_s24  ;;  %v2502_v30 = vmax.f32 %v309_v28, 0.0  ;;  %v236_v39 = vadd.f32 %v235_v34, %v154_v31  ;;  %v313_v45 = vadd.f32 %v312_v37, %v154_v31 }
 0x17c   :  { %v237_v38 = vpop.f32.mrf.mxu0  ;;  %v314_v43 = vpop.f32.mrf.mxu1 }
 0x17d   :  { %486 = vrot.lane.b32.xlu0 %v2494_v27, %s2241_s24  ;;  %v238_v41 = vadd.f32 %v237_v38, %v154_v31  ;;  %v2630_v44 = vmax.f32 %v236_v39, 0.0  ;;  %v315_v48 = vadd.f32 %v314_v43, %v154_v31  ;;  %v2642_v50 = vmax.f32 %v313_v45, 0.0 }
 0x17f   :  { %490 = vrot.lane.b32.xlu1 %v2498_v29, %s2241_s24  ;;  %v2636_v47 = vmax.f32 %v238_v41, 0.0  ;;  %v2648_v52 = vmax.f32 %v315_v48, 0.0 }
 0x181   :  { %494 = vrot.lane.b32.xlu0 %v2502_v30, %s2241_s24 }
 0x183   :  { %458 = vrot.lane.b32.xlu1 %v2492_v24, %s2234_s19 }
 0x185   :  { %462 = vrot.lane.b32.xlu0 %v2494_v27, %s2234_s19 }
 0x187   :  { %466 = vrot.lane.b32.xlu1 %v2498_v29, %s2234_s19 }
 0x189   :  { %470 = vrot.lane.b32.xlu0 %v2502_v30, %s2234_s19 }
 0x18b   :  { %434 = vrot.lane.b32.xlu1 %v2492_v24, %s2235_s20 }
 0x18d   :  { %438 = vrot.lane.b32.xlu0 %v2494_v27, %s2235_s20 }
 0x18f   :  { %442 = vrot.lane.b32.xlu1 %v2498_v29, %s2235_s20 }
 0x191   :  { %446 = vrot.lane.b32.xlu0 %v2502_v30, %s2235_s20 }
 0x193   :  { %410 = vrot.lane.b32.xlu1 %v2492_v24, %s2236_s21 }
 0x195   :  { %414 = vrot.lane.b32.xlu0 %v2494_v27, %s2236_s21 }
 0x197   :  { %418 = vrot.lane.b32.xlu1 %v2498_v29, %s2236_s21 }
 0x199   :  { %422 = vrot.lane.b32.xlu0 %v2502_v30, %s2236_s21 }
 0x19b   :  { %385 = vrot.lane.b32.xlu1 %v2492_v24, %s2242_s1 }
 0x19d   :  { %389 = vrot.lane.b32.xlu0 %v2494_v27, %s2242_s1 }
 0x19f   :  { %393 = vrot.lane.b32.xlu1 %v2498_v29, %s2242_s1 }
 0x1a1   :  { %397 = vrot.lane.b32.xlu0 %v2502_v30, %s2242_s1 }
 0x1a3   :  { %361 = vrot.lane.b32.xlu1 %v2492_v24, %s2237_s22 }
 0x1a5   :  { %365 = vrot.lane.b32.xlu0 %v2494_v27, %s2237_s22 }
 0x1a7   :  { %369 = vrot.lane.b32.xlu1 %v2498_v29, %s2237_s22 }
 0x1a9   :  { %373 = vrot.lane.b32.xlu0 %v2502_v30, %s2237_s22 }
 0x1ab   :  { %337 = vrot.lane.b32.xlu1 %v2492_v24, %s2240_s23 }
 0x1ad   :  { %341 = vrot.lane.b32.xlu0 %v2494_v27, %s2240_s23 }
 0x1af   :  { %345 = vrot.lane.b32.xlu1 %v2498_v29, %s2240_s23 }
 0x1b1   :  { %349 = vrot.lane.b32.xlu0 %v2502_v30, %s2240_s23 }
 0x1b3   :  { %679 = vrot.lane.b32.xlu1 %v2492_v24, %s2243_s25 }
 0x1b5   :  { %683 = vrot.lane.b32.xlu0 %v2494_v27, %s2243_s25 }
 0x1b7   :  { %687 = vrot.lane.b32.xlu1 %v2498_v29, %s2243_s25 }
 0x1b9   :  { %691 = vrot.lane.b32.xlu0 %v2502_v30, %s2243_s25 }
 0x1bb   :  { %654 = vrot.lane.b32.xlu1 %v2492_v24, %s2244_s26 }
 0x1bd   :  { %658 = vrot.lane.b32.xlu0 %v2494_v27, %s2244_s26 }
 0x1bf   :  { %662 = vrot.lane.b32.xlu1 %v2498_v29, %s2244_s26 }
 0x1c1   :  { %666 = vrot.lane.b32.xlu0 %v2502_v30, %s2244_s26 }
 0x1c3   :  { %629 = vrot.lane.b32.xlu1 %v2492_v24, %s2245_s27 }
 0x1c5   :  { %633 = vrot.lane.b32.xlu0 %v2494_v27, %s2245_s27 }
 0x1c7   :  { %637 = vrot.lane.b32.xlu1 %v2498_v29, %s2245_s27 }
 0x1c9   :  { %641 = vrot.lane.b32.xlu0 %v2502_v30, %s2245_s27 }
 0x1cb   :  { %604 = vrot.lane.b32.xlu1 %v2492_v24, %s2246_s28 }
 0x1cd   :  { %608 = vrot.lane.b32.xlu0 %v2494_v27, %s2246_s28 }
 0x1cf   :  { %612 = vrot.lane.b32.xlu1 %v2498_v29, %s2246_s28 }
 0x1d1   :  { %616 = vrot.lane.b32.xlu0 %v2502_v30, %s2246_s28 }
 0x1d3   :  { %579 = vrot.lane.b32.xlu1 %v2492_v24, %s2247_s29 }
 0x1d5   :  { %583 = vrot.lane.b32.xlu0 %v2494_v27, %s2247_s29 }
 0x1d7   :  { %587 = vrot.lane.b32.xlu1 %v2498_v29, %s2247_s29 }
 0x1d9   :  { %591 = vrot.lane.b32.xlu0 %v2502_v30, %s2247_s29 }
 0x1db   :  { %555 = vrot.lane.b32.xlu1 %v2492_v24, %s2231_s13 }
 0x1dd   :  { %559 = vrot.lane.b32.xlu0 %v2494_v27, %s2231_s13 }
 0x1df   :  { %563 = vrot.lane.b32.xlu1 %v2498_v29, %s2231_s13 }
 0x1e1   :  { %567 = vrot.lane.b32.xlu0 %v2502_v30, %s2231_s13 }
 0x1e3   :  { %531 = vrot.lane.b32.xlu1 %v2492_v24, %s2232_s18 }
 0x1e5   :  { %535 = vrot.lane.b32.xlu0 %v2494_v27, %s2232_s18 }
 0x1e7   :  { %539 = vrot.lane.b32.xlu1 %v2498_v29, %s2232_s18 }
 0x1e9   :  { %543 = vrot.lane.b32.xlu0 %v2502_v30, %s2232_s18 }
 0x1eb   :  { %507 = vrot.lane.b32.xlu1 %v2492_v24, %s2233_s0 }
 0x1ed   :  { %v2622_v40 = vpop.permute.xlu1 %482  ;;  %511 = vrot.lane.b32.xlu0 %v2494_v27, %s2233_s0 }
 0x1ef   :  { %515 = vrot.lane.b32.xlu1 %v2498_v29, %s2233_s0  ;;  %v2628_v42 = vpop.permute.xlu0 %486 }
 0x1f1   :  { %519 = vrot.lane.b32.xlu0 %v2502_v30, %s2233_s0  ;;  %v2634_v46 = vpop.permute.xlu1 %490 }
 0x1f3   :  { %484 = vrot.lane.b32.xlu1 %v2630_v44, %s2241_s24  ;;  %v2640_v49 = vpop.permute.xlu0 %494 }
 0x1f5   :  { %v2644_v51 = vpop.permute.xlu1 %458  ;;  %488 = vrot.lane.b32.xlu0 %v2636_v47, %s2241_s24 }
 0x1f7   :  { %492 = vrot.lane.b32.xlu1 %v2642_v50, %s2241_s24  ;;  %v2652_v53 = vpop.permute.xlu0 %462 }
 0x1f9   :  { %v2654_v54 = vpop.permute.xlu1 %466  ;;  %496 = vrot.lane.b32.xlu0 %v2648_v52, %s2241_s24 }
 0x1fb   :  { %460 = vrot.lane.b32.xlu1 %v2630_v44, %s2234_s19  ;;  %v2660_v55 = vpop.permute.xlu0 %470 }
 0x1fd   :  { %v2662_v56 = vpop.permute.xlu1 %434  ;;  %464 = vrot.lane.b32.xlu0 %v2636_v47, %s2234_s19 }
 0x1ff   :  { %468 = vrot.lane.b32.xlu1 %v2642_v50, %s2234_s19  ;;  %v2668_v57 = vpop.permute.xlu0 %438 }
 0x201   :  { %v2670_v58 = vpop.permute.xlu1 %442  ;;  %472 = vrot.lane.b32.xlu0 %v2648_v52, %s2234_s19 }
 0x203   :  { %436 = vrot.lane.b32.xlu1 %v2630_v44, %s2235_s20  ;;  %v2676_v59 = vpop.permute.xlu0 %446 }
 0x205   :  { %v2678_v60 = vpop.permute.xlu1 %410  ;;  %440 = vrot.lane.b32.xlu0 %v2636_v47, %s2235_s20 }
 0x207   :  { %444 = vrot.lane.b32.xlu1 %v2642_v50, %s2235_s20  ;;  %v2684_v61 = vpop.permute.xlu0 %414 }
 0x209   :  { %v2686_v62 = vpop.permute.xlu1 %418  ;;  %448 = vrot.lane.b32.xlu0 %v2648_v52, %s2235_s20 }
 0x20b   :  { %412 = vrot.lane.b32.xlu1 %v2630_v44, %s2236_s21  ;;  %v2692_v63 = vpop.permute.xlu0 %422 }
 0x20d   :  { %v2694_v5 = vpop.permute.xlu1 %385  ;;  %416 = vrot.lane.b32.xlu0 %v2636_v47, %s2236_s21 }
 0x20f   :  { %420 = vrot.lane.b32.xlu1 %v2642_v50, %s2236_s21  ;;  %v2700_v6 = vpop.permute.xlu0 %389 }
 0x211   :  { %v2702_v7 = vpop.permute.xlu1 %393  ;;  %424 = vrot.lane.b32.xlu0 %v2648_v52, %s2236_s21 }
 0x213   :  { %387 = vrot.lane.b32.xlu1 %v2630_v44, %s2242_s1  ;;  %v2708_v8 = vpop.permute.xlu0 %397 }
 0x215   :  { %v2710_v9 = vpop.permute.xlu1 %361  ;;  %391 = vrot.lane.b32.xlu0 %v2636_v47, %s2242_s1 }
 0x217   :  { %395 = vrot.lane.b32.xlu1 %v2642_v50, %s2242_s1  ;;  %v2716_v10 = vpop.permute.xlu0 %365 }
 0x219   :  { %v2718_v11 = vpop.permute.xlu1 %369  ;;  %399 = vrot.lane.b32.xlu0 %v2648_v52, %s2242_s1 }
 0x21b   :  { %363 = vrot.lane.b32.xlu1 %v2630_v44, %s2237_s22  ;;  %v2724_v12 = vpop.permute.xlu0 %373 }
 0x21d   :  { %v2726_v14 = vpop.permute.xlu1 %337  ;;  %367 = vrot.lane.b32.xlu0 %v2636_v47, %s2237_s22 }
 0x21f   :  { %371 = vrot.lane.b32.xlu1 %v2642_v50, %s2237_s22  ;;  %v2732_v15 = vpop.permute.xlu0 %341 }
 0x221   :  { %v2734_v16 = vpop.permute.xlu1 %345  ;;  %375 = vrot.lane.b32.xlu0 %v2648_v52, %s2237_s22 }
 0x223   :  { %339 = vrot.lane.b32.xlu1 %v2630_v44, %s2240_s23  ;;  %v2740_v17 = vpop.permute.xlu0 %349 }
 0x225   :  { %v2742_v18 = vpop.permute.xlu1 %679  ;;  %343 = vrot.lane.b32.xlu0 %v2636_v47, %s2240_s23 }
 0x227   :  { %347 = vrot.lane.b32.xlu1 %v2642_v50, %s2240_s23  ;;  %v2748_v19 = vpop.permute.xlu0 %683 }
 0x229   :  { %v2750_v20 = vpop.permute.xlu1 %687  ;;  %351 = vrot.lane.b32.xlu0 %v2648_v52, %s2240_s23 }
 0x22b   :  { %681 = vrot.lane.b32.xlu1 %v2630_v44, %s2243_s25  ;;  %v2756_v21 = vpop.permute.xlu0 %691 }
 0x22d   :  { %v2758_v2 = vpop.permute.xlu1 %654  ;;  %685 = vrot.lane.b32.xlu0 %v2636_v47, %s2243_s25 }
 0x22f   :  { %689 = vrot.lane.b32.xlu1 %v2642_v50, %s2243_s25  ;;  %v2764_v1 = vpop.permute.xlu0 %658 }
 0x231   :  { %v2766_v3 = vpop.permute.xlu1 %662  ;;  %693 = vrot.lane.b32.xlu0 %v2648_v52, %s2243_s25 }
 0x233   :  { %656 = vrot.lane.b32.xlu1 %v2630_v44, %s2244_s26  ;;  %v2772_v0 = vpop.permute.xlu0 %666 }
 0x235   :  { %v2774_v22 = vpop.permute.xlu1 %629  ;;  %660 = vrot.lane.b32.xlu0 %v2636_v47, %s2244_s26 }
 0x237   :  { %664 = vrot.lane.b32.xlu1 %v2642_v50, %s2244_s26  ;;  %v2780_v23 = vpop.permute.xlu0 %633 }
 0x239   :  { %v2782_v25 = vpop.permute.xlu1 %637  ;;  %668 = vrot.lane.b32.xlu0 %v2648_v52, %s2244_s26 }
 0x23b   :  { %631 = vrot.lane.b32.xlu1 %v2630_v44, %s2245_s27  ;;  %v2788_v26 = vpop.permute.xlu0 %641 }
 0x23d   :  { %v2790_v28 = vpop.permute.xlu1 %604  ;;  %635 = vrot.lane.b32.xlu0 %v2636_v47, %s2245_s27 }
 0x23f   :  { %639 = vrot.lane.b32.xlu1 %v2642_v50, %s2245_s27  ;;  %v2796_v31 = vpop.permute.xlu0 %608 }
 0x241   :  { %v2798_v34 = vpop.permute.xlu1 %612  ;;  %643 = vrot.lane.b32.xlu0 %v2648_v52, %s2245_s27 }
 0x243   :  { %606 = vrot.lane.b32.xlu1 %v2630_v44, %s2246_s28  ;;  %v2804_v37 = vpop.permute.xlu0 %616 }
 0x245   :  { %v2806_v38 = vpop.permute.xlu1 %579  ;;  %610 = vrot.lane.b32.xlu0 %v2636_v47, %s2246_s28 }
 0x246   :  { %5377 = vst [vmem:[#allocation6_spill] sm:$0xff] %v2806_v38 }
 0x247   :  { %614 = vrot.lane.b32.xlu1 %v2642_v50, %s2246_s28  ;;  %v2812_v39 = vpop.permute.xlu0 %583 }
 0x248   :  { %5378 = vst [vmem:[#allocation7_spill] sm:$0xff] %v2812_v39 }
 0x249   :  { %v2814_v41 = vpop.permute.xlu1 %587  ;;  %618 = vrot.lane.b32.xlu0 %v2648_v52, %s2246_s28 }
 0x24b   :  { %581 = vrot.lane.b32.xlu1 %v2630_v44, %s2247_s29  ;;  %v2820_v43 = vpop.permute.xlu0 %591 }
 0x24c   :  { %5379 = vst [vmem:[#allocation8_spill] sm:$0xff] %v2820_v43 }
 0x24d   :  { %v2822_v45 = vpop.permute.xlu1 %555  ;;  %585 = vrot.lane.b32.xlu0 %v2636_v47, %s2247_s29 }
 0x24e   :  { %5380 = vst [vmem:[#allocation9_spill] sm:$0xff] %v2822_v45 }
 0x24f   :  { %589 = vrot.lane.b32.xlu1 %v2642_v50, %s2247_s29  ;;  %v2828_v48 = vpop.permute.xlu0 %559 }
 0x250   :  { %5381 = vst [vmem:[#allocation10_spill] sm:$0xff] %v2828_v48 }
 0x251   :  { %v2830_v4 = vpop.permute.xlu1 %563  ;;  %593 = vrot.lane.b32.xlu0 %v2648_v52, %s2247_s29 }
 0x252   :  { %5382 = vst [vmem:[#allocation11_spill] sm:$0xff] %v2830_v4  ;;  %v501_v4 = vsel %vm498_vm9, %v2628_v42, %v2634_v46 }
 0x253   :  { %557 = vrot.lane.b32.xlu1 %v2630_v44, %s2231_s13  ;;  %v2836_v32 = vpop.permute.xlu0 %567 }
 0x254   :  { %5383 = vst [vmem:[#allocation12_spill] sm:$0xff] %v2836_v32 }
 0x255   :  { %v2838_v33 = vpop.permute.xlu1 %531  ;;  %561 = vrot.lane.b32.xlu0 %v2636_v47, %s2231_s13 }
 0x256   :  { %5384 = vst [vmem:[#allocation13_spill] sm:$0xff] %v2838_v33  ;;  %v326_v33 = vld [vmem:[%s5226_s3 + $0x8] sm:$0xff] }
 0x257   :  { %565 = vrot.lane.b32.xlu1 %v2642_v50, %s2231_s13  ;;  %v2844_v35 = vpop.permute.xlu0 %535  ;;  %788 = vmatprep.mubr.f32.mxu0 %v326_v33 }
 0x258   :  { %5385 = vst [vmem:[#allocation14_spill] sm:$0xff] %v2844_v35  ;;  %877 = vmatprep.mubr.f32.mxu1 %v326_v33 }
 0x259   :  { %v2846_v36 = vpop.permute.xlu1 %539  ;;  %569 = vrot.lane.b32.xlu0 %v2648_v52, %s2231_s13 }
 0x25a   :  { %5386 = vst [vmem:[#allocation15_spill] sm:$0xff] %v2846_v36 }
 0x25b   :  { %533 = vrot.lane.b32.xlu1 %v2630_v44, %s2232_s18  ;;  %v2852_v45 = vpop.permute.xlu0 %543 }
 0x25c   :  { %5387 = vst [vmem:[#allocation16_spill] sm:$0xff] %v2852_v45 }
 0x25d   :  { %v2854_v32 = vpop.permute.xlu1 %507  ;;  %537 = vrot.lane.b32.xlu0 %v2636_v47, %s2232_s18 }
 0x25e   :  { %5388 = vst [vmem:[#allocation17_spill] sm:$0xff] %v2854_v32 }
 0x25f   :  { %541 = vrot.lane.b32.xlu1 %v2642_v50, %s2232_s18  ;;  %v2863_v35 = vpop.permute.xlu0 %511 }
 0x260   :  { %5389 = vst [vmem:[#allocation18_spill] sm:$0xff] %v2863_v35 }
 0x261   :  { %v2865_v36 = vpop.permute.xlu1 %515  ;;  %545 = vrot.lane.b32.xlu0 %v2648_v52, %s2232_s18 }
 0x262   :  { %5390 = vst [vmem:[#allocation19_spill] sm:$0xff] %v2865_v36 }
 0x263   :  { %509 = vrot.lane.b32.xlu1 %v2630_v44, %s2233_s0  ;;  %v2871_v32 = vpop.permute.xlu0 %519 }
 0x264   :  { %5391 = vst [vmem:[#allocation20_spill] sm:$0xff] %v2871_v32 }
 0x265   :  { %v485_v45 = vpop.permute.xlu1 %484  ;;  %513 = vrot.lane.b32.xlu0 %v2636_v47, %s2233_s0 }
 0x267   :  { %517 = vrot.lane.b32.xlu1 %v2642_v50, %s2233_s0  ;;  %v489_v33 = vpop.permute.xlu0 %488 }
 0x268   :  { %v504_v32 = vsel %vm498_vm9, %v485_v45, %v489_v33 }
 0x269   :  { %v493_v48 = vpop.permute.xlu1 %492  ;;  %521 = vrot.lane.b32.xlu0 %v2648_v52, %s2233_s0 }
 0x26a   :  { %v502_v35 = vsel %vm498_vm9, %v489_v33, %v493_v48  ;;  %v478_v33 = vsel %vm102_vm3, %v2644_v51, %v2652_v53 }
 0x26b   :  { %724 = vmatprep.subr.mxu0 %v502_v35  ;;  %v497_v36 = vpop.permute.xlu0 %496  ;;  %v503_v35 = vsel %vm498_vm9, %v2622_v40, %v2628_v42 }
 0x26c   :  { %725 = vmatpush1.msra.mxu0 %v504_v32  ;;  %v506_v43 = vsel %vm498_vm9, %v497_v36, %v485_v45  ;;  %v500_v38 = vsel %vm498_vm9, %v493_v48, %v497_v36  ;;  %v505_v32 = vsel %vm498_vm9, %v2640_v49, %v2622_v40  ;;  %v476_v40 = vsel %vm102_vm3, %v2652_v53, %v2654_v54 }
 0x26d   :  { %v461_v39 = vpop.permute.xlu1 %460  ;;  %726 = vmatprep.subr.mxu0 %v501_v4  ;;  %813 = vmatprep.subr.mxu1 %v506_v43  ;;  %v499_v4 = vsel %vm498_vm9, %v2634_v46, %v2640_v49 }
 0x26e   :  { %727 = vmatpush1.msra.mxu0 %v503_v35  ;;  %814 = vmatpush1.msra.mxu1 %v500_v38  ;;  %v480_v35 = vsel %vm102_vm3, %v2660_v55, %v2644_v51  ;;  %v452_v51 = vsel %vm89_vm4, %v2668_v57, %v2670_v58 }
 0x26f   :  { %815 = vmatprep.subr.mxu1 %v505_v32  ;;  %v465_v45 = vpop.permute.xlu0 %464  ;;  %v474_v32 = vsel %vm102_vm3, %v2654_v54, %v2660_v55 }
 0x270   :  { %816 = vmatpush1.msra.mxu1 %v499_v4  ;;  %v479_v38 = vsel %vm102_vm3, %v461_v39, %v465_v45 }
 0x271   :  { %v469_v36 = vpop.permute.xlu1 %468 }
 0x272   :  { %v477_v43 = vsel %vm102_vm3, %v465_v45, %v469_v36 }
 0x273   :  { %728 = vmatprep.subr.mxu0 %v477_v43  ;;  %v473_v42 = vpop.permute.xlu0 %472 }
 0x274   :  { %729 = vmatpush1.msra.mxu0 %v479_v38  ;;  %v481_v48 = vsel %vm102_vm3, %v473_v42, %v461_v39  ;;  %v475_v46 = vsel %vm102_vm3, %v469_v36, %v473_v42  ;;  %v454_v42 = vsel %vm89_vm4, %v2662_v56, %v2668_v57  ;;  %v456_v38 = vsel %vm89_vm4, %v2676_v59, %v2662_v56 }
 0x275   :  { %v437_v49 = vpop.permute.xlu1 %436  ;;  %730 = vmatprep.subr.mxu0 %v476_v40  ;;  %817 = vmatprep.subr.mxu1 %v481_v48  ;;  %v450_v48 = vsel %vm89_vm4, %v2670_v58, %v2676_v59  ;;  %v428_v56 = vsel %vm76_vm5, %v2684_v61, %v2686_v62 }
 0x276   :  { %731 = vmatpush1.msra.mxu0 %v478_v33  ;;  %818 = vmatpush1.msra.mxu1 %v475_v46 }
 0x277   :  { %819 = vmatprep.subr.mxu1 %v480_v35  ;;  %v441_v39 = vpop.permute.xlu0 %440 }
 0x278   :  { %820 = vmatpush1.msra.mxu1 %v474_v32  ;;  %v455_v36 = vsel %vm89_vm4, %v437_v49, %v441_v39  ;;  %v432_v32 = vsel %vm76_vm5, %v2692_v63, %v2678_v60 }
 0x279   :  { %v445_v45 = vpop.permute.xlu1 %444 }
 0x27a   :  { %v453_v4 = vsel %vm89_vm4, %v441_v39, %v445_v45  ;;  %v430_v39 = vsel %vm76_vm5, %v2678_v60, %v2684_v61  ;;  %v404_v60 = vsel %vm401_vm10, %v2700_v6, %v2702_v7 }
 0x27b   :  { %732 = vmatprep.subr.mxu0 %v453_v4  ;;  %v449_v53 = vpop.permute.xlu0 %448  ;;  %v426_v4 = vsel %vm76_vm5, %v2686_v62, %v2692_v63 }
 0x27c   :  { %733 = vmatpush1.msra.mxu0 %v455_v36  ;;  %v457_v43 = vsel %vm89_vm4, %v449_v53, %v437_v49  ;;  %v451_v54 = vsel %vm89_vm4, %v445_v45, %v449_v53 }
 0x27d   :  { %v413_v55 = vpop.permute.xlu1 %412  ;;  %734 = vmatprep.subr.mxu0 %v452_v51  ;;  %821 = vmatprep.subr.mxu1 %v457_v43 }
 0x27e   :  { %735 = vmatpush1.msra.mxu0 %v454_v42  ;;  %822 = vmatpush1.msra.mxu1 %v451_v54  ;;  %v406_v54 = vsel %vm401_vm10, %v2694_v5, %v2700_v6 }
 0x27f   :  { %823 = vmatprep.subr.mxu1 %v456_v38  ;;  %v417_v40 = vpop.permute.xlu0 %416  ;;  %v402_v38 = vsel %vm401_vm10, %v2702_v7, %v2708_v8 }
 0x280   :  { %824 = vmatpush1.msra.mxu1 %v450_v48  ;;  %v431_v33 = vsel %vm76_vm5, %v413_v55, %v417_v40 }
 0x281   :  { %v421_v46 = vpop.permute.xlu1 %420 }
 0x282   :  { %v429_v49 = vsel %vm76_vm5, %v417_v40, %v421_v46 }
 0x283   :  { %736 = vmatprep.subr.mxu0 %v429_v49  ;;  %v425_v57 = vpop.permute.xlu0 %424 }
 0x284   :  { %737 = vmatpush1.msra.mxu0 %v431_v33  ;;  %v433_v35 = vsel %vm76_vm5, %v425_v57, %v413_v55  ;;  %v427_v58 = vsel %vm76_vm5, %v421_v46, %v425_v57  ;;  %v408_v55 = vsel %vm401_vm10, %v2708_v8, %v2694_v5  ;;  %v379_v5 = vsel %vm63_vm6, %v2716_v10, %v2718_v11 }
 0x285   :  { %v388_v59 = vpop.permute.xlu1 %387  ;;  %738 = vmatprep.subr.mxu0 %v428_v56  ;;  %825 = vmatprep.subr.mxu1 %v433_v35  ;;  %v381_v57 = vsel %vm63_vm6, %v2710_v9, %v2716_v10  ;;  %v383_v33 = vsel %vm63_vm6, %v2724_v12, %v2710_v9  ;;  %v377_v35 = vsel %vm63_vm6, %v2718_v11, %v2724_v12 }
 0x286   :  { %739 = vmatpush1.msra.mxu0 %v430_v39  ;;  %826 = vmatpush1.msra.mxu1 %v427_v58  ;;  %v355_v9 = vsel %vm50_vm7, %v2732_v15, %v2734_v16 }
 0x287   :  { %827 = vmatprep.subr.mxu1 %v432_v32  ;;  %v392_v45 = vpop.permute.xlu0 %391 }
 0x288   :  { %828 = vmatpush1.msra.mxu1 %v426_v4  ;;  %v407_v51 = vsel %vm401_vm10, %v388_v59, %v392_v45  ;;  %v359_v4 = vsel %vm50_vm7, %v2740_v17, %v2726_v14 }
 0x289   :  { %v396_v53 = vpop.permute.xlu1 %395 }
 0x28a   :  { %v405_v61 = vsel %vm401_vm10, %v392_v45, %v396_v53  ;;  %v357_v45 = vsel %vm50_vm7, %v2726_v14, %v2732_v15 }
 0x28b   :  { %740 = vmatprep.subr.mxu0 %v405_v61  ;;  %v400_v36 = vpop.permute.xlu0 %399  ;;  %v353_v61 = vsel %vm50_vm7, %v2734_v16, %v2740_v17  ;;  %v696_v17 = vsel %vm695_vm11, %v2750_v20, %v2756_v21 }
 0x28c   :  { %741 = vmatpush1.msra.mxu0 %v407_v51  ;;  %v409_v62 = vsel %vm401_vm10, %v400_v36, %v388_v59  ;;  %v403_v63 = vsel %vm401_vm10, %v396_v53, %v400_v36 }
 0x28d   :  { %v364_v43 = vpop.permute.xlu1 %363  ;;  %742 = vmatprep.subr.mxu0 %v404_v60  ;;  %829 = vmatprep.subr.mxu1 %v409_v62 }
 0x28e   :  { %743 = vmatpush1.msra.mxu0 %v406_v54  ;;  %830 = vmatpush1.msra.mxu1 %v403_v63  ;;  %v675_v63 = vsel %vm670_vm12, %v2758_v2, %v2764_v1 }
 0x28f   :  { %831 = vmatprep.subr.mxu1 %v408_v55  ;;  %v368_v42 = vpop.permute.xlu0 %367  ;;  %v671_v55 = vsel %vm670_vm12, %v2766_v3, %v2772_v0 }
 0x290   :  { %832 = vmatpush1.msra.mxu1 %v402_v38  ;;  %v382_v46 = vsel %vm63_vm6, %v364_v43, %v368_v42 }
 0x291   :  { %v372_v40 = vpop.permute.xlu1 %371 }
 0x292   :  { %v380_v48 = vsel %vm63_vm6, %v368_v42, %v372_v40 }
 0x293   :  { %744 = vmatprep.subr.mxu0 %v380_v48  ;;  %v376_v6 = vpop.permute.xlu0 %375 }
 0x294   :  { %745 = vmatpush1.msra.mxu0 %v382_v46  ;;  %v384_v49 = vsel %vm63_vm6, %v376_v6, %v364_v43  ;;  %v378_v7 = vsel %vm63_vm6, %v372_v40, %v376_v6  ;;  %v677_v43 = vsel %vm670_vm12, %v2772_v0, %v2758_v2  ;;  %v648_v2 = vsel %vm645_vm13, %v2780_v23, %v2782_v25 }
 0x295   :  { %v340_v8 = vpop.permute.xlu1 %339  ;;  %746 = vmatprep.subr.mxu0 %v379_v5  ;;  %833 = vmatprep.subr.mxu1 %v384_v49  ;;  %v650_v6 = vsel %vm645_vm13, %v2774_v22, %v2780_v23  ;;  %v652_v46 = vsel %vm645_vm13, %v2788_v26, %v2774_v22  ;;  %v646_v49 = vsel %vm645_vm13, %v2782_v25, %v2788_v26 }
 0x296   :  { %747 = vmatpush1.msra.mxu0 %v381_v57  ;;  %834 = vmatpush1.msra.mxu1 %v378_v7  ;;  %v623_v22 = vsel %vm620_vm14, %v2796_v31, %v2798_v34 }
 0x297   :  { %835 = vmatprep.subr.mxu1 %v383_v33  ;;  %v344_v56 = vpop.permute.xlu0 %343 }
 0x298   :  { %836 = vmatpush1.msra.mxu1 %v377_v35  ;;  %v358_v39 = vsel %vm50_vm7, %v340_v8, %v344_v56  ;;  %v627_v35 = vsel %vm620_vm14, %v2804_v37, %v2790_v28 }
 0x299   :  { %v348_v58 = vpop.permute.xlu1 %347 }
 0x29a   :  { %v356_v59 = vsel %vm50_vm7, %v344_v56, %v348_v58  ;;  %v625_v56 = vsel %vm620_vm14, %v2790_v28, %v2796_v31  ;;  %v5392_v28 = vld [vmem:[#allocation7_spill] sm:$0xff] }
 0x29b   :  { %748 = vmatprep.subr.mxu0 %v356_v59  ;;  %v352_v10 = vpop.permute.xlu0 %351  ;;  %v621_v59 = vsel %vm620_vm14, %v2798_v34, %v2804_v37 }
 0x29c   :  { %749 = vmatpush1.msra.mxu0 %v358_v39  ;;  %v360_v32 = vsel %vm50_vm7, %v352_v10, %v340_v8  ;;  %v354_v11 = vsel %vm50_vm7, %v348_v58, %v352_v10 }
 0x29d   :  { %v682_v12 = vpop.permute.xlu1 %681  ;;  %750 = vmatprep.subr.mxu0 %v355_v9  ;;  %837 = vmatprep.subr.mxu1 %v360_v32  ;;  %v598_v32 = vsel %vm595_vm15, %v5392_v28, %v2814_v41 }
 0x29e   :  { %751 = vmatpush1.msra.mxu0 %v357_v45  ;;  %838 = vmatpush1.msra.mxu1 %v354_v11 }
 0x29f   :  { %752 = vmatprep.subr.mxu0 %v2636_v47  ;;  %839 = vmatprep.subr.mxu1 %v359_v4  ;;  %v686_v53 = vpop.permute.xlu0 %685  ;;  %v5394_v4 = vld [vmem:[#allocation8_spill] sm:$0xff] }
 0x2a0   :  { %753 = vmatpush1.msra.mxu0 %v2630_v44  ;;  %840 = vmatpush1.msra.mxu1 %v353_v61  ;;  %v701_v44 = vsel %vm695_vm11, %v682_v12, %v686_v53 }
 0x2a1   :  { %v690_v15 = vpop.permute.xlu1 %689  ;;  %754 = vmatprep.subr.mxu0 %v2494_v27  ;;  %841 = vmatprep.subr.mxu1 %v2648_v52 }
 0x2a2   :  { %755 = vmatpush1.msra.mxu0 %v2492_v24  ;;  %842 = vmatpush1.msra.mxu1 %v2642_v50  ;;  %v699_v47 = vsel %vm695_vm11, %v686_v53, %v690_v15  ;;  %v698_v24 = vsel %vm695_vm11, %v2748_v19, %v2750_v20 }
 0x2a3   :  { %756 = vmatprep.subr.mxu0 %v699_v47  ;;  %843 = vmatprep.subr.mxu1 %v2502_v30  ;;  %v694_v14 = vpop.permute.xlu0 %693  ;;  %v700_v30 = vsel %vm695_vm11, %v2742_v18, %v2748_v19 }
 0x2a4   :  { %757 = vmatpush2.msra.mxu0 %v701_v44  ;;  %844 = vmatpush1.msra.mxu1 %v2498_v29  ;;  %v703_v27 = vsel %vm695_vm11, %v694_v14, %v682_v12  ;;  %v697_v50 = vsel %vm695_vm11, %v690_v15, %v694_v14  ;;  %v702_v29 = vsel %vm695_vm11, %v2756_v21, %v2742_v18  ;;  %v5393_v12 = vld [vmem:[#allocation6_spill] sm:$0xff] }
 0x2a5   :  { %v657_v52 = vpop.permute.xlu1 %656  ;;  %758 = vmatprep.subr.mxu0 %v698_v24  ;;  %845 = vmatprep.subr.mxu1 %v703_v27  ;;  %v673_v18 = vsel %vm670_vm12, %v2764_v1, %v2766_v3  ;;  %v600_v45 = vsel %vm595_vm15, %v5393_v12, %v5392_v28  ;;  %v602_v53 = vsel %vm595_vm15, %v5394_v4, %v5393_v12  ;;  %v5395_v27 = vld [vmem:[#allocation11_spill] sm:$0xff]  ;;  %v331_v28 = vld [vmem:[%s5226_s3 + $0x30] sm:$0xff] }
 0x2a6   :  { %759 = vmatpush2.msra.mxu0 %v700_v30  ;;  %846 = vmatpush2.msra.mxu1 %v697_v50  ;;  %v596_v15 = vsel %vm595_vm15, %v2814_v41, %v5394_v4  ;;  %v5396_v50 = vld [vmem:[#allocation10_spill] sm:$0xff] }
 0x2a7   :  { %847 = vmatprep.subr.mxu1 %v702_v29  ;;  %v661_v16 = vpop.permute.xlu0 %660 }
 0x2a8   :  { %848 = vmatpush2.msra.mxu1 %v696_v17  ;;  %v676_v60 = vsel %vm670_vm12, %v657_v52, %v661_v16 }
 0x2a9   :  { %v665_v36 = vpop.permute.xlu1 %664 }
 0x2aa   :  { %v674_v19 = vsel %vm670_vm12, %v661_v16, %v665_v36  ;;  %v5397_v16 = vld [vmem:[#allocation9_spill] sm:$0xff] }
 0x2ab   :  { %760 = vmatprep.subr.mxu0 %v674_v19  ;;  %v669_v51 = vpop.permute.xlu0 %668  ;;  %v575_v17 = vsel %vm141_vm0, %v5397_v16, %v5396_v50 }
 0x2ac   :  { %761 = vmatpush2.msra.mxu0 %v676_v60  ;;  %v678_v20 = vsel %vm670_vm12, %v669_v51, %v657_v52  ;;  %v672_v21 = vsel %vm670_vm12, %v665_v36, %v669_v51  ;;  %v573_v52 = vsel %vm141_vm0, %v5396_v50, %v5395_v27  ;;  %v5398_v36 = vld [vmem:[#allocation12_spill] sm:$0xff] }
 0x2ad   :  { %v632_v62 = vpop.permute.xlu1 %631  ;;  %762 = vmatprep.subr.mxu0 %v673_v18  ;;  %849 = vmatprep.subr.mxu1 %v678_v20  ;;  %v577_v19 = vsel %vm141_vm0, %v5398_v36, %v5397_v16  ;;  %v571_v60 = vsel %vm141_vm0, %v5395_v27, %v5398_v36 }
 0x2ae   :  { %763 = vmatpush2.msra.mxu0 %v675_v63  ;;  %850 = vmatpush2.msra.mxu1 %v672_v21  ;;  %v5399_v63 = vld [vmem:[#allocation15_spill] sm:$0xff] }
 0x2af   :  { %851 = vmatprep.subr.mxu1 %v677_v43  ;;  %v636_v54 = vpop.permute.xlu0 %635  ;;  %v5400_v43 = vld [vmem:[#allocation14_spill] sm:$0xff] }
 0x2b0   :  { %852 = vmatpush2.msra.mxu1 %v671_v55  ;;  %v651_v40 = vsel %vm645_vm13, %v632_v62, %v636_v54 }
 0x2b1   :  { %v640_v42 = vpop.permute.xlu1 %639 }
 0x2b2   :  { %v649_v1 = vsel %vm645_vm13, %v636_v54, %v640_v42  ;;  %v549_v54 = vsel %vm128_vm1, %v5400_v43, %v5399_v63 }
 0x2b3   :  { %764 = vmatprep.subr.mxu0 %v649_v1  ;;  %v644_v38 = vpop.permute.xlu0 %643 }
 0x2b4   :  { %765 = vmatpush2.msra.mxu0 %v651_v40  ;;  %v653_v3 = vsel %vm645_vm13, %v644_v38, %v632_v62  ;;  %v647_v0 = vsel %vm645_vm13, %v640_v42, %v644_v38  ;;  %v5401_v38 = vld [vmem:[#allocation13_spill] sm:$0xff] }
 0x2b5   :  { %v607_v48 = vpop.permute.xlu1 %606  ;;  %766 = vmatprep.subr.mxu0 %v648_v2  ;;  %853 = vmatprep.subr.mxu1 %v653_v3  ;;  %v551_v40 = vsel %vm128_vm1, %v5401_v38, %v5400_v43  ;;  %v5402_v2 = vld [vmem:[#allocation16_spill] sm:$0xff] }
 0x2b6   :  { %767 = vmatpush2.msra.mxu0 %v650_v6  ;;  %854 = vmatpush2.msra.mxu1 %v647_v0  ;;  %v553_v3 = vsel %vm128_vm1, %v5402_v2, %v5401_v38 }
 0x2b7   :  { %855 = vmatprep.subr.mxu1 %v652_v46  ;;  %v611_v5 = vpop.permute.xlu0 %610 }
 0x2b8   :  { %856 = vmatpush2.msra.mxu1 %v646_v49  ;;  %v626_v57 = vsel %vm620_vm14, %v607_v48, %v611_v5 }
 0x2b9   :  { %v615_v7 = vpop.permute.xlu1 %614 }
 0x2ba   :  { %v624_v23 = vsel %vm620_vm14, %v611_v5, %v615_v7 }
 0x2bb   :  { %768 = vmatprep.subr.mxu0 %v624_v23  ;;  %v619_v8 = vpop.permute.xlu0 %618  ;;  %v5404_v23 = vld [vmem:[#allocation18_spill] sm:$0xff] }
 0x2bc   :  { %769 = vmatpush2.msra.mxu0 %v626_v57  ;;  %v628_v25 = vsel %vm620_vm14, %v619_v8, %v607_v48  ;;  %v622_v26 = vsel %vm620_vm14, %v615_v7, %v619_v8  ;;  %v547_v48 = vsel %vm128_vm1, %v5399_v63, %v5402_v2  ;;  %v5403_v7 = vld [vmem:[#allocation19_spill] sm:$0xff] }
 0x2bd   :  { %v582_v33 = vpop.permute.xlu1 %581  ;;  %770 = vmatprep.subr.mxu0 %v623_v22  ;;  %857 = vmatprep.subr.mxu1 %v628_v25  ;;  %v525_v8 = vsel %vm115_vm2, %v5404_v23, %v5403_v7  ;;  %v325_v25 = vld [vmem:[%s5226_s3] sm:$0xff] }
 0x2be   :  { %771 = vmatpush2.msra.mxu0 %v625_v56  ;;  %858 = vmatpush2.msra.mxu1 %v622_v26  ;;  %v5405_v26 = vld [vmem:[#allocation17_spill] sm:$0xff] }
 0x2bf   :  { %859 = vmatprep.subr.mxu1 %v627_v35  ;;  %v586_v58 = vpop.permute.xlu0 %585  ;;  %v328_v56 = vld [vmem:[%s5226_s3 + $0x18] sm:$0xff]  ;;  %v5406_v35 = vld [vmem:[#allocation20_spill] sm:$0xff] }
 0x2c0   :  { %860 = vmatpush2.msra.mxu1 %v621_v59  ;;  %v601_v9 = vsel %vm595_vm15, %v582_v33, %v586_v58  ;;  %v523_v59 = vsel %vm115_vm2, %v5403_v7, %v5406_v35 }
 0x2c1   :  { %v590_v10 = vpop.permute.xlu1 %589 }
 0x2c2   :  { %v599_v31 = vsel %vm595_vm15, %v586_v58, %v590_v10  ;;  %v529_v58 = vsel %vm115_vm2, %v5406_v35, %v5405_v26 }
 0x2c3   :  { %772 = vmatprep.subr.mxu0 %v599_v31  ;;  %v594_v39 = vpop.permute.xlu0 %593  ;;  %v330_v31 = vld [vmem:[%s5226_s3 + $0x28] sm:$0xff] }
 0x2c4   :  { %773 = vmatpush2.msra.mxu0 %v601_v9  ;;  %v603_v34 = vsel %vm595_vm15, %v594_v39, %v582_v33  ;;  %v597_v37 = vsel %vm595_vm15, %v590_v10, %v594_v39  ;;  %v527_v33 = vsel %vm115_vm2, %v5405_v26, %v5404_v23  ;;  %v327_v10 = vld [vmem:[%s5226_s3 + $0x10] sm:$0xff]  ;;  %v329_v39 = vld [vmem:[%s5226_s3 + $0x20] sm:$0xff]  ;;  %v332_v9 = vld [vmem:[%s5226_s3 + $0x38] sm:$0xff] }
 0x2c5   :  { %v558_v11 = vpop.permute.xlu1 %557  ;;  %774 = vmatprep.subr.mxu0 %v598_v32  ;;  %861 = vmatprep.subr.mxu1 %v603_v34  ;;  %v5407_v34 = vld [vmem:[#allocation5_spill] sm:$0xff] }
 0x2c6   :  { %775 = vmatpush2.msra.mxu0 %v600_v45  ;;  %862 = vmatpush2.msra.mxu1 %v597_v37 }
 0x2c7   :  { %863 = vmatprep.subr.mxu1 %v602_v53  ;;  %v562_v61 = vpop.permute.xlu0 %561 }
 0x2c8   :  { %864 = vmatpush2.msra.mxu1 %v596_v15  ;;  %v576_v24 = vsel %vm141_vm0, %v558_v11, %v562_v61 }
 0x2c9   :  { %v566_v47 = vpop.permute.xlu1 %565 }
 0x2ca   :  { %v574_v14 = vsel %vm141_vm0, %v562_v61, %v566_v47 }
 0x2cb   :  { %776 = vmatprep.subr.mxu0 %v574_v14  ;;  %v570_v44 = vpop.permute.xlu0 %569 }
 0x2cc   :  { %777 = vmatpush2.msra.mxu0 %v576_v24  ;;  %v578_v30 = vsel %vm141_vm0, %v570_v44, %v558_v11  ;;  %v572_v41 = vsel %vm141_vm0, %v566_v47, %v570_v44 }
 0x2cd   :  { %v534_v29 = vpop.permute.xlu1 %533  ;;  %778 = vmatprep.subr.mxu0 %v573_v52  ;;  %865 = vmatprep.subr.mxu1 %v578_v30  ;;  %v5408_v52 = vld [vmem:[#allocation4_spill] sm:$0xff] }
 0x2ce   :  { %779 = vmatpush2.msra.mxu0 %v575_v17  ;;  %866 = vmatpush2.msra.mxu1 %v572_v41 }
 0x2cf   :  { %867 = vmatprep.subr.mxu1 %v577_v19  ;;  %v538_v51 = vpop.permute.xlu0 %537 }
 0x2d0   :  { %868 = vmatpush2.msra.mxu1 %v571_v60  ;;  %v552_v62 = vsel %vm128_vm1, %v534_v29, %v538_v51 }
 0x2d1   :  { %v542_v18 = vpop.permute.xlu1 %541 }
 0x2d2   :  { %v550_v20 = vsel %vm128_vm1, %v538_v51, %v542_v18 }
 0x2d3   :  { %780 = vmatprep.subr.mxu0 %v550_v20  ;;  %v546_v21 = vpop.permute.xlu0 %545 }
 0x2d4   :  { %781 = vmatpush2.msra.mxu0 %v552_v62  ;;  %v554_v55 = vsel %vm128_vm1, %v546_v21, %v534_v29  ;;  %v548_v42 = vsel %vm128_vm1, %v542_v18, %v546_v21 }
 0x2d5   :  { %v510_v1 = vpop.permute.xlu1 %509  ;;  %782 = vmatprep.subr.mxu0 %v549_v54  ;;  %869 = vmatprep.subr.mxu1 %v554_v55 }
 0x2d6   :  { %783 = vmatpush2.msra.mxu0 %v551_v40  ;;  %870 = vmatpush2.msra.mxu1 %v548_v42 }
 0x2d7   :  { %871 = vmatprep.subr.mxu1 %v553_v3  ;;  %v514_v0 = vpop.permute.xlu0 %513 }
 0x2d8   :  { %872 = vmatpush2.msra.mxu1 %v547_v48  ;;  %v528_v49 = vsel %vm115_vm2, %v510_v1, %v514_v0 }
 0x2d9   :  { %v518_v6 = vpop.permute.xlu1 %517 }
 0x2da   :  { %v526_v46 = vsel %vm115_vm2, %v514_v0, %v518_v6 }
 0x2db   :  { %784 = vmatprep.subr.mxu0 %v526_v46  ;;  %v522_v5 = vpop.permute.xlu0 %521 }
 0x2dc   :  { %785 = vmatpush2.msra.mxu0 %v528_v49  ;;  %v530_v57 = vsel %vm115_vm2, %v522_v5, %v510_v1  ;;  %v524_v22 = vsel %vm115_vm2, %v518_v6, %v522_v5 }
 0x2dd   :  { %786 = vmatprep.subr.mxu0 %v525_v8  ;;  %873 = vmatprep.subr.mxu1 %v530_v57 }
 0x2de   :  { %787 = vmatpush2.msra.mxu0 %v527_v33  ;;  %874 = vmatpush2.msra.mxu1 %v524_v22 }
 0x2df   :  { %789 = vmatmul.mubr.f32.vlgmr.msra.gmra.mxu0 %v325_v25  ;;  %875 = vmatprep.subr.mxu1 %v529_v58 }
 0x2e0   :  { %876 = vmatpush2.msra.mxu1 %v523_v59  ;;  %794 = vmatprep.mubr.f32.mxu0 %v328_v56 }
 0x2e1   :  { %878 = vmatmul.mubr.f32.vlgmr.msra.gmra.mxu1 %v325_v25 }
 0x2e2   :  { %883 = vmatprep.mubr.f32.mxu1 %v328_v56 }
 0x2e3   :  { %795 = vmatmul.mubr.f32.gmra.mxu0 %v327_v10 }
 0x2e4   :  { %800 = vmatprep.mubr.f32.mxu0 %v330_v31 }
 0x2e5   :  { %884 = vmatmul.mubr.f32.gmra.mxu1 %v327_v10 }
 0x2e6   :  { %889 = vmatprep.mubr.f32.mxu1 %v330_v31 }
 0x2e7   :  { %801 = vmatmul.mubr.f32.gmra.mxu0 %v329_v39 }
 0x2e8   :  { %806 = vmatprep.mubr.f32.mxu0 %v332_v9 }
 0x2e9   :  { %890 = vmatmul.mubr.f32.gmra.mxu1 %v329_v39 }
 0x2ea   :  { %895 = vmatprep.mubr.f32.mxu1 %v332_v9 }
 0x2eb   :  { %807 = vmatmul.mubr.f32.gmra.mxu0 %v331_v28 }
 0x2ed   :  { %896 = vmatmul.mubr.f32.gmra.mxu1 %v331_v28 }
 0x39f   :  { %v790_v32 = vpop.f32.mrf.mxu0 }
 0x3a0   :  { %v791_v37 = vadd.f32 %v790_v32, %v5407_v34 }
 0x3a1   :  { %v792_v11 = vpop.f32.mrf.mxu0  ;;  %v879_v12 = vpop.f32.mrf.mxu1 }
 0x3a2   :  { %v3276_v45 = vmax.f32 %v791_v37, 0.0  ;;  %v793_v4 = vadd.f32 %v792_v11, %v5407_v34  ;;  %v880_v53 = vadd.f32 %v879_v12, %v5407_v34 }
 0x3a3   :  { %v881_v61 = vpop.f32.mrf.mxu1  ;;  %v796_v24 = vpop.f32.mrf.mxu0 }
 0x3a4   :  { %v3280_v15 = vmax.f32 %v793_v4, 0.0  ;;  %v882_v47 = vadd.f32 %v881_v61, %v5407_v34  ;;  %1403 = vrot.lane.b32.xlu1 %v3276_v45, %s2247_s29  ;;  %v3285_v14 = vmax.f32 %v880_v53, 0.0  ;;  %v797_v29 = vadd.f32 %v796_v24, %v5408_v52  ;;  %v5440_v24 = vld [vmem:[#allocation3_spill] sm:$0xff] }
 0x3a5   :  { %v798_v27 = vpop.f32.mrf.mxu0  ;;  %v885_v50 = vpop.f32.mrf.mxu1 }
 0x3a6   :  { %1411 = vrot.lane.b32.xlu0 %v3280_v15, %s2247_s29  ;;  %v3289_v44 = vmax.f32 %v882_v47, 0.0  ;;  %v799_v30 = vadd.f32 %v798_v27, %v5408_v52  ;;  %v3394_v36 = vmax.f32 %v797_v29, 0.0  ;;  %v886_v19 = vadd.f32 %v885_v50, %v5408_v52 }
 0x3a7   :  { %v887_v41 = vpop.f32.mrf.mxu1  ;;  %v802_v11 = vpop.f32.mrf.mxu0 }
 0x3a8   :  { %1419 = vrot.lane.b32.xlu1 %v3285_v14, %s2247_s29  ;;  %v3389_v16 = vmax.f32 %v799_v30, 0.0  ;;  %v888_v17 = vadd.f32 %v887_v41, %v5408_v52  ;;  %v3403_v60 = vmax.f32 %v886_v19, 0.0  ;;  %v803_v30 = vadd.f32 %v802_v11, %v5440_v24 }
 0x3a9   :  { %v804_v53 = vpop.f32.mrf.mxu0  ;;  %v891_v61 = vpop.f32.mrf.mxu1 }
 0x3aa   :  { %1427 = vrot.lane.b32.xlu0 %v3289_v44, %s2247_s29  ;;  %v3399_v51 = vmax.f32 %v888_v17, 0.0  ;;  %v805_v27 = vadd.f32 %v804_v53, %v5440_v24  ;;  %v3602_v53 = vmax.f32 %v803_v30, 0.0 }
 0x3ab   :  { %v893_v52 = vpop.f32.mrf.mxu1 }
 0x3ac   :  { %1355 = vrot.lane.b32.xlu1 %v3276_v45, %s2231_s13  ;;  %v3595_v29 = vmax.f32 %v805_v27, 0.0  ;;  %v894_v17 = vadd.f32 %v893_v52, %v5440_v24 }
 0x3ae   :  { %1363 = vrot.lane.b32.xlu0 %v3280_v15, %s2231_s13  ;;  %v3609_v11 = vmax.f32 %v894_v17, 0.0 }
 0x3b0   :  { %1371 = vrot.lane.b32.xlu1 %v3285_v14, %s2231_s13  ;;  %5445 = vst [vmem:[#allocation38_spill] sm:$0xff] %v3609_v11 }
 0x3b2   :  { %1379 = vrot.lane.b32.xlu0 %v3289_v44, %s2231_s13 }
 0x3b4   :  { %1307 = vrot.lane.b32.xlu1 %v3276_v45, %s2232_s18 }
 0x3b6   :  { %1315 = vrot.lane.b32.xlu0 %v3280_v15, %s2232_s18 }
 0x3b8   :  { %1323 = vrot.lane.b32.xlu1 %v3285_v14, %s2232_s18 }
 0x3ba   :  { %1331 = vrot.lane.b32.xlu0 %v3289_v44, %s2232_s18 }
 0x3bc   :  { %1259 = vrot.lane.b32.xlu1 %v3276_v45, %s2233_s0 }
 0x3be   :  { %1267 = vrot.lane.b32.xlu0 %v3280_v15, %s2233_s0 }
 0x3c0   :  { %1275 = vrot.lane.b32.xlu1 %v3285_v14, %s2233_s0 }
 0x3c2   :  { %1283 = vrot.lane.b32.xlu0 %v3289_v44, %s2233_s0 }
 0x3c4   :  { %1595 = vrot.lane.b32.xlu1 %v3276_v45, %s2243_s25 }
 0x3c6   :  { %1603 = vrot.lane.b32.xlu0 %v3280_v15, %s2243_s25 }
 0x3c8   :  { %1611 = vrot.lane.b32.xlu1 %v3285_v14, %s2243_s25 }
 0x3ca   :  { %1619 = vrot.lane.b32.xlu0 %v3289_v44, %s2243_s25 }
 0x3cc   :  { %1547 = vrot.lane.b32.xlu1 %v3276_v45, %s2244_s26 }
 0x3ce   :  { %1555 = vrot.lane.b32.xlu0 %v3280_v15, %s2244_s26 }
 0x3d0   :  { %1563 = vrot.lane.b32.xlu1 %v3285_v14, %s2244_s26 }
 0x3d2   :  { %1571 = vrot.lane.b32.xlu0 %v3289_v44, %s2244_s26 }
 0x3d4   :  { %1499 = vrot.lane.b32.xlu1 %v3276_v45, %s2245_s27 }
 0x3d6   :  { %1507 = vrot.lane.b32.xlu0 %v3280_v15, %s2245_s27 }
 0x3d8   :  { %1515 = vrot.lane.b32.xlu1 %v3285_v14, %s2245_s27 }
 0x3da   :  { %1523 = vrot.lane.b32.xlu0 %v3289_v44, %s2245_s27 }
 0x3dc   :  { %1451 = vrot.lane.b32.xlu1 %v3276_v45, %s2246_s28 }
 0x3de   :  { %1459 = vrot.lane.b32.xlu0 %v3280_v15, %s2246_s28 }
 0x3e0   :  { %1467 = vrot.lane.b32.xlu1 %v3285_v14, %s2246_s28 }
 0x3e2   :  { %1475 = vrot.lane.b32.xlu0 %v3289_v44, %s2246_s28 }
 0x3e4   :  { %1019 = vrot.lane.b32.xlu1 %v3276_v45, %s2242_s1 }
 0x3e6   :  { %1027 = vrot.lane.b32.xlu0 %v3280_v15, %s2242_s1 }
 0x3e8   :  { %1035 = vrot.lane.b32.xlu1 %v3285_v14, %s2242_s1 }
 0x3ea   :  { %1043 = vrot.lane.b32.xlu0 %v3289_v44, %s2242_s1 }
 0x3ec   :  { %971 = vrot.lane.b32.xlu1 %v3276_v45, %s2237_s22 }
 0x3ee   :  { %979 = vrot.lane.b32.xlu0 %v3280_v15, %s2237_s22 }
 0x3f0   :  { %987 = vrot.lane.b32.xlu1 %v3285_v14, %s2237_s22 }
 0x3f2   :  { %995 = vrot.lane.b32.xlu0 %v3289_v44, %s2237_s22 }
 0x3f4   :  { %923 = vrot.lane.b32.xlu1 %v3276_v45, %s2240_s23 }
 0x3f6   :  { %931 = vrot.lane.b32.xlu0 %v3280_v15, %s2240_s23 }
 0x3f8   :  { %939 = vrot.lane.b32.xlu1 %v3285_v14, %s2240_s23 }
 0x3fa   :  { %947 = vrot.lane.b32.xlu0 %v3289_v44, %s2240_s23 }
 0x3fc   :  { %1211 = vrot.lane.b32.xlu1 %v3276_v45, %s2241_s24 }
 0x3fe   :  { %1219 = vrot.lane.b32.xlu0 %v3280_v15, %s2241_s24 }
 0x400   :  { %1227 = vrot.lane.b32.xlu1 %v3285_v14, %s2241_s24 }
 0x402   :  { %1235 = vrot.lane.b32.xlu0 %v3289_v44, %s2241_s24 }
 0x404   :  { %1163 = vrot.lane.b32.xlu1 %v3276_v45, %s2234_s19 }
 0x406   :  { %1171 = vrot.lane.b32.xlu0 %v3280_v15, %s2234_s19 }
 0x408   :  { %1179 = vrot.lane.b32.xlu1 %v3285_v14, %s2234_s19 }
 0x40a   :  { %1413 = vrot.lane.b32.xlu0 %v3389_v16, %s2247_s29 }
 0x40c   :  { %1405 = vrot.lane.b32.xlu1 %v3394_v36, %s2247_s29 }
 0x40e   :  { %1429 = vrot.lane.b32.xlu0 %v3399_v51, %s2247_s29 }
 0x410   :  { %1421 = vrot.lane.b32.xlu1 %v3403_v60, %s2247_s29 }
 0x412   :  { %1365 = vrot.lane.b32.xlu0 %v3389_v16, %s2231_s13 }
 0x414   :  { %1357 = vrot.lane.b32.xlu1 %v3394_v36, %s2231_s13 }
 0x416   :  { %v3413_v18 = vpop.permute.xlu1 %1403  ;;  %1381 = vrot.lane.b32.xlu0 %v3399_v51, %s2231_s13 }
 0x418   :  { %1373 = vrot.lane.b32.xlu1 %v3403_v60, %s2231_s13  ;;  %v3419_v20 = vpop.permute.xlu0 %1411 }
 0x41a   :  { %1317 = vrot.lane.b32.xlu0 %v3389_v16, %s2232_s18  ;;  %v3423_v21 = vpop.permute.xlu1 %1419 }
 0x41c   :  { %1309 = vrot.lane.b32.xlu1 %v3394_v36, %s2232_s18  ;;  %v3427_v62 = vpop.permute.xlu0 %1427 }
 0x41e   :  { %1333 = vrot.lane.b32.xlu0 %v3399_v51, %s2232_s18  ;;  %v3431_v63 = vpop.permute.xlu1 %1355 }
 0x420   :  { %1325 = vrot.lane.b32.xlu1 %v3403_v60, %s2232_s18  ;;  %v3435_v43 = vpop.permute.xlu0 %1363 }
 0x422   :  { %1269 = vrot.lane.b32.xlu0 %v3389_v16, %s2233_s0  ;;  %v3439_v54 = vpop.permute.xlu1 %1371 }
 0x424   :  { %1261 = vrot.lane.b32.xlu1 %v3394_v36, %s2233_s0  ;;  %v3443_v55 = vpop.permute.xlu0 %1379 }
 0x426   :  { %1285 = vrot.lane.b32.xlu0 %v3399_v51, %s2233_s0  ;;  %v3447_v42 = vpop.permute.xlu1 %1307 }
 0x428   :  { %1277 = vrot.lane.b32.xlu1 %v3403_v60, %s2233_s0  ;;  %v3451_v1 = vpop.permute.xlu0 %1315 }
 0x42a   :  { %1605 = vrot.lane.b32.xlu0 %v3389_v16, %s2243_s25  ;;  %v3455_v38 = vpop.permute.xlu1 %1323 }
 0x42c   :  { %1597 = vrot.lane.b32.xlu1 %v3394_v36, %s2243_s25  ;;  %v3459_v40 = vpop.permute.xlu0 %1331 }
 0x42e   :  { %1621 = vrot.lane.b32.xlu0 %v3399_v51, %s2243_s25  ;;  %v3463_v2 = vpop.permute.xlu1 %1259 }
 0x42f   :  { %5409 = vst [vmem:[#allocation7_spill] sm:$0xff] %v3463_v2 }
 0x430   :  { %1613 = vrot.lane.b32.xlu1 %v3403_v60, %s2243_s25  ;;  %v3467_v3 = vpop.permute.xlu0 %1267 }
 0x431   :  { %5410 = vst [vmem:[#allocation6_spill] sm:$0xff] %v3467_v3 }
 0x432   :  { %1557 = vrot.lane.b32.xlu0 %v3389_v16, %s2244_s26  ;;  %v3471_v0 = vpop.permute.xlu1 %1275 }
 0x433   :  { %5411 = vst [vmem:[#allocation8_spill] sm:$0xff] %v3471_v0 }
 0x434   :  { %1549 = vrot.lane.b32.xlu1 %v3394_v36, %s2244_s26  ;;  %v3475_v48 = vpop.permute.xlu0 %1283 }
 0x435   :  { %5412 = vst [vmem:[#allocation11_spill] sm:$0xff] %v3475_v48 }
 0x436   :  { %1573 = vrot.lane.b32.xlu0 %v3399_v51, %s2244_s26  ;;  %v3479_v6 = vpop.permute.xlu1 %1595 }
 0x437   :  { %5413 = vst [vmem:[#allocation10_spill] sm:$0xff] %v3479_v6 }
 0x438   :  { %1565 = vrot.lane.b32.xlu1 %v3403_v60, %s2244_s26  ;;  %v3483_v46 = vpop.permute.xlu0 %1603 }
 0x439   :  { %5414 = vst [vmem:[#allocation9_spill] sm:$0xff] %v3483_v46 }
 0x43a   :  { %1509 = vrot.lane.b32.xlu0 %v3389_v16, %s2245_s27  ;;  %v3487_v5 = vpop.permute.xlu1 %1611 }
 0x43b   :  { %5415 = vst [vmem:[#allocation12_spill] sm:$0xff] %v3487_v5 }
 0x43c   :  { %1501 = vrot.lane.b32.xlu1 %v3394_v36, %s2245_s27  ;;  %v3491_v49 = vpop.permute.xlu0 %1619 }
 0x43d   :  { %5416 = vst [vmem:[#allocation15_spill] sm:$0xff] %v3491_v49 }
 0x43e   :  { %1525 = vrot.lane.b32.xlu0 %v3399_v51, %s2245_s27  ;;  %v3495_v7 = vpop.permute.xlu1 %1547 }
 0x43f   :  { %5417 = vst [vmem:[#allocation14_spill] sm:$0xff] %v3495_v7 }
 0x440   :  { %1517 = vrot.lane.b32.xlu1 %v3403_v60, %s2245_s27  ;;  %v3499_v23 = vpop.permute.xlu0 %1555 }
 0x441   :  { %5418 = vst [vmem:[#allocation13_spill] sm:$0xff] %v3499_v23 }
 0x442   :  { %1461 = vrot.lane.b32.xlu0 %v3389_v16, %s2246_s28  ;;  %v3503_v8 = vpop.permute.xlu1 %1563 }
 0x443   :  { %5419 = vst [vmem:[#allocation16_spill] sm:$0xff] %v3503_v8 }
 0x444   :  { %1453 = vrot.lane.b32.xlu1 %v3394_v36, %s2246_s28  ;;  %v3507_v57 = vpop.permute.xlu0 %1571 }
 0x445   :  { %5420 = vst [vmem:[#allocation19_spill] sm:$0xff] %v3507_v57  ;;  %v897_v57 = vpop.f32.mrf.mxu1 }
 0x446   :  { %1477 = vrot.lane.b32.xlu0 %v3399_v51, %s2246_s28  ;;  %v3511_v22 = vpop.permute.xlu1 %1499 }
 0x447   :  { %5421 = vst [vmem:[#allocation18_spill] sm:$0xff] %v3511_v22 }
 0x448   :  { %1469 = vrot.lane.b32.xlu1 %v3403_v60, %s2246_s28  ;;  %v3515_v25 = vpop.permute.xlu0 %1507 }
 0x449   :  { %5422 = vst [vmem:[#allocation17_spill] sm:$0xff] %v3515_v25 }
 0x44a   :  { %1029 = vrot.lane.b32.xlu0 %v3389_v16, %s2242_s1  ;;  %v3519_v26 = vpop.permute.xlu1 %1515 }
 0x44b   :  { %5423 = vst [vmem:[#allocation20_spill] sm:$0xff] %v3519_v26 }
 0x44c   :  { %1021 = vrot.lane.b32.xlu1 %v3394_v36, %s2242_s1  ;;  %v3523_v33 = vpop.permute.xlu0 %1523 }
 0x44d   :  { %5424 = vst [vmem:[#allocation5_spill] sm:$0xff] %v3523_v33 }
 0x44e   :  { %1045 = vrot.lane.b32.xlu0 %v3399_v51, %s2242_s1  ;;  %v3527_v56 = vpop.permute.xlu1 %1451 }
 0x44f   :  { %5425 = vst [vmem:[#allocation4_spill] sm:$0xff] %v3527_v56 }
 0x450   :  { %1037 = vrot.lane.b32.xlu1 %v3403_v60, %s2242_s1  ;;  %v3531_v35 = vpop.permute.xlu0 %1459 }
 0x451   :  { %5426 = vst [vmem:[#allocation21_spill] sm:$0xff] %v3531_v35 }
 0x452   :  { %981 = vrot.lane.b32.xlu0 %v3389_v16, %s2237_s22  ;;  %v3535_v58 = vpop.permute.xlu1 %1467 }
 0x453   :  { %5427 = vst [vmem:[#allocation22_spill] sm:$0xff] %v3535_v58 }
 0x454   :  { %973 = vrot.lane.b32.xlu1 %v3394_v36, %s2237_s22  ;;  %v3539_v59 = vpop.permute.xlu0 %1475 }
 0x455   :  { %5428 = vst [vmem:[#allocation23_spill] sm:$0xff] %v3539_v59 }
 0x456   :  { %997 = vrot.lane.b32.xlu0 %v3399_v51, %s2237_s22  ;;  %v3543_v10 = vpop.permute.xlu1 %1019 }
 0x457   :  { %5429 = vst [vmem:[#allocation24_spill] sm:$0xff] %v3543_v10 }
 0x458   :  { %989 = vrot.lane.b32.xlu1 %v3403_v60, %s2237_s22  ;;  %v3547_v31 = vpop.permute.xlu0 %1027 }
 0x459   :  { %5430 = vst [vmem:[#allocation25_spill] sm:$0xff] %v3547_v31 }
 0x45a   :  { %933 = vrot.lane.b32.xlu0 %v3389_v16, %s2240_s23  ;;  %v3551_v39 = vpop.permute.xlu1 %1035 }
 0x45b   :  { %5431 = vst [vmem:[#allocation26_spill] sm:$0xff] %v3551_v39 }
 0x45c   :  { %925 = vrot.lane.b32.xlu1 %v3394_v36, %s2240_s23  ;;  %v3555_v9 = vpop.permute.xlu0 %1043 }
 0x45d   :  { %5432 = vst [vmem:[#allocation27_spill] sm:$0xff] %v3555_v9 }
 0x45e   :  { %949 = vrot.lane.b32.xlu0 %v3399_v51, %s2240_s23  ;;  %v3559_v28 = vpop.permute.xlu1 %971 }
 0x45f   :  { %5433 = vst [vmem:[#allocation28_spill] sm:$0xff] %v3559_v28 }
 0x460   :  { %941 = vrot.lane.b32.xlu1 %v3403_v60, %s2240_s23  ;;  %v3563_v32 = vpop.permute.xlu0 %979 }
 0x461   :  { %5434 = vst [vmem:[#allocation29_spill] sm:$0xff] %v3563_v32 }
 0x462   :  { %1221 = vrot.lane.b32.xlu0 %v3389_v16, %s2241_s24  ;;  %v3567_v34 = vpop.permute.xlu1 %987 }
 0x463   :  { %5435 = vst [vmem:[#allocation30_spill] sm:$0xff] %v3567_v34 }
 0x464   :  { %1213 = vrot.lane.b32.xlu1 %v3394_v36, %s2241_s24  ;;  %v3571_v37 = vpop.permute.xlu0 %995 }
 0x465   :  { %5436 = vst [vmem:[#allocation31_spill] sm:$0xff] %v3571_v37 }
 0x466   :  { %1237 = vrot.lane.b32.xlu0 %v3399_v51, %s2241_s24  ;;  %v3575_v12 = vpop.permute.xlu1 %923 }
 0x467   :  { %5437 = vst [vmem:[#allocation32_spill] sm:$0xff] %v3575_v12 }
 0x468   :  { %1229 = vrot.lane.b32.xlu1 %v3403_v60, %s2241_s24  ;;  %v3579_v4 = vpop.permute.xlu0 %931 }
 0x469   :  { %5438 = vst [vmem:[#allocation33_spill] sm:$0xff] %v3579_v4  ;;  %v892_v4 = vadd.f32 %v891_v61, %v5440_v24 }
 0x46a   :  { %v3581_v47 = vpop.permute.xlu1 %939  ;;  %1173 = vrot.lane.b32.xlu0 %v3389_v16, %s2234_s19 }
 0x46b   :  { %5439 = vst [vmem:[#allocation34_spill] sm:$0xff] %v3581_v47  ;;  %v3615_v52 = vmax.f32 %v892_v4, 0.0 }
 0x46c   :  { %1165 = vrot.lane.b32.xlu1 %v3394_v36, %s2234_s19  ;;  %v3588_v50 = vpop.permute.xlu0 %947 }
 0x46d   :  { %5441 = vst [vmem:[#allocation3_spill] sm:$0xff] %v3588_v50  ;;  %5447 = vst [vmem:[#allocation40_spill] sm:$0xff] %v3615_v52 }
 0x46e   :  { %v3591_v41 = vpop.permute.xlu1 %1211  ;;  %1189 = vrot.lane.b32.xlu0 %v3399_v51, %s2234_s19 }
 0x46f   :  { %5442 = vst [vmem:[#allocation35_spill] sm:$0xff] %v3591_v41 }
 0x470   :  { %1181 = vrot.lane.b32.xlu1 %v3403_v60, %s2234_s19  ;;  %v3600_v19 = vpop.permute.xlu0 %1219 }
 0x471   :  { %5443 = vst [vmem:[#allocation36_spill] sm:$0xff] %v3600_v19 }
 0x472   :  { %v3605_v47 = vpop.permute.xlu1 %1227  ;;  %1415 = vrot.lane.b32.xlu0 %v3595_v29, %s2247_s29 }
 0x473   :  { %5444 = vst [vmem:[#allocation37_spill] sm:$0xff] %v3605_v47 }
 0x474   :  { %1407 = vrot.lane.b32.xlu1 %v3602_v53, %s2247_s29  ;;  %v3613_v27 = vpop.permute.xlu0 %1235 }
 0x475   :  { %5446 = vst [vmem:[#allocation39_spill] sm:$0xff] %v3613_v27 }
 0x476   :  { %v3617_v41 = vpop.permute.xlu1 %1163  ;;  %1431 = vrot.lane.b32.xlu0 %v3609_v11, %s2247_s29 }
 0x477   :  { %5448 = vst [vmem:[#allocation41_spill] sm:$0xff] %v3617_v41 }
 0x478   :  { %1423 = vrot.lane.b32.xlu1 %v3615_v52, %s2247_s29  ;;  %v3623_v61 = vpop.permute.xlu0 %1171 }
 0x479   :  { %5449 = vst [vmem:[#allocation42_spill] sm:$0xff] %v3623_v61 }
 0x47a   :  { %v3625_v24 = vpop.permute.xlu1 %1179  ;;  %1367 = vrot.lane.b32.xlu0 %v3595_v29, %s2231_s13 }
 0x47b   :  { %5450 = vst [vmem:[#allocation43_spill] sm:$0xff] %v3625_v24 }
 0x47c   :  { %1359 = vrot.lane.b32.xlu1 %v3602_v53, %s2231_s13  ;;  %v3631_v4 = vpop.permute.xlu0 %1413 }
 0x47e   :  { %v3633_v30 = vpop.permute.xlu1 %1405  ;;  %1383 = vrot.lane.b32.xlu0 %v3609_v11, %s2231_s13 }
 0x480   :  { %1375 = vrot.lane.b32.xlu1 %v3615_v52, %s2231_s13  ;;  %v3639_v17 = vpop.permute.xlu0 %1429 }
 0x482   :  { %v3641_v61 = vpop.permute.xlu1 %1421  ;;  %1319 = vrot.lane.b32.xlu0 %v3595_v29, %s2232_s18 }
 0x484   :  { %1311 = vrot.lane.b32.xlu1 %v3602_v53, %s2232_s18  ;;  %v3647_v24 = vpop.permute.xlu0 %1365 }
 0x486   :  { %v3649_v41 = vpop.permute.xlu1 %1357  ;;  %1335 = vrot.lane.b32.xlu0 %v3609_v11, %s2232_s18 }
 0x488   :  { %1327 = vrot.lane.b32.xlu1 %v3615_v52, %s2232_s18  ;;  %v3655_v19 = vpop.permute.xlu0 %1381 }
 0x48a   :  { %v3657_v47 = vpop.permute.xlu1 %1373  ;;  %1271 = vrot.lane.b32.xlu0 %v3595_v29, %s2233_s0 }
 0x48c   :  { %1263 = vrot.lane.b32.xlu1 %v3602_v53, %s2233_s0  ;;  %v3663_v27 = vpop.permute.xlu0 %1317 }
 0x48e   :  { %v3665_v50 = vpop.permute.xlu1 %1309  ;;  %1287 = vrot.lane.b32.xlu0 %v3609_v11, %s2233_s0 }
 0x490   :  { %1279 = vrot.lane.b32.xlu1 %v3615_v52, %s2233_s0  ;;  %v3671_v12 = vpop.permute.xlu0 %1333 }
 0x492   :  { %v3673_v32 = vpop.permute.xlu1 %1325  ;;  %1607 = vrot.lane.b32.xlu0 %v3595_v29, %s2243_s25 }
 0x494   :  { %1599 = vrot.lane.b32.xlu1 %v3602_v53, %s2243_s25  ;;  %v3679_v34 = vpop.permute.xlu0 %1269 }
 0x495   :  { %5451 = vst [vmem:[#allocation44_spill] sm:$0xff] %v3679_v34 }
 0x496   :  { %v3681_v37 = vpop.permute.xlu1 %1261  ;;  %1623 = vrot.lane.b32.xlu0 %v3609_v11, %s2243_s25 }
 0x497   :  { %5452 = vst [vmem:[#allocation45_spill] sm:$0xff] %v3681_v37 }
 0x498   :  { %1615 = vrot.lane.b32.xlu1 %v3615_v52, %s2243_s25  ;;  %v3687_v28 = vpop.permute.xlu0 %1285 }
 0x499   :  { %5453 = vst [vmem:[#allocation46_spill] sm:$0xff] %v3687_v28 }
 0x49a   :  { %v3689_v31 = vpop.permute.xlu1 %1277  ;;  %1559 = vrot.lane.b32.xlu0 %v3595_v29, %s2244_s26 }
 0x49b   :  { %5454 = vst [vmem:[#allocation47_spill] sm:$0xff] %v3689_v31 }
 0x49c   :  { %1551 = vrot.lane.b32.xlu1 %v3602_v53, %s2244_s26  ;;  %v3695_v39 = vpop.permute.xlu0 %1605 }
 0x49d   :  { %5455 = vst [vmem:[#allocation48_spill] sm:$0xff] %v3695_v39 }
 0x49e   :  { %v3697_v9 = vpop.permute.xlu1 %1597  ;;  %1575 = vrot.lane.b32.xlu0 %v3609_v11, %s2244_s26 }
 0x49f   :  { %5456 = vst [vmem:[#allocation49_spill] sm:$0xff] %v3697_v9 }
 0x4a0   :  { %1567 = vrot.lane.b32.xlu1 %v3615_v52, %s2244_s26  ;;  %v3703_v10 = vpop.permute.xlu0 %1621 }
 0x4a1   :  { %5457 = vst [vmem:[#allocation50_spill] sm:$0xff] %v3703_v10 }
 0x4a2   :  { %v3705_v58 = vpop.permute.xlu1 %1613  ;;  %1511 = vrot.lane.b32.xlu0 %v3595_v29, %s2245_s27 }
 0x4a3   :  { %5458 = vst [vmem:[#allocation51_spill] sm:$0xff] %v3705_v58 }
 0x4a4   :  { %1503 = vrot.lane.b32.xlu1 %v3602_v53, %s2245_s27  ;;  %v3711_v59 = vpop.permute.xlu0 %1557 }
 0x4a5   :  { %5459 = vst [vmem:[#allocation52_spill] sm:$0xff] %v3711_v59  ;;  %v5483_v59 = vld [vmem:[#allocation2_spill] sm:$0xff] }
 0x4a6   :  { %v3713_v56 = vpop.permute.xlu1 %1549  ;;  %1527 = vrot.lane.b32.xlu0 %v3609_v11, %s2245_s27 }
 0x4a7   :  { %5460 = vst [vmem:[#allocation53_spill] sm:$0xff] %v3713_v56 }
 0x4a8   :  { %1519 = vrot.lane.b32.xlu1 %v3615_v52, %s2245_s27  ;;  %v3719_v35 = vpop.permute.xlu0 %1573 }
 0x4a9   :  { %5461 = vst [vmem:[#allocation54_spill] sm:$0xff] %v3719_v35 }
 0x4aa   :  { %v3721_v33 = vpop.permute.xlu1 %1565  ;;  %1463 = vrot.lane.b32.xlu0 %v3595_v29, %s2246_s28 }
 0x4ab   :  { %5462 = vst [vmem:[#allocation55_spill] sm:$0xff] %v3721_v33  ;;  %v899_v33 = vpop.f32.mrf.mxu1 }
 0x4ac   :  { %1455 = vrot.lane.b32.xlu1 %v3602_v53, %s2246_s28  ;;  %v3727_v22 = vpop.permute.xlu0 %1509 }
 0x4ad   :  { %5463 = vst [vmem:[#allocation56_spill] sm:$0xff] %v3727_v22 }
 0x4ae   :  { %v3729_v25 = vpop.permute.xlu1 %1501  ;;  %1479 = vrot.lane.b32.xlu0 %v3609_v11, %s2246_s28 }
 0x4af   :  { %5464 = vst [vmem:[#allocation57_spill] sm:$0xff] %v3729_v25 }
 0x4b0   :  { %1471 = vrot.lane.b32.xlu1 %v3615_v52, %s2246_s28  ;;  %v3735_v26 = vpop.permute.xlu0 %1525 }
 0x4b1   :  { %5465 = vst [vmem:[#allocation58_spill] sm:$0xff] %v3735_v26 }
 0x4b2   :  { %v3737_v23 = vpop.permute.xlu1 %1517  ;;  %1031 = vrot.lane.b32.xlu0 %v3595_v29, %s2242_s1 }
 0x4b3   :  { %5466 = vst [vmem:[#allocation59_spill] sm:$0xff] %v3737_v23 }
 0x4b4   :  { %1023 = vrot.lane.b32.xlu1 %v3602_v53, %s2242_s1  ;;  %v3743_v8 = vpop.permute.xlu0 %1461 }
 0x4b5   :  { %5467 = vst [vmem:[#allocation60_spill] sm:$0xff] %v3743_v8 }
 0x4b6   :  { %v3745_v22 = vpop.permute.xlu1 %1453  ;;  %1047 = vrot.lane.b32.xlu0 %v3609_v11, %s2242_s1 }
 0x4b7   :  { %5468 = vst [vmem:[#allocation61_spill] sm:$0xff] %v3745_v22 }
 0x4b8   :  { %1039 = vrot.lane.b32.xlu1 %v3615_v52, %s2242_s1  ;;  %v3751_v25 = vpop.permute.xlu0 %1477 }
 0x4b9   :  { %5469 = vst [vmem:[#allocation62_spill] sm:$0xff] %v3751_v25 }
 0x4ba   :  { %v3753_v26 = vpop.permute.xlu1 %1469  ;;  %983 = vrot.lane.b32.xlu0 %v3595_v29, %s2237_s22 }
 0x4bb   :  { %5470 = vst [vmem:[#allocation63_spill] sm:$0xff] %v3753_v26 }
 0x4bc   :  { %975 = vrot.lane.b32.xlu1 %v3602_v53, %s2237_s22  ;;  %v3759_v23 = vpop.permute.xlu0 %1029 }
 0x4bd   :  { %5471 = vst [vmem:[#allocation64_spill] sm:$0xff] %v3759_v23 }
 0x4be   :  { %v3761_v8 = vpop.permute.xlu1 %1021  ;;  %999 = vrot.lane.b32.xlu0 %v3609_v11, %s2237_s22 }
 0x4bf   :  { %5472 = vst [vmem:[#allocation65_spill] sm:$0xff] %v3761_v8 }
 0x4c0   :  { %991 = vrot.lane.b32.xlu1 %v3615_v52, %s2237_s22  ;;  %v3767_v22 = vpop.permute.xlu0 %1045 }
 0x4c1   :  { %5473 = vst [vmem:[#allocation66_spill] sm:$0xff] %v3767_v22 }
 0x4c2   :  { %v3769_v25 = vpop.permute.xlu1 %1037  ;;  %935 = vrot.lane.b32.xlu0 %v3595_v29, %s2240_s23 }
 0x4c3   :  { %5474 = vst [vmem:[#allocation67_spill] sm:$0xff] %v3769_v25 }
 0x4c4   :  { %927 = vrot.lane.b32.xlu1 %v3602_v53, %s2240_s23  ;;  %v3775_v26 = vpop.permute.xlu0 %981 }
 0x4c5   :  { %5475 = vst [vmem:[#allocation68_spill] sm:$0xff] %v3775_v26  ;;  %v808_v26 = vpop.f32.mrf.mxu0 }
 0x4c6   :  { %v3777_v23 = vpop.permute.xlu1 %973  ;;  %951 = vrot.lane.b32.xlu0 %v3609_v11, %s2240_s23  ;;  %v809_v35 = vadd.f32 %v808_v26, %v5483_v59 }
 0x4c7   :  { %5476 = vst [vmem:[#allocation69_spill] sm:$0xff] %v3777_v23 }
 0x4c8   :  { %943 = vrot.lane.b32.xlu1 %v3615_v52, %s2240_s23  ;;  %v3783_v8 = vpop.permute.xlu0 %997  ;;  %v3822_v46 = vmax.f32 %v809_v35, 0.0 }
 0x4c9   :  { %5477 = vst [vmem:[#allocation70_spill] sm:$0xff] %v3783_v8 }
 0x4ca   :  { %v3785_v22 = vpop.permute.xlu1 %989  ;;  %1223 = vrot.lane.b32.xlu0 %v3595_v29, %s2241_s24 }
 0x4cb   :  { %5478 = vst [vmem:[#allocation71_spill] sm:$0xff] %v3785_v22  ;;  %v810_v22 = vpop.f32.mrf.mxu0 }
 0x4cc   :  { %1215 = vrot.lane.b32.xlu1 %v3602_v53, %s2241_s24  ;;  %v3791_v25 = vpop.permute.xlu0 %933 }
 0x4cd   :  { %5479 = vst [vmem:[#allocation72_spill] sm:$0xff] %v3791_v25  ;;  %v811_v25 = vadd.f32 %v810_v22, %v5483_v59 }
 0x4ce   :  { %v3793_v23 = vpop.permute.xlu1 %925  ;;  %1239 = vrot.lane.b32.xlu0 %v3609_v11, %s2241_s24 }
 0x4cf   :  { %5480 = vst [vmem:[#allocation73_spill] sm:$0xff] %v3793_v23 }
 0x4d0   :  { %1231 = vrot.lane.b32.xlu1 %v3615_v52, %s2241_s24  ;;  %v3799_v8 = vpop.permute.xlu0 %949 }
 0x4d1   :  { %5481 = vst [vmem:[#allocation74_spill] sm:$0xff] %v3799_v8  ;;  %v3815_v8 = vmax.f32 %v811_v25, 0.0 }
 0x4d2   :  { %v3801_v7 = vpop.permute.xlu1 %941  ;;  %1175 = vrot.lane.b32.xlu0 %v3595_v29, %s2234_s19 }
 0x4d3   :  { %5482 = vst [vmem:[#allocation75_spill] sm:$0xff] %v3801_v7  ;;  %v900_v7 = vadd.f32 %v899_v33, %v5483_v59 }
 0x4d4   :  { %1167 = vrot.lane.b32.xlu1 %v3602_v53, %s2234_s19  ;;  %v3808_v23 = vpop.permute.xlu0 %1221 }
 0x4d5   :  { %5484 = vst [vmem:[#allocation2_spill] sm:$0xff] %v3808_v23  ;;  %v898_v23 = vadd.f32 %v897_v57, %v5483_v59  ;;  %v3829_v26 = vmax.f32 %v900_v7, 0.0 }
 0x4d6   :  { %v3811_v56 = vpop.permute.xlu1 %1213  ;;  %1191 = vrot.lane.b32.xlu0 %v3609_v11, %s2234_s19 }
 0x4d7   :  { %5485 = vst [vmem:[#allocation76_spill] sm:$0xff] %v3811_v56  ;;  %v3835_v33 = vmax.f32 %v898_v23, 0.0 }
 0x4d8   :  { %1183 = vrot.lane.b32.xlu1 %v3615_v52, %s2234_s19  ;;  %v3820_v22 = vpop.permute.xlu0 %1237 }
 0x4d9   :  { %5486 = vst [vmem:[#allocation77_spill] sm:$0xff] %v3820_v22 }
 0x4da   :  { %v3825_v5 = vpop.permute.xlu1 %1229  ;;  %1417 = vrot.lane.b32.xlu0 %v3815_v8, %s2247_s29 }
 0x4db   :  { %5487 = vst [vmem:[#allocation78_spill] sm:$0xff] %v3825_v5 }
 0x4dc   :  { %1409 = vrot.lane.b32.xlu1 %v3822_v46, %s2247_s29  ;;  %v3833_v25 = vpop.permute.xlu0 %1173 }
 0x4dd   :  { %5488 = vst [vmem:[#allocation79_spill] sm:$0xff] %v3833_v25 }
 0x4de   :  { %v3837_v56 = vpop.permute.xlu1 %1165  ;;  %1433 = vrot.lane.b32.xlu0 %v3829_v26, %s2247_s29 }
 0x4df   :  { %5489 = vst [vmem:[#allocation80_spill] sm:$0xff] %v3837_v56 }
 0x4e0   :  { %1425 = vrot.lane.b32.xlu1 %v3835_v33, %s2247_s29  ;;  %v3843_v57 = vpop.permute.xlu0 %1189 }
 0x4e1   :  { %5490 = vst [vmem:[#allocation81_spill] sm:$0xff] %v3843_v57 }
 0x4e2   :  { %v3845_v35 = vpop.permute.xlu1 %1181  ;;  %1369 = vrot.lane.b32.xlu0 %v3815_v8, %s2231_s13 }
 0x4e3   :  { %5491 = vst [vmem:[#allocation82_spill] sm:$0xff] %v3845_v35 }
 0x4e4   :  { %1361 = vrot.lane.b32.xlu1 %v3822_v46, %s2231_s13  ;;  %v3851_v7 = vpop.permute.xlu0 %1415 }
 0x4e6   :  { %v3853_v23 = vpop.permute.xlu1 %1407  ;;  %1385 = vrot.lane.b32.xlu0 %v3829_v26, %s2231_s13 }
 0x4e8   :  { %1377 = vrot.lane.b32.xlu1 %v3835_v33, %s2231_s13  ;;  %v3859_v59 = vpop.permute.xlu0 %1431 }
 0x4ea   :  { %v3861_v25 = vpop.permute.xlu1 %1423  ;;  %1321 = vrot.lane.b32.xlu0 %v3815_v8, %s2232_s18 }
 0x4ec   :  { %1313 = vrot.lane.b32.xlu1 %v3822_v46, %s2232_s18  ;;  %v3867_v35 = vpop.permute.xlu0 %1367 }
 0x4ee   :  { %v3869_v57 = vpop.permute.xlu1 %1359  ;;  %1337 = vrot.lane.b32.xlu0 %v3829_v26, %s2232_s18 }
 0x4f0   :  { %1329 = vrot.lane.b32.xlu1 %v3835_v33, %s2232_s18  ;;  %v3875_v56 = vpop.permute.xlu0 %1383 }
 0x4f2   :  { %v3877_v5 = vpop.permute.xlu1 %1375  ;;  %1273 = vrot.lane.b32.xlu0 %v3815_v8, %s2233_s0 }
 0x4f4   :  { %1265 = vrot.lane.b32.xlu1 %v3822_v46, %s2233_s0  ;;  %v3883_v22 = vpop.permute.xlu0 %1319 }
 0x4f6   :  { %v3885_v49 = vpop.permute.xlu1 %1311  ;;  %1289 = vrot.lane.b32.xlu0 %v3829_v26, %s2233_s0 }
 0x4f8   :  { %1281 = vrot.lane.b32.xlu1 %v3835_v33, %s2233_s0  ;;  %v3891_v6 = vpop.permute.xlu0 %1335 }
 0x4fa   :  { %v3893_v39 = vpop.permute.xlu1 %1327  ;;  %1609 = vrot.lane.b32.xlu0 %v3815_v8, %s2243_s25 }
 0x4fc   :  { %1601 = vrot.lane.b32.xlu1 %v3822_v46, %s2243_s25  ;;  %v3899_v58 = vpop.permute.xlu0 %1271 }
 0x4fd   :  { %5492 = vst [vmem:[#allocation83_spill] sm:$0xff] %v3899_v58 }
 0x4fe   :  { %v3901_v10 = vpop.permute.xlu1 %1263  ;;  %1625 = vrot.lane.b32.xlu0 %v3829_v26, %s2243_s25 }
 0x500   :  { %1617 = vrot.lane.b32.xlu1 %v3835_v33, %s2243_s25  ;;  %v3907_v9 = vpop.permute.xlu0 %1287 }
 0x502   :  { %v3909_v3 = vpop.permute.xlu1 %1279  ;;  %1561 = vrot.lane.b32.xlu0 %v3815_v8, %s2244_s26 }
 0x504   :  { %1553 = vrot.lane.b32.xlu1 %v3822_v46, %s2244_s26  ;;  %v3915_v0 = vpop.permute.xlu0 %1607 }
 0x505   :  { %5493 = vst [vmem:[#allocation84_spill] sm:$0xff] %v3915_v0 }
 0x506   :  { %v3917_v48 = vpop.permute.xlu1 %1599  ;;  %1577 = vrot.lane.b32.xlu0 %v3829_v26, %s2244_s26 }
 0x507   :  { %5494 = vst [vmem:[#allocation85_spill] sm:$0xff] %v3917_v48 }
 0x508   :  { %1569 = vrot.lane.b32.xlu1 %v3835_v33, %s2244_s26  ;;  %v3923_v2 = vpop.permute.xlu0 %1623 }
 0x509   :  { %5495 = vst [vmem:[#allocation86_spill] sm:$0xff] %v3923_v2 }
 0x50a   :  { %v3925_v34 = vpop.permute.xlu1 %1615  ;;  %1513 = vrot.lane.b32.xlu0 %v3815_v8, %s2245_s27 }
 0x50b   :  { %5496 = vst [vmem:[#allocation87_spill] sm:$0xff] %v3925_v34 }
 0x50c   :  { %1505 = vrot.lane.b32.xlu1 %v3822_v46, %s2245_s27  ;;  %v3931_v31 = vpop.permute.xlu0 %1559 }
 0x50d   :  { %5497 = vst [vmem:[#allocation88_spill] sm:$0xff] %v3931_v31 }
 0x50e   :  { %v3933_v0 = vpop.permute.xlu1 %1551  ;;  %1529 = vrot.lane.b32.xlu0 %v3829_v26, %s2245_s27 }
 0x50f   :  { %5498 = vst [vmem:[#allocation89_spill] sm:$0xff] %v3933_v0 }
 0x510   :  { %1521 = vrot.lane.b32.xlu1 %v3835_v33, %s2245_s27  ;;  %v3939_v48 = vpop.permute.xlu0 %1575 }
 0x511   :  { %5499 = vst [vmem:[#allocation90_spill] sm:$0xff] %v3939_v48 }
 0x512   :  { %v3941_v2 = vpop.permute.xlu1 %1567  ;;  %1465 = vrot.lane.b32.xlu0 %v3815_v8, %s2246_s28 }
 0x513   :  { %5500 = vst [vmem:[#allocation91_spill] sm:$0xff] %v3941_v2 }
 0x514   :  { %1457 = vrot.lane.b32.xlu1 %v3822_v46, %s2246_s28  ;;  %v3947_v34 = vpop.permute.xlu0 %1511 }
 0x515   :  { %5501 = vst [vmem:[#allocation92_spill] sm:$0xff] %v3947_v34 }
 0x516   :  { %v3949_v31 = vpop.permute.xlu1 %1503  ;;  %1481 = vrot.lane.b32.xlu0 %v3829_v26, %s2246_s28 }
 0x517   :  { %5502 = vst [vmem:[#allocation93_spill] sm:$0xff] %v3949_v31  ;;  %v921_v31 = vld [vmem:[%s5227_s5 + $0x18] sm:$0xff] }
 0x518   :  { %1473 = vrot.lane.b32.xlu1 %v3835_v33, %s2246_s28  ;;  %v3955_v0 = vpop.permute.xlu0 %1527  ;;  %1778 = vmatprep.mubr.f32.mxu1 %v921_v31 }
 0x519   :  { %5503 = vst [vmem:[#allocation94_spill] sm:$0xff] %v3955_v0  ;;  %1707 = vmatprep.mubr.f32.mxu0 %v921_v31 }
 0x51a   :  { %v3957_v48 = vpop.permute.xlu1 %1519  ;;  %1033 = vrot.lane.b32.xlu0 %v3815_v8, %s2242_s1 }
 0x51b   :  { %5504 = vst [vmem:[#allocation95_spill] sm:$0xff] %v3957_v48 }
 0x51c   :  { %1025 = vrot.lane.b32.xlu1 %v3822_v46, %s2242_s1  ;;  %v3963_v2 = vpop.permute.xlu0 %1463 }
 0x51d   :  { %5505 = vst [vmem:[#allocation96_spill] sm:$0xff] %v3963_v2 }
 0x51e   :  { %v3965_v34 = vpop.permute.xlu1 %1455  ;;  %1049 = vrot.lane.b32.xlu0 %v3829_v26, %s2242_s1 }
 0x51f   :  { %5506 = vst [vmem:[#allocation97_spill] sm:$0xff] %v3965_v34 }
 0x520   :  { %1041 = vrot.lane.b32.xlu1 %v3835_v33, %s2242_s1  ;;  %v3974_v48 = vpop.permute.xlu0 %1479 }
 0x521   :  { %5507 = vst [vmem:[#allocation98_spill] sm:$0xff] %v3974_v48 }
 0x522   :  { %v3976_v0 = vpop.permute.xlu1 %1471  ;;  %985 = vrot.lane.b32.xlu0 %v3815_v8, %s2237_s22 }
 0x523   :  { %5508 = vst [vmem:[#allocation99_spill] sm:$0xff] %v3976_v0 }
 0x524   :  { %977 = vrot.lane.b32.xlu1 %v3822_v46, %s2237_s22  ;;  %v3982_v2 = vpop.permute.xlu0 %1031 }
 0x525   :  { %5509 = vst [vmem:[#allocation100_spill] sm:$0xff] %v3982_v2 }
 0x526   :  { %v3984_v34 = vpop.permute.xlu1 %1023  ;;  %1001 = vrot.lane.b32.xlu0 %v3829_v26, %s2237_s22 }
 0x527   :  { %5510 = vst [vmem:[#allocation101_spill] sm:$0xff] %v3984_v34 }
 0x528   :  { %993 = vrot.lane.b32.xlu1 %v3835_v33, %s2237_s22  ;;  %v3990_v48 = vpop.permute.xlu0 %1047 }
 0x529   :  { %5511 = vst [vmem:[#allocation102_spill] sm:$0xff] %v3990_v48 }
 0x52a   :  { %v3992_v31 = vpop.permute.xlu1 %1039  ;;  %937 = vrot.lane.b32.xlu0 %v3815_v8, %s2240_s23 }
 0x52b   :  { %5512 = vst [vmem:[#allocation103_spill] sm:$0xff] %v3992_v31 }
 0x52c   :  { %929 = vrot.lane.b32.xlu1 %v3822_v46, %s2240_s23  ;;  %v3998_v0 = vpop.permute.xlu0 %983 }
 0x52d   :  { %5513 = vst [vmem:[#allocation104_spill] sm:$0xff] %v3998_v0 }
 0x52e   :  { %v4000_v2 = vpop.permute.xlu1 %975  ;;  %953 = vrot.lane.b32.xlu0 %v3829_v26, %s2240_s23 }
 0x52f   :  { %5514 = vst [vmem:[#allocation105_spill] sm:$0xff] %v4000_v2 }
 0x530   :  { %945 = vrot.lane.b32.xlu1 %v3835_v33, %s2240_s23  ;;  %v4006_v34 = vpop.permute.xlu0 %999 }
 0x531   :  { %5515 = vst [vmem:[#allocation106_spill] sm:$0xff] %v4006_v34 }
 0x532   :  { %v4008_v48 = vpop.permute.xlu1 %991  ;;  %1225 = vrot.lane.b32.xlu0 %v3815_v8, %s2241_s24 }
 0x533   :  { %5516 = vst [vmem:[#allocation107_spill] sm:$0xff] %v4008_v48 }
 0x534   :  { %1217 = vrot.lane.b32.xlu1 %v3822_v46, %s2241_s24  ;;  %v4014_v31 = vpop.permute.xlu0 %935 }
 0x535   :  { %5517 = vst [vmem:[#allocation108_spill] sm:$0xff] %v4014_v31 }
 0x536   :  { %v4016_v0 = vpop.permute.xlu1 %927  ;;  %1241 = vrot.lane.b32.xlu0 %v3829_v26, %s2241_s24 }
 0x537   :  { %5518 = vst [vmem:[#allocation109_spill] sm:$0xff] %v4016_v0 }
 0x538   :  { %1233 = vrot.lane.b32.xlu1 %v3835_v33, %s2241_s24  ;;  %v4022_v2 = vpop.permute.xlu0 %951 }
 0x539   :  { %5519 = vst [vmem:[#allocation110_spill] sm:$0xff] %v4022_v2 }
 0x53a   :  { %v4024_v34 = vpop.permute.xlu1 %943  ;;  %1177 = vrot.lane.b32.xlu0 %v3815_v8, %s2234_s19 }
 0x53b   :  { %5520 = vst [vmem:[#allocation111_spill] sm:$0xff] %v4024_v34 }
 0x53c   :  { %1169 = vrot.lane.b32.xlu1 %v3822_v46, %s2234_s19  ;;  %v4030_v48 = vpop.permute.xlu0 %1223 }
 0x53d   :  { %5521 = vst [vmem:[#allocation112_spill] sm:$0xff] %v4030_v48 }
 0x53e   :  { %v4032_v31 = vpop.permute.xlu1 %1215  ;;  %1193 = vrot.lane.b32.xlu0 %v3829_v26, %s2234_s19 }
 0x53f   :  { %5522 = vst [vmem:[#allocation113_spill] sm:$0xff] %v4032_v31 }
 0x540   :  { %1185 = vrot.lane.b32.xlu1 %v3835_v33, %s2234_s19  ;;  %v4038_v0 = vpop.permute.xlu0 %1239 }
 0x541   :  { %5523 = vst [vmem:[#allocation114_spill] sm:$0xff] %v4038_v0 }
 0x542   :  { %v4040_v2 = vpop.permute.xlu1 %1231  ;;  %1187 = vrot.lane.b32.xlu0 %v3289_v44, %s2234_s19 }
 0x543   :  { %5524 = vst [vmem:[#allocation115_spill] sm:$0xff] %v4040_v2 }
 0x544   :  { %1121 = vrot.lane.b32.xlu1 %v3822_v46, %s2235_s20  ;;  %v4046_v34 = vpop.permute.xlu0 %1175 }
 0x545   :  { %5525 = vst [vmem:[#allocation116_spill] sm:$0xff] %v4046_v34 }
 0x546   :  { %v4048_v48 = vpop.permute.xlu1 %1167  ;;  %1129 = vrot.lane.b32.xlu0 %v3815_v8, %s2235_s20 }
 0x547   :  { %5526 = vst [vmem:[#allocation117_spill] sm:$0xff] %v4048_v48 }
 0x548   :  { %1137 = vrot.lane.b32.xlu1 %v3835_v33, %s2235_s20  ;;  %v4054_v31 = vpop.permute.xlu0 %1191 }
 0x549   :  { %5527 = vst [vmem:[#allocation118_spill] sm:$0xff] %v4054_v31 }
 0x54a   :  { %v4056_v0 = vpop.permute.xlu1 %1183  ;;  %1145 = vrot.lane.b32.xlu0 %v3829_v26, %s2235_s20 }
 0x54b   :  { %5528 = vst [vmem:[#allocation119_spill] sm:$0xff] %v4056_v0 }
 0x54c   :  { %1119 = vrot.lane.b32.xlu1 %v3602_v53, %s2235_s20  ;;  %v1418_v2 = vpop.permute.xlu0 %1417 }
 0x54e   :  { %v1410_v34 = vpop.permute.xlu1 %1409  ;;  %1127 = vrot.lane.b32.xlu0 %v3595_v29, %s2235_s20 }
 0x54f   :  { %v1446_v58 = vsel %vm595_vm15, %v1410_v34, %v1418_v2 }
 0x550   :  { %1135 = vrot.lane.b32.xlu1 %v3615_v52, %s2235_s20  ;;  %v1434_v48 = vpop.permute.xlu0 %1433 }
 0x551   :  { %v1450_v31 = vsel %vm595_vm15, %v1434_v48, %v1410_v34 }
 0x552   :  { %v1426_v28 = vpop.permute.xlu1 %1425  ;;  %1143 = vrot.lane.b32.xlu0 %v3609_v11, %s2235_s20  ;;  %1714 = vmatprep.subr.mxu1 %v1450_v31  ;;  %v1449_v31 = vsel %vm595_vm15, %v3859_v59, %v3853_v23 }
 0x553   :  { %v1442_v0 = vsel %vm595_vm15, %v1418_v2, %v1426_v28  ;;  %v1438_v37 = vsel %vm595_vm15, %v1426_v28, %v1434_v48  ;;  %v1437_v2 = vsel %vm595_vm15, %v3861_v25, %v3859_v59  ;;  %v1445_v48 = vsel %vm595_vm15, %v3853_v23, %v3851_v7 }
 0x554   :  { %1117 = vrot.lane.b32.xlu1 %v3394_v36, %s2235_s20  ;;  %1643 = vmatprep.subr.mxu0 %v1442_v0  ;;  %v1370_v52 = vpop.permute.xlu0 %1369  ;;  %v1441_v0 = vsel %vm595_vm15, %v3851_v7, %v3861_v25  ;;  %v1440_v28 = vsel %vm595_vm15, %v3631_v4, %v3641_v61  ;;  %v1444_v25 = vsel %vm595_vm15, %v3633_v30, %v3631_v4 }
 0x555   :  { %1715 = vmatpush1.msra.mxu1 %v1438_v37  ;;  %1644 = vmatpush1.msra.mxu0 %v1446_v58  ;;  %v1448_v58 = vsel %vm595_vm15, %v3639_v17, %v3633_v30  ;;  %v1436_v37 = vsel %vm595_vm15, %v3641_v61, %v3639_v17  ;;  %v1447_v7 = vsel %vm595_vm15, %v3427_v62, %v3413_v18 }
 0x556   :  { %1716 = vmatprep.subr.mxu1 %v1449_v31  ;;  %v1362_v11 = vpop.permute.xlu1 %1361  ;;  %1125 = vrot.lane.b32.xlu0 %v3389_v16, %s2235_s20  ;;  %v1439_v61 = vsel %vm595_vm15, %v3419_v20, %v3423_v21  ;;  %v1435_v4 = vsel %vm595_vm15, %v3423_v21, %v3427_v62  ;;  %v1443_v17 = vsel %vm595_vm15, %v3413_v18, %v3419_v20 }
 0x557   :  { %1645 = vmatprep.subr.mxu0 %v1441_v0  ;;  %1717 = vmatpush1.msra.mxu1 %v1437_v2  ;;  %v1398_v21 = vsel %vm141_vm0, %v1362_v11, %v1370_v52  ;;  %v1401_v18 = vsel %vm141_vm0, %v3875_v56, %v3869_v57  ;;  %v1393_v20 = vsel %vm141_vm0, %v3867_v35, %v3877_v5 }
 0x558   :  { %1646 = vmatpush1.msra.mxu0 %v1445_v48  ;;  %1718 = vmatprep.subr.mxu1 %v1448_v58  ;;  %v1386_v34 = vpop.permute.xlu0 %1385  ;;  %v1397_v2 = vsel %vm141_vm0, %v3869_v57, %v3867_v35  ;;  %v1400_v48 = vsel %vm141_vm0, %v3655_v19, %v3649_v41  ;;  %v1388_v57 = vsel %vm141_vm0, %v3657_v47, %v3655_v19 }
 0x559   :  { %1133 = vrot.lane.b32.xlu1 %v3403_v60, %s2235_s20  ;;  %1647 = vmatprep.subr.mxu0 %v1440_v28  ;;  %v1402_v59 = vsel %vm141_vm0, %v1386_v34, %v1362_v11  ;;  %v1389_v11 = vsel %vm141_vm0, %v3877_v5, %v3875_v56  ;;  %v1392_v5 = vsel %vm141_vm0, %v3647_v24, %v3657_v47 }
 0x55a   :  { %1719 = vmatpush1.msra.mxu1 %v1436_v37  ;;  %1648 = vmatpush1.msra.mxu0 %v1444_v25  ;;  %v1378_v23 = vpop.permute.xlu1 %1377  ;;  %v1396_v35 = vsel %vm141_vm0, %v3649_v41, %v3647_v24  ;;  %v1399_v58 = vsel %vm141_vm0, %v3443_v55, %v3431_v63  ;;  %v1391_v47 = vsel %vm141_vm0, %v3435_v43, %v3439_v54 }
 0x55b   :  { %1720 = vmatprep.subr.mxu1 %v1447_v7  ;;  %1141 = vrot.lane.b32.xlu0 %v3399_v51, %s2235_s20  ;;  %v1394_v30 = vsel %vm141_vm0, %v1370_v52, %v1378_v23  ;;  %v1390_v31 = vsel %vm141_vm0, %v1378_v23, %v1386_v34  ;;  %v1387_v41 = vsel %vm141_vm0, %v3439_v54, %v3443_v55 }
 0x55c   :  { %1649 = vmatprep.subr.mxu0 %v1439_v61  ;;  %1721 = vmatpush1.msra.mxu1 %v1435_v4  ;;  %v1322_v0 = vpop.permute.xlu0 %1321  ;;  %v1395_v24 = vsel %vm141_vm0, %v3431_v63, %v3435_v43  ;;  %v1353_v63 = vsel %vm128_vm1, %v3891_v6, %v3885_v49  ;;  %v1345_v43 = vsel %vm128_vm1, %v3883_v22, %v3893_v39 }
 0x55d   :  { %1650 = vmatpush1.msra.mxu0 %v1443_v17  ;;  %1722 = vmatprep.subr.mxu1 %v1402_v59  ;;  %v1341_v7 = vsel %vm128_vm1, %v3893_v39, %v3891_v6  ;;  %v1349_v59 = vsel %vm128_vm1, %v3885_v49, %v3883_v22  ;;  %v1352_v61 = vsel %vm128_vm1, %v3671_v12, %v3665_v50 }
 0x55e   :  { %1115 = vrot.lane.b32.xlu1 %v3276_v45, %s2235_s20  ;;  %1651 = vmatprep.subr.mxu0 %v1394_v30  ;;  %v1314_v62 = vpop.permute.xlu1 %1313  ;;  %v1344_v6 = vsel %vm128_vm1, %v3663_v27, %v3673_v32  ;;  %v1340_v49 = vsel %vm128_vm1, %v3673_v32, %v3671_v12  ;;  %v1348_v22 = vsel %vm128_vm1, %v3665_v50, %v3663_v27 }
 0x55f   :  { %1723 = vmatpush1.msra.mxu1 %v1390_v31  ;;  %1652 = vmatpush1.msra.mxu0 %v1398_v21  ;;  %v1350_v54 = vsel %vm128_vm1, %v1314_v62, %v1322_v0  ;;  %v1351_v4 = vsel %vm128_vm1, %v3459_v40, %v3447_v42  ;;  %v1343_v32 = vsel %vm128_vm1, %v3451_v1, %v3455_v38 }
 0x560   :  { %1724 = vmatprep.subr.mxu1 %v1401_v18  ;;  %1123 = vrot.lane.b32.xlu0 %v3280_v15, %s2235_s20  ;;  %v1338_v52 = vpop.permute.xlu0 %1337  ;;  %v1339_v12 = vsel %vm128_vm1, %v3455_v38, %v3459_v40  ;;  %v1347_v27 = vsel %vm128_vm1, %v3447_v42, %v3451_v1  ;;  %v1305_v42 = vsel %vm115_vm2, %v3907_v9, %v3901_v10  ;;  %v5529_v1 = vld [vmem:[#allocation83_spill] sm:$0xff] }
 0x561   :  { %1653 = vmatprep.subr.mxu0 %v1393_v20  ;;  %1725 = vmatpush1.msra.mxu1 %v1389_v11  ;;  %v1354_v28 = vsel %vm128_vm1, %v1338_v52, %v1314_v62  ;;  %v1297_v21 = vsel %vm115_vm2, %v5529_v1, %v3909_v3  ;;  %v1293_v62 = vsel %vm115_vm2, %v3909_v3, %v3907_v9  ;;  %v5530_v11 = vld [vmem:[#allocation45_spill] sm:$0xff] }
 0x562   :  { %1654 = vmatpush1.msra.mxu0 %v1397_v2  ;;  %1726 = vmatprep.subr.mxu1 %v1400_v48  ;;  %v1330_v56 = vpop.permute.xlu1 %1329  ;;  %v1301_v20 = vsel %vm115_vm2, %v3901_v10, %v5529_v1  ;;  %v5532_v48 = vld [vmem:[#allocation47_spill] sm:$0xff]  ;;  %v5548_v1 = vld [vmem:[#allocation10_spill] sm:$0xff] }
 0x563   :  { %1131 = vrot.lane.b32.xlu1 %v3285_v14, %s2235_s20  ;;  %1655 = vmatprep.subr.mxu0 %v1392_v5  ;;  %v1346_v19 = vsel %vm128_vm1, %v1322_v0, %v1330_v56  ;;  %v1342_v37 = vsel %vm128_vm1, %v1330_v56, %v1338_v52  ;;  %v5531_v52 = vld [vmem:[#allocation46_spill] sm:$0xff]  ;;  %v5533_v5 = vld [vmem:[#allocation44_spill] sm:$0xff] }
 0x564   :  { %1727 = vmatpush1.msra.mxu1 %v1388_v57  ;;  %1656 = vmatpush1.msra.mxu0 %v1396_v35  ;;  %v1274_v34 = vpop.permute.xlu0 %1273  ;;  %v1304_v2 = vsel %vm115_vm2, %v5531_v52, %v5530_v11  ;;  %v1296_v3 = vsel %vm115_vm2, %v5533_v5, %v5532_v48  ;;  %v5534_v56 = vld [vmem:[#allocation40_spill] sm:$0xff]  ;;  %v1292_v10 = vsel %vm115_vm2, %v5532_v48, %v5531_v52  ;;  %v5535_v35 = vld [vmem:[#allocation7_spill] sm:$0xff] }
 0x565   :  { %1728 = vmatprep.subr.mxu1 %v1399_v58  ;;  %1139 = vrot.lane.b32.xlu0 %v3289_v44, %s2235_s20  ;;  %v1300_v57 = vsel %vm115_vm2, %v5530_v11, %v5533_v5  ;;  %v5536_v58 = vld [vmem:[#allocation11_spill] sm:$0xff]  ;;  %v5550_v52 = vld [vmem:[#allocation12_spill] sm:$0xff] }
 0x566   :  { %1657 = vmatprep.subr.mxu0 %v1391_v47  ;;  %1729 = vmatpush1.msra.mxu1 %v1387_v41  ;;  %v1266_v25 = vpop.permute.xlu1 %1265  ;;  %v5537_v41 = vld [vmem:[#allocation38_spill] sm:$0xff] }
 0x567   :  { %1658 = vmatpush1.msra.mxu0 %v1395_v24  ;;  %1730 = vmatprep.subr.mxu1 %v1354_v28  ;;  %v1302_v38 = vsel %vm115_vm2, %v1266_v25, %v1274_v34  ;;  %v1303_v28 = vsel %vm115_vm2, %v5536_v58, %v5535_v35  ;;  %v5539_v24 = vld [vmem:[#allocation6_spill] sm:$0xff] }
 0x568   :  { %1073 = vrot.lane.b32.xlu1 %v3822_v46, %s2236_s21  ;;  %1659 = vmatprep.subr.mxu0 %v1346_v19  ;;  %v1290_v55 = vpop.permute.xlu0 %1289  ;;  %v5538_v19 = vld [vmem:[#allocation8_spill] sm:$0xff] }
 0x569   :  { %1731 = vmatpush1.msra.mxu1 %v1342_v37  ;;  %1660 = vmatpush1.msra.mxu0 %v1350_v54  ;;  %v1306_v30 = vsel %vm115_vm2, %v1290_v55, %v1266_v25  ;;  %v1295_v37 = vsel %vm115_vm2, %v5539_v24, %v5538_v19  ;;  %v1291_v25 = vsel %vm115_vm2, %v5538_v19, %v5536_v58 }
 0x56a   :  { %1732 = vmatprep.subr.mxu1 %v1353_v63  ;;  %1081 = vrot.lane.b32.xlu0 %v3815_v8, %s2236_s21  ;;  %v1282_v23 = vpop.permute.xlu1 %1281 }
 0x56b   :  { %1661 = vmatprep.subr.mxu0 %v1345_v43  ;;  %1733 = vmatpush1.msra.mxu1 %v1341_v7  ;;  %v1298_v50 = vsel %vm115_vm2, %v1274_v34, %v1282_v23  ;;  %v1294_v31 = vsel %vm115_vm2, %v1282_v23, %v1290_v55  ;;  %v1299_v55 = vsel %vm115_vm2, %v5535_v35, %v5539_v24  ;;  %v5554_v24 = vld [vmem:[#allocation91_spill] sm:$0xff] }
 0x56c   :  { %1662 = vmatpush1.msra.mxu0 %v1349_v59  ;;  %1734 = vmatprep.subr.mxu1 %v1352_v61  ;;  %v4232_v39 = vpop.permute.xlu0 %1609  ;;  %v5540_v59 = vld [vmem:[#allocation85_spill] sm:$0xff]  ;;  %v5541_v61 = vld [vmem:[#allocation86_spill] sm:$0xff] }
 0x56d   :  { %1089 = vrot.lane.b32.xlu1 %v3835_v33, %s2236_s21  ;;  %1663 = vmatprep.subr.mxu0 %v1344_v6  ;;  %v1641_v6 = vsel %vm695_vm11, %v5541_v61, %v5540_v59 }
 0x56e   :  { %1735 = vmatpush1.msra.mxu1 %v1340_v49  ;;  %1664 = vmatpush1.msra.mxu0 %v1348_v22  ;;  %v1602_v17 = vpop.permute.xlu1 %1601  ;;  %v5542_v49 = vld [vmem:[#allocation87_spill] sm:$0xff]  ;;  %v5543_v22 = vld [vmem:[#allocation84_spill] sm:$0xff] }
 0x56f   :  { %1736 = vmatprep.subr.mxu1 %v1351_v4  ;;  %1097 = vrot.lane.b32.xlu0 %v3829_v26, %s2236_s21  ;;  %v1638_v7 = vsel %vm695_vm11, %v1602_v17, %v4232_v39  ;;  %v1633_v4 = vsel %vm695_vm11, %v5543_v22, %v5542_v49 }
 0x570   :  { %1665 = vmatprep.subr.mxu0 %v1343_v32  ;;  %1737 = vmatpush1.msra.mxu1 %v1339_v12  ;;  %v1626_v0 = vpop.permute.xlu0 %1625  ;;  %v5544_v32 = vld [vmem:[#allocation49_spill] sm:$0xff]  ;;  %v5545_v12 = vld [vmem:[#allocation50_spill] sm:$0xff] }
 0x571   :  { %1666 = vmatpush1.msra.mxu0 %v1347_v27  ;;  %1738 = vmatprep.subr.mxu1 %v1306_v30  ;;  %v1642_v34 = vsel %vm695_vm11, %v1626_v0, %v1602_v17  ;;  %v1637_v17 = vsel %vm695_vm11, %v5540_v59, %v5543_v22  ;;  %v5546_v27 = vld [vmem:[#allocation51_spill] sm:$0xff]  ;;  %v5559_v59 = vld [vmem:[#allocation52_spill] sm:$0xff] }
 0x572   :  { %1071 = vrot.lane.b32.xlu1 %v3602_v53, %s2236_s21  ;;  %1667 = vmatprep.subr.mxu0 %v1298_v50  ;;  %v1618_v40 = vpop.permute.xlu1 %1617  ;;  %v1640_v50 = vsel %vm695_vm11, %v5545_v12, %v5544_v32 }
 0x573   :  { %1739 = vmatpush1.msra.mxu1 %v1294_v31  ;;  %1668 = vmatpush1.msra.mxu0 %v1302_v38  ;;  %v1634_v54 = vsel %vm695_vm11, %v4232_v39, %v1618_v40  ;;  %v1630_v63 = vsel %vm695_vm11, %v1618_v40, %v1626_v0  ;;  %v1629_v39 = vsel %vm695_vm11, %v5542_v49, %v5541_v61  ;;  %v5547_v31 = vld [vmem:[#allocation48_spill] sm:$0xff] }
 0x574   :  { %1740 = vmatprep.subr.mxu1 %v1305_v42  ;;  %1079 = vrot.lane.b32.xlu0 %v3595_v29, %s2236_s21  ;;  %v4286_v18 = vpop.permute.xlu0 %1561  ;;  %v1632_v0 = vsel %vm695_vm11, %v5547_v31, %v5546_v27  ;;  %v1628_v40 = vsel %vm695_vm11, %v5546_v27, %v5545_v12  ;;  %v1636_v42 = vsel %vm695_vm11, %v5544_v32, %v5547_v31  ;;  %v5563_v27 = vld [vmem:[#allocation13_spill] sm:$0xff] }
 0x575   :  { %1669 = vmatprep.subr.mxu0 %v1297_v21  ;;  %1741 = vmatpush1.msra.mxu1 %v1293_v62  ;;  %v5549_v21 = vld [vmem:[#allocation15_spill] sm:$0xff] }
 0x576   :  { %1670 = vmatpush1.msra.mxu0 %v1301_v20  ;;  %1742 = vmatprep.subr.mxu1 %v1304_v2  ;;  %v4300_v9 = vpop.permute.xlu1 %1553  ;;  %v1639_v62 = vsel %vm695_vm11, %v5549_v21, %v5548_v1  ;;  %v5551_v2 = vld [vmem:[#allocation9_spill] sm:$0xff]  ;;  %v1627_v5 = vsel %vm695_vm11, %v5550_v52, %v5549_v21 }
 0x577   :  { %1087 = vrot.lane.b32.xlu1 %v5534_v56, %s2236_s21  ;;  %1671 = vmatprep.subr.mxu0 %v1296_v3  ;;  %v1631_v48 = vsel %vm695_vm11, %v5551_v2, %v5550_v52  ;;  %v1590_v58 = vsel %vm670_vm12, %v4300_v9, %v4286_v18 }
 0x578   :  { %1743 = vmatpush1.msra.mxu1 %v1292_v10  ;;  %1672 = vmatpush1.msra.mxu0 %v1300_v57  ;;  %v1578_v47 = vpop.permute.xlu0 %1577  ;;  %v1635_v57 = vsel %vm695_vm11, %v5548_v1, %v5551_v2 }
 0x579   :  { %1744 = vmatprep.subr.mxu1 %v1303_v28  ;;  %1095 = vrot.lane.b32.xlu0 %v5537_v41, %s2236_s21  ;;  %v1594_v20 = vsel %vm670_vm12, %v1578_v47, %v4300_v9 }
 0x57a   :  { %1673 = vmatprep.subr.mxu0 %v1295_v37  ;;  %1745 = vmatpush1.msra.mxu1 %v1291_v25  ;;  %v1570_v43 = vpop.permute.xlu1 %1569  ;;  %v5555_v37 = vld [vmem:[#allocation88_spill] sm:$0xff] }
 0x57b   :  { %1674 = vmatpush1.msra.mxu0 %v1299_v55  ;;  %1746 = vmatprep.subr.mxu1 %v1642_v34  ;;  %v1586_v3 = vsel %vm670_vm12, %v4286_v18, %v1570_v43  ;;  %v1582_v10 = vsel %vm670_vm12, %v1570_v43, %v1578_v47  ;;  %v5552_v34 = vld [vmem:[#allocation89_spill] sm:$0xff]  ;;  %v5553_v47 = vld [vmem:[#allocation90_spill] sm:$0xff]  ;;  %v1585_v18 = vsel %vm670_vm12, %v5555_v37, %v5554_v24 }
 0x57c   :  { %1069 = vrot.lane.b32.xlu1 %v3394_v36, %s2236_s21  ;;  %1675 = vmatprep.subr.mxu0 %v1634_v54  ;;  %v4342_v23 = vpop.permute.xlu0 %1513  ;;  %v1593_v19 = vsel %vm670_vm12, %v5553_v47, %v5552_v34  ;;  %v1581_v9 = vsel %vm670_vm12, %v5554_v24, %v5553_v47  ;;  %v1589_v54 = vsel %vm670_vm12, %v5552_v34, %v5555_v37  ;;  %v5556_v55 = vld [vmem:[#allocation53_spill] sm:$0xff]  ;;  %v5570_v47 = vld [vmem:[#allocation59_spill] sm:$0xff] }
 0x57d   :  { %1747 = vmatpush2.msra.mxu1 %v1630_v63  ;;  %1676 = vmatpush2.msra.mxu0 %v1638_v7  ;;  %v5557_v63 = vld [vmem:[#allocation54_spill] sm:$0xff]  ;;  %v5558_v7 = vld [vmem:[#allocation55_spill] sm:$0xff]  ;;  %v1588_v22 = vsel %vm670_vm12, %v5556_v55, %v5559_v59 }
 0x57e   :  { %1748 = vmatprep.subr.mxu1 %v1641_v6  ;;  %1077 = vrot.lane.b32.xlu0 %v3389_v16, %s2236_s21  ;;  %v4358_v30 = vpop.permute.xlu1 %1505  ;;  %v1592_v43 = vsel %vm670_vm12, %v5557_v63, %v5556_v55  ;;  %v1584_v61 = vsel %vm670_vm12, %v5559_v59, %v5558_v7  ;;  %v1580_v49 = vsel %vm670_vm12, %v5558_v7, %v5557_v63  ;;  %v5575_v7 = vld [vmem:[#allocation5_spill] sm:$0xff] }
 0x57f   :  { %1677 = vmatprep.subr.mxu0 %v1633_v4  ;;  %1749 = vmatpush2.msra.mxu1 %v1629_v39  ;;  %v5560_v4 = vld [vmem:[#allocation14_spill] sm:$0xff]  ;;  %v5561_v39 = vld [vmem:[#allocation19_spill] sm:$0xff] }
 0x580   :  { %1678 = vmatpush2.msra.mxu0 %v1637_v17  ;;  %1750 = vmatprep.subr.mxu1 %v1640_v50  ;;  %v1530_v38 = vpop.permute.xlu0 %1529  ;;  %v1591_v17 = vsel %vm670_vm12, %v5561_v39, %v5560_v4  ;;  %v5562_v50 = vld [vmem:[#allocation16_spill] sm:$0xff]  ;;  %v1587_v21 = vsel %vm670_vm12, %v5560_v4, %v5563_v27 }
 0x581   :  { %1085 = vrot.lane.b32.xlu1 %v3403_v60, %s2236_s21  ;;  %1679 = vmatprep.subr.mxu0 %v1632_v0  ;;  %v1546_v32 = vsel %vm645_vm13, %v1530_v38, %v4358_v30  ;;  %v1583_v31 = vsel %vm670_vm12, %v5563_v27, %v5562_v50  ;;  %v1579_v0 = vsel %vm670_vm12, %v5562_v50, %v5561_v39  ;;  %v5577_v50 = vld [vmem:[#allocation98_spill] sm:$0xff] }
 0x582   :  { %1751 = vmatpush2.msra.mxu1 %v1628_v40  ;;  %1680 = vmatpush2.msra.mxu0 %v1636_v42  ;;  %v1522_v11 = vpop.permute.xlu1 %1521  ;;  %v922_v40 = vld [vmem:[%s5228_s6] sm:$0xff] }
 0x583   :  { %1752 = vmatprep.subr.mxu1 %v1639_v62  ;;  %1093 = vrot.lane.b32.xlu0 %v3399_v51, %s2236_s21  ;;  %v1538_v42 = vsel %vm645_vm13, %v4342_v23, %v1522_v11  ;;  %v1534_v1 = vsel %vm645_vm13, %v1522_v11, %v1530_v38  ;;  %v5564_v38 = vld [vmem:[#allocation93_spill] sm:$0xff]  ;;  %v5565_v11 = vld [vmem:[#allocation94_spill] sm:$0xff] }
 0x584   :  { %1681 = vmatprep.subr.mxu0 %v1631_v48  ;;  %1753 = vmatpush2.msra.mxu1 %v1627_v5  ;;  %v4408_v35 = vpop.permute.xlu0 %1465  ;;  %v1545_v2 = vsel %vm645_vm13, %v5565_v11, %v5564_v38  ;;  %v5566_v48 = vld [vmem:[#allocation95_spill] sm:$0xff]  ;;  %v5567_v5 = vld [vmem:[#allocation92_spill] sm:$0xff] }
 0x585   :  { %1682 = vmatpush2.msra.mxu0 %v1635_v57  ;;  %1754 = vmatprep.subr.mxu1 %v1594_v20  ;;  %v1542_v20 = vsel %vm645_vm13, %v4358_v30, %v4342_v23  ;;  %v1533_v23 = vsel %vm645_vm13, %v5566_v48, %v5565_v11  ;;  %v1541_v30 = vsel %vm645_vm13, %v5564_v38, %v5567_v5  ;;  %v5568_v57 = vld [vmem:[#allocation57_spill] sm:$0xff]  ;;  %v5582_v38 = vld [vmem:[#allocation63_spill] sm:$0xff]  ;;  %v5583_v11 = vld [vmem:[#allocation60_spill] sm:$0xff] }
 0x586   :  { %1067 = vrot.lane.b32.xlu1 %v3276_v45, %s2236_s21  ;;  %1683 = vmatprep.subr.mxu0 %v1586_v3  ;;  %v4416_v28 = vpop.permute.xlu1 %1457  ;;  %v1537_v3 = vsel %vm645_vm13, %v5567_v5, %v5566_v48 }
 0x587   :  { %1755 = vmatpush2.msra.mxu1 %v1582_v10  ;;  %1684 = vmatpush2.msra.mxu0 %v1590_v58  ;;  %v5569_v58 = vld [vmem:[#allocation58_spill] sm:$0xff] }
 0x588   :  { %1756 = vmatprep.subr.mxu1 %v1593_v19  ;;  %1075 = vrot.lane.b32.xlu0 %v3280_v15, %s2236_s21  ;;  %v1482_v25 = vpop.permute.xlu0 %1481  ;;  %v1544_v34 = vsel %vm645_vm13, %v5569_v58, %v5568_v57  ;;  %v5571_v19 = vld [vmem:[#allocation56_spill] sm:$0xff]  ;;  %v1532_v37 = vsel %vm645_vm13, %v5570_v47, %v5569_v58  ;;  %v5586_v58 = vld [vmem:[#allocation23_spill] sm:$0xff] }
 0x589   :  { %1685 = vmatprep.subr.mxu0 %v1585_v18  ;;  %1757 = vmatpush2.msra.mxu1 %v1581_v9  ;;  %v1536_v24 = vsel %vm645_vm13, %v5571_v19, %v5570_v47  ;;  %v1540_v18 = vsel %vm645_vm13, %v5568_v57, %v5571_v19  ;;  %v5572_v9 = vld [vmem:[#allocation20_spill] sm:$0xff]  ;;  %v5587_v47 = vld [vmem:[#allocation22_spill] sm:$0xff] }
 0x58a   :  { %1686 = vmatpush2.msra.mxu0 %v1589_v54  ;;  %1758 = vmatprep.subr.mxu1 %v1592_v43  ;;  %v1474_v6 = vpop.permute.xlu1 %1473  ;;  %v5573_v54 = vld [vmem:[#allocation17_spill] sm:$0xff]  ;;  %v5574_v43 = vld [vmem:[#allocation18_spill] sm:$0xff]  ;;  %v1531_v4 = vsel %vm645_vm13, %v5572_v9, %v5575_v7 }
 0x58b   :  { %1083 = vrot.lane.b32.xlu1 %v3285_v14, %s2236_s21  ;;  %1687 = vmatprep.subr.mxu0 %v1584_v61  ;;  %v1535_v55 = vsel %vm645_vm13, %v5573_v54, %v5572_v9  ;;  %v1543_v59 = vsel %vm645_vm13, %v5575_v7, %v5574_v43  ;;  %v1498_v61 = vsel %vm620_vm14, %v1482_v25, %v4416_v28  ;;  %v5589_v7 = vld [vmem:[#allocation102_spill] sm:$0xff] }
 0x58c   :  { %1759 = vmatpush2.msra.mxu1 %v1580_v49  ;;  %1688 = vmatpush2.msra.mxu0 %v1588_v22  ;;  %v4461_v12 = vpop.permute.xlu0 %1033  ;;  %v1490_v49 = vsel %vm620_vm14, %v4408_v35, %v1474_v6  ;;  %v1486_v22 = vsel %vm620_vm14, %v1474_v6, %v1482_v25  ;;  %v1539_v39 = vsel %vm645_vm13, %v5574_v43, %v5573_v54 }
 0x58d   :  { %1760 = vmatprep.subr.mxu1 %v1591_v17  ;;  %1091 = vrot.lane.b32.xlu0 %v3289_v44, %s2236_s21  ;;  %v1494_v25 = vsel %vm620_vm14, %v4416_v28, %v4408_v35  ;;  %v1483_v9 = vsel %vm620_vm14, %v5587_v47, %v5586_v58 }
 0x58e   :  { %1689 = vmatprep.subr.mxu0 %v1583_v31  ;;  %1761 = vmatpush2.msra.mxu1 %v1579_v0  ;;  %v4485_v62 = vpop.permute.xlu1 %1025  ;;  %v5578_v31 = vld [vmem:[#allocation99_spill] sm:$0xff]  ;;  %v5579_v0 = vld [vmem:[#allocation96_spill] sm:$0xff] }
 0x58f   :  { %1690 = vmatpush2.msra.mxu0 %v1587_v21  ;;  %1762 = vmatprep.subr.mxu1 %v1546_v32  ;;  %v5576_v32 = vld [vmem:[#allocation97_spill] sm:$0xff]  ;;  %v1485_v35 = vsel %vm620_vm14, %v5578_v31, %v5577_v50  ;;  %v5581_v21 = vld [vmem:[#allocation62_spill] sm:$0xff] }
 0x590   :  { %1929 = vperm.xlu1 %2230, %v922_v40   ;;  %1691 = vmatprep.subr.mxu0 %v1538_v42  ;;  %v4491_v52 = vpop.permute.xlu0 %1049  ;;  %v1497_v27 = vsel %vm620_vm14, %v5577_v50, %v5576_v32  ;;  %v1489_v40 = vsel %vm620_vm14, %v5579_v0, %v5578_v31  ;;  %v1493_v28 = vsel %vm620_vm14, %v5576_v32, %v5579_v0  ;;  %v5593_v32 = vld [vmem:[#allocation66_spill] sm:$0xff]  ;;  %v5594_v50 = vld [vmem:[#allocation67_spill] sm:$0xff]  ;;  %v5595_v0 = vld [vmem:[#allocation64_spill] sm:$0xff] }
 0x591   :  { %1763 = vmatpush2.msra.mxu1 %v1534_v1  ;;  %1692 = vmatpush2.msra.mxu0 %v1542_v20  ;;  %v5580_v1 = vld [vmem:[#allocation61_spill] sm:$0xff]  ;;  %v1484_v48 = vsel %vm620_vm14, %v5582_v38, %v5581_v21 }
 0x592   :  { %1764 = vmatprep.subr.mxu1 %v1545_v2  ;;  %1693 = vmatprep.subr.mxu0 %v1537_v3  ;;  %v1042_v10 = vpop.permute.xlu1 %1041  ;;  %v1496_v20 = vsel %vm620_vm14, %v5581_v21, %v5580_v1  ;;  %v1488_v2 = vsel %vm620_vm14, %v5583_v11, %v5582_v38  ;;  %v1492_v5 = vsel %vm620_vm14, %v5580_v1, %v5583_v11  ;;  %v5584_v3 = vld [vmem:[#allocation21_spill] sm:$0xff]  ;;  %v5598_v11 = vld [vmem:[#allocation26_spill] sm:$0xff] }
 0x593   :  { %1765 = vmatpush2.msra.mxu1 %v1533_v23  ;;  %1694 = vmatpush2.msra.mxu0 %v1541_v30  ;;  %v5585_v23 = vld [vmem:[#allocation4_spill] sm:$0xff]  ;;  %v1487_v19 = vsel %vm620_vm14, %v5584_v3, %v5587_v47  ;;  %v1058_v54 = vsel %vm401_vm10, %v4461_v12, %v1042_v10 }
 0x594   :  { %1766 = vmatprep.subr.mxu1 %v1544_v34  ;;  %1695 = vmatprep.subr.mxu0 %v1536_v24  ;;  %v4529_v63 = vpop.permute.xlu0 %985  ;;  %v1491_v30 = vsel %vm620_vm14, %v5585_v23, %v5584_v3  ;;  %v1495_v34 = vsel %vm620_vm14, %v5586_v58, %v5585_v23  ;;  %v1066_v24 = vsel %vm401_vm10, %v4491_v52, %v4485_v62  ;;  %v5600_v58 = vld [vmem:[#allocation105_spill] sm:$0xff] }
 0x595   :  { %1767 = vmatpush2.msra.mxu1 %v1532_v37  ;;  %1696 = vmatpush2.msra.mxu0 %v1540_v18  ;;  %v920_v37 = vld [vmem:[%s5227_s5 + $0x10] sm:$0xff]  ;;  %v1054_v18 = vsel %vm401_vm10, %v1042_v10, %v4491_v52  ;;  %v5588_v52 = vld [vmem:[#allocation101_spill] sm:$0xff]  ;;  %v1062_v10 = vsel %vm401_vm10, %v4485_v62, %v4461_v12 }
 0x596   :  { %1768 = vmatprep.subr.mxu1 %v1543_v59  ;;  %1697 = vmatprep.subr.mxu0 %v1535_v55  ;;  %v4551_v17 = vpop.permute.xlu1 %977  ;;  %v1065_v59 = vsel %vm401_vm10, %v5589_v7, %v5588_v52 }
 0x597   :  { %1769 = vmatpush2.msra.mxu1 %v1531_v4  ;;  %1698 = vmatpush2.msra.mxu0 %v1539_v39  ;;  %v5591_v4 = vld [vmem:[#allocation100_spill] sm:$0xff] }
 0x598   :  { %1770 = vmatprep.subr.mxu1 %v1498_v61  ;;  %1699 = vmatprep.subr.mxu0 %v1490_v49  ;;  %v4557_v6 = vpop.permute.xlu0 %1001  ;;  %v5590_v61 = vld [vmem:[#allocation103_spill] sm:$0xff]  ;;  %v1061_v62 = vsel %vm401_vm10, %v5588_v52, %v5591_v4  ;;  %v5605_v52 = vld [vmem:[#allocation70_spill] sm:$0xff] }
 0x599   :  { %1771 = vmatpush2.msra.mxu1 %v1486_v22  ;;  %1700 = vmatpush2.msra.mxu0 %v1494_v25  ;;  %v1053_v49 = vsel %vm401_vm10, %v5590_v61, %v5589_v7  ;;  %v1057_v39 = vsel %vm401_vm10, %v5591_v4, %v5590_v61  ;;  %v5592_v25 = vld [vmem:[#allocation65_spill] sm:$0xff]  ;;  %v1018_v21 = vsel %vm63_vm6, %v4557_v6, %v4551_v17  ;;  %v5606_v7 = vld [vmem:[#allocation71_spill] sm:$0xff]  ;;  %v5607_v61 = vld [vmem:[#allocation68_spill] sm:$0xff] }
 0x59a   :  { %1772 = vmatprep.subr.mxu1 %v1497_v27  ;;  %1701 = vmatprep.subr.mxu0 %v1489_v40  ;;  %v994_v42 = vpop.permute.xlu1 %993  ;;  %v1064_v12 = vsel %vm401_vm10, %v5593_v32, %v5592_v25  ;;  %v1052_v27 = vsel %vm401_vm10, %v5594_v50, %v5593_v32  ;;  %v1056_v40 = vsel %vm401_vm10, %v5595_v0, %v5594_v50  ;;  %v5608_v4 = vld [vmem:[#allocation28_spill] sm:$0xff]  ;;  %v5610_v50 = vld [vmem:[#allocation30_spill] sm:$0xff] }
 0x59b   :  { %1773 = vmatpush2.msra.mxu1 %v1485_v35  ;;  %1702 = vmatpush2.msra.mxu0 %v1493_v28  ;;  %v5596_v35 = vld [vmem:[#allocation24_spill] sm:$0xff]  ;;  %v5597_v28 = vld [vmem:[#allocation27_spill] sm:$0xff]  ;;  %v1006_v38 = vsel %vm63_vm6, %v994_v42, %v4557_v6  ;;  %v1010_v23 = vsel %vm63_vm6, %v4529_v63, %v994_v42  ;;  %v1014_v42 = vsel %vm63_vm6, %v4551_v17, %v4529_v63 }
 0x59c   :  { %1774 = vmatprep.subr.mxu1 %v1496_v20  ;;  %1703 = vmatprep.subr.mxu0 %v1488_v2  ;;  %v4595_v57 = vpop.permute.xlu0 %937  ;;  %v1063_v1 = vsel %vm401_vm10, %v5597_v28, %v5596_v35  ;;  %v1060_v20 = vsel %vm401_vm10, %v5592_v25, %v5595_v0  ;;  %v1051_v2 = vsel %vm401_vm10, %v5598_v11, %v5597_v28 }
 0x59d   :  { %1775 = vmatpush2.msra.mxu1 %v1484_v48  ;;  %1704 = vmatpush2.msra.mxu0 %v1492_v5  ;;  %v5599_v5 = vld [vmem:[#allocation25_spill] sm:$0xff] }
 0x59e   :  { %1776 = vmatprep.subr.mxu1 %v1495_v34  ;;  %1705 = vmatprep.subr.mxu0 %v1487_v19  ;;  %v4622_v55 = vpop.permute.xlu1 %929  ;;  %v1055_v3 = vsel %vm401_vm10, %v5599_v5, %v5598_v11  ;;  %v1059_v6 = vsel %vm401_vm10, %v5596_v35, %v5599_v5  ;;  %v5601_v34 = vld [vmem:[#allocation106_spill] sm:$0xff]  ;;  %v5602_v19 = vld [vmem:[#allocation107_spill] sm:$0xff] }
 0x59f   :  { %1777 = vmatpush2.msra.mxu1 %v1483_v9  ;;  %1706 = vmatpush2.msra.mxu0 %v1491_v30  ;;  %v1017_v47 = vsel %vm63_vm6, %v5601_v34, %v5600_v58  ;;  %v5614_v11 = vld [vmem:[#allocation111_spill] sm:$0xff] }
 0x5a0   :  { %1856 = vmatprep.subr.mxu1 %v1066_v24  ;;  %1779 = vmatmul.mubr.f32.vlgmr.msra.gmra.mxu1 %v920_v37  ;;  %v4624_v43 = vpop.permute.xlu0 %953  ;;  %v1005_v24 = vsel %vm63_vm6, %v5602_v19, %v5601_v34  ;;  %v5618_v34 = vld [vmem:[#allocation75_spill] sm:$0xff] }
 0x5a1   :  { %1785 = vmatprep.subr.mxu0 %v1058_v54  ;;  %1857 = vmatpush1.msra.mxu1 %v1054_v18  ;;  %v5603_v18 = vld [vmem:[#allocation104_spill] sm:$0xff]  ;;  %v5604_v54 = vld [vmem:[#allocation69_spill] sm:$0xff]  ;;  %v970_v32 = vsel %vm50_vm7, %v4624_v43, %v4622_v55 }
 0x5a2   :  { %1708 = vmatmul.mubr.f32.vlgmr.msra.gmra.mxu0 %v920_v37  ;;  %1858 = vmatprep.subr.mxu1 %v1065_v59  ;;  %v946_v22 = vpop.permute.xlu1 %945  ;;  %v1009_v9 = vsel %vm63_vm6, %v5603_v18, %v5602_v19  ;;  %v1016_v63 = vsel %vm63_vm6, %v5605_v52, %v5604_v54  ;;  %v1013_v17 = vsel %vm63_vm6, %v5600_v58, %v5603_v18  ;;  %v5617_v58 = vld [vmem:[#allocation74_spill] sm:$0xff]  ;;  %v5619_v19 = vld [vmem:[#allocation72_spill] sm:$0xff] }
 0x5a3   :  { %1786 = vmatpush1.msra.mxu0 %v1062_v10  ;;  %1859 = vmatpush1.msra.mxu1 %v1053_v49  ;;  %v1004_v59 = vsel %vm63_vm6, %v5606_v7, %v5605_v52  ;;  %v1008_v49 = vsel %vm63_vm6, %v5607_v61, %v5606_v7  ;;  %v962_v28 = vsel %vm50_vm7, %v4595_v57, %v946_v22  ;;  %v5620_v18 = vld [vmem:[#allocation32_spill] sm:$0xff] }
 0x5a4   :  { %1787 = vmatprep.subr.mxu0 %v1057_v39  ;;  %1860 = vmatprep.subr.mxu1 %v1064_v12  ;;  %v4654_v31 = vpop.permute.xlu0 %1225  ;;  %v5609_v39 = vld [vmem:[#allocation31_spill] sm:$0xff]  ;;  %v1012_v12 = vsel %vm63_vm6, %v5604_v54, %v5607_v61 }
 0x5a5   :  { %1788 = vmatpush1.msra.mxu0 %v1061_v62  ;;  %1861 = vmatpush1.msra.mxu1 %v1052_v27  ;;  %v1015_v25 = vsel %vm63_vm6, %v5609_v39, %v5608_v4  ;;  %v958_v62 = vsel %vm50_vm7, %v946_v22, %v4624_v43  ;;  %v1003_v27 = vsel %vm63_vm6, %v5610_v50, %v5609_v39 }
 0x5a6   :  { %1789 = vmatprep.subr.mxu0 %v1056_v40  ;;  %1862 = vmatprep.subr.mxu1 %v1063_v1  ;;  %v4679_v48 = vpop.permute.xlu1 %1217  ;;  %v5611_v40 = vld [vmem:[#allocation29_spill] sm:$0xff]  ;;  %v966_v22 = vsel %vm50_vm7, %v4622_v55, %v4595_v57 }
 0x5a7   :  { %1790 = vmatpush1.msra.mxu0 %v1060_v20  ;;  %1863 = vmatpush1.msra.mxu1 %v1051_v2  ;;  %v1007_v35 = vsel %vm63_vm6, %v5611_v40, %v5610_v50  ;;  %v1011_v43 = vsel %vm63_vm6, %v5608_v4, %v5611_v40  ;;  %v5613_v20 = vld [vmem:[#allocation110_spill] sm:$0xff]  ;;  %v5632_v50 = vld [vmem:[#allocation35_spill] sm:$0xff] }
 0x5a8   :  { %1791 = vmatprep.subr.mxu0 %v1055_v3  ;;  %1864 = vmatprep.subr.mxu1 %v1018_v21  ;;  %v4692_v30 = vpop.permute.xlu0 %1241  ;;  %v5612_v21 = vld [vmem:[#allocation109_spill] sm:$0xff]  ;;  %v957_v2 = vsel %vm50_vm7, %v5614_v11, %v5613_v20  ;;  %v5615_v3 = vld [vmem:[#allocation108_spill] sm:$0xff] }
 0x5a9   :  { %1792 = vmatpush1.msra.mxu0 %v1059_v6  ;;  %1865 = vmatpush1.msra.mxu1 %v1006_v38  ;;  %v969_v38 = vsel %vm50_vm7, %v5613_v20, %v5612_v21  ;;  %v5616_v6 = vld [vmem:[#allocation73_spill] sm:$0xff]  ;;  %v965_v55 = vsel %vm50_vm7, %v5612_v21, %v5615_v3  ;;  %v5635_v20 = vld [vmem:[#allocation36_spill] sm:$0xff] }
 0x5aa   :  { %1793 = vmatprep.subr.mxu0 %v1010_v23  ;;  %1866 = vmatprep.subr.mxu1 %v1017_v47  ;;  %v4706_v37 = vpop.permute.xlu1 %1233  ;;  %v961_v23 = vsel %vm50_vm7, %v5615_v3, %v5614_v11  ;;  %v968_v57 = vsel %vm50_vm7, %v5617_v58, %v5616_v6  ;;  %v956_v47 = vsel %vm50_vm7, %v5618_v34, %v5617_v58  ;;  %v5637_v58 = vld [vmem:[#allocation118_spill] sm:$0xff] }
 0x5ab   :  { %1794 = vmatpush1.msra.mxu0 %v1014_v42  ;;  %1867 = vmatpush1.msra.mxu1 %v1005_v24  ;;  %v960_v24 = vsel %vm50_vm7, %v5619_v19, %v5618_v34  ;;  %v964_v52 = vsel %vm50_vm7, %v5616_v6, %v5619_v19  ;;  %v5636_v6 = vld [vmem:[#allocation117_spill] sm:$0xff]  ;;  %v5640_v19 = vld [vmem:[#allocation80_spill] sm:$0xff] }
 0x5ac   :  { %1795 = vmatprep.subr.mxu0 %v1009_v9  ;;  %1868 = vmatprep.subr.mxu1 %v1016_v63  ;;  %v4724_v10 = vpop.permute.xlu0 %1177  ;;  %v5621_v9 = vld [vmem:[#allocation3_spill] sm:$0xff]  ;;  %v5622_v63 = vld [vmem:[#allocation34_spill] sm:$0xff] }
 0x5ad   :  { %1796 = vmatpush1.msra.mxu0 %v1013_v17  ;;  %1869 = vmatpush1.msra.mxu1 %v1004_v59  ;;  %v967_v54 = vsel %vm50_vm7, %v5621_v9, %v5620_v18  ;;  %v955_v17 = vsel %vm50_vm7, %v5622_v63, %v5621_v9  ;;  %v5623_v59 = vld [vmem:[#allocation33_spill] sm:$0xff]  ;;  %v5642_v9 = vld [vmem:[#allocation82_spill] sm:$0xff] }
 0x5ae   :  { %1797 = vmatprep.subr.mxu0 %v1008_v49  ;;  %1870 = vmatprep.subr.mxu1 %v1015_v25  ;;  %v4749_v0 = vpop.permute.xlu1 %1169  ;;  %v959_v61 = vsel %vm50_vm7, %v5623_v59, %v5622_v63  ;;  %v963_v49 = vsel %vm50_vm7, %v5620_v18, %v5623_v59 }
 0x5af   :  { %1798 = vmatpush1.msra.mxu0 %v1012_v12  ;;  %1871 = vmatpush1.msra.mxu1 %v1003_v27  ;;  %v5631_v12 = vld [vmem:[#allocation2_spill] sm:$0xff]  ;;  %v5633_v27 = vld [vmem:[#allocation39_spill] sm:$0xff] }
 0x5b0   :  { %1799 = vmatprep.subr.mxu0 %v1007_v35  ;;  %1872 = vmatprep.subr.mxu1 %v970_v32  ;;  %v4762_v1 = vpop.permute.xlu0 %1193  ;;  %v1255_v40 = vsel %vm498_vm9, %v5633_v27, %v5632_v50 }
 0x5b1   :  { %1800 = vmatpush1.msra.mxu0 %v1011_v43  ;;  %1873 = vmatpush1.msra.mxu1 %v958_v62 }
 0x5b2   :  { %1801 = vmatprep.subr.mxu0 %v962_v28  ;;  %1874 = vmatprep.subr.mxu1 %v969_v38  ;;  %v4776_v5 = vpop.permute.xlu1 %1185  ;;  %v5634_v28 = vld [vmem:[#allocation37_spill] sm:$0xff] }
 0x5b3   :  { %1802 = vmatpush1.msra.mxu0 %v966_v22  ;;  %1875 = vmatpush1.msra.mxu1 %v957_v2  ;;  %v1243_v43 = vsel %vm498_vm9, %v5634_v28, %v5633_v27  ;;  %v1247_v38 = vsel %vm498_vm9, %v5635_v20, %v5634_v28  ;;  %v1210_v22 = vsel %vm102_vm3, %v4762_v1, %v4749_v0 }
 0x5b4   :  { %1803 = vmatprep.subr.mxu0 %v961_v23  ;;  %1876 = vmatprep.subr.mxu1 %v968_v57  ;;  %v4794_v42 = vpop.permute.xlu0 %1187  ;;  %v1198_v11 = vsel %vm102_vm3, %v4776_v5, %v4762_v1  ;;  %v1251_v2 = vsel %vm498_vm9, %v5632_v50, %v5635_v20  ;;  %v1202_v23 = vsel %vm102_vm3, %v4724_v10, %v4776_v5  ;;  %v5639_v5 = vld [vmem:[#allocation116_spill] sm:$0xff] }
 0x5b5   :  { %1804 = vmatpush1.msra.mxu0 %v965_v55  ;;  %1877 = vmatpush1.msra.mxu1 %v956_v47  ;;  %v1209_v1 = vsel %vm102_vm3, %v5637_v58, %v5636_v6  ;;  %v1206_v57 = vsel %vm102_vm3, %v4749_v0, %v4724_v10  ;;  %v5638_v55 = vld [vmem:[#allocation119_spill] sm:$0xff]  ;;  %v1205_v0 = vsel %vm102_vm3, %v5636_v6, %v5639_v5 }
 0x5b6   :  { %1805 = vmatprep.subr.mxu0 %v960_v24  ;;  %1878 = vmatprep.subr.mxu1 %v967_v54  ;;  %v4812_v7 = vpop.permute.xlu1 %1121  ;;  %v1197_v34 = vsel %vm102_vm3, %v5638_v55, %v5637_v58  ;;  %v1201_v47 = vsel %vm102_vm3, %v5639_v5, %v5638_v55  ;;  %v5641_v24 = vld [vmem:[#allocation81_spill] sm:$0xff] }
 0x5b7   :  { %1806 = vmatpush1.msra.mxu0 %v964_v52  ;;  %1879 = vmatpush1.msra.mxu1 %v955_v17  ;;  %v1208_v18 = vsel %vm102_vm3, %v5641_v24, %v5640_v19  ;;  %v1196_v54 = vsel %vm102_vm3, %v5642_v9, %v5641_v24  ;;  %v5643_v52 = vld [vmem:[#allocation79_spill] sm:$0xff]  ;;  %v5644_v17 = vld [vmem:[#allocation41_spill] sm:$0xff] }
 0x5b8   :  { %1807 = vmatprep.subr.mxu0 %v959_v61  ;;  %1880 = vmatprep.subr.mxu1 %v3829_v26  ;;  %v4823_v4 = vpop.permute.xlu0 %1129  ;;  %v1200_v63 = vsel %vm102_vm3, %v5643_v52, %v5642_v9  ;;  %v1207_v59 = vsel %vm102_vm3, %v4794_v42, %v5644_v17 }
 0x5b9   :  { %1808 = vmatpush1.msra.mxu0 %v963_v49  ;;  %1881 = vmatpush1.msra.mxu1 %v3835_v33  ;;  %v5627_v33 = vld [vmem:[#allocation112_spill] sm:$0xff]  ;;  %v5645_v49 = vld [vmem:[#allocation43_spill] sm:$0xff] }
 0x5ba   :  { %1809 = vmatprep.subr.mxu0 %v3815_v8  ;;  %1882 = vmatprep.subr.mxu1 %v5537_v41  ;;  %v4828_v39 = vpop.permute.xlu1 %1137  ;;  %v5628_v41 = vld [vmem:[#allocation76_spill] sm:$0xff] }
 0x5bb   :  { %1810 = vmatpush1.msra.mxu0 %v3822_v46  ;;  %1883 = vmatpush1.msra.mxu1 %v5534_v56  ;;  %v1252_v35 = vsel %vm498_vm9, %v5628_v41, %v5631_v12 }
 0x5bc   :  { %1811 = vmatprep.subr.mxu0 %v3595_v29  ;;  %1884 = vmatprep.subr.mxu1 %v3399_v51  ;;  %v4834_v26 = vpop.permute.xlu0 %1145  ;;  %v1258_v51 = vsel %vm498_vm9, %v4692_v30, %v4679_v48 }
 0x5bd   :  { %1812 = vmatpush1.msra.mxu0 %v3602_v53  ;;  %1885 = vmatpush1.msra.mxu1 %v3403_v60  ;;  %v1246_v60 = vsel %vm498_vm9, %v4706_v37, %v4692_v30  ;;  %v5629_v30 = vld [vmem:[#allocation77_spill] sm:$0xff] }
 0x5be   :  { %1813 = vmatprep.subr.mxu0 %v3389_v16  ;;  %1886 = vmatprep.subr.mxu1 %v3289_v44  ;;  %v4840_v8 = vpop.permute.xlu1 %1119  ;;  %v5624_v16 = vld [vmem:[#allocation113_spill] sm:$0xff] }
 0x5bf   :  { %1814 = vmatpush1.msra.mxu0 %v3394_v36  ;;  %1887 = vmatpush1.msra.mxu1 %v3285_v14  ;;  %v1250_v14 = vsel %vm498_vm9, %v4654_v31, %v4706_v37  ;;  %v5625_v36 = vld [vmem:[#allocation114_spill] sm:$0xff] }
 0x5c0   :  { %1815 = vmatprep.subr.mxu0 %v3280_v15  ;;  %1888 = vmatprep.subr.mxu1 %v1258_v51  ;;  %v4853_v44 = vpop.permute.xlu0 %1127  ;;  %v1257_v46 = vsel %vm498_vm9, %v5625_v36, %v5624_v16  ;;  %v1254_v15 = vsel %vm498_vm9, %v4679_v48, %v4654_v31  ;;  %v1256_v31 = vsel %vm498_vm9, %v5629_v30, %v5628_v41  ;;  %v5630_v37 = vld [vmem:[#allocation78_spill] sm:$0xff] }
 0x5c1   :  { %1816 = vmatpush1.msra.mxu0 %v3276_v45  ;;  %1889 = vmatpush2.msra.mxu1 %v1246_v60  ;;  %v5626_v45 = vld [vmem:[#allocation115_spill] sm:$0xff]  ;;  %v1253_v48 = vsel %vm498_vm9, %v5624_v16, %v5627_v33  ;;  %v1244_v25 = vsel %vm498_vm9, %v5630_v37, %v5629_v30  ;;  %v1248_v62 = vsel %vm498_vm9, %v5631_v12, %v5630_v37 }
 0x5c2   :  { %1817 = vmatprep.subr.mxu0 %v1250_v14  ;;  %1890 = vmatprep.subr.mxu1 %v1257_v46  ;;  %v1245_v29 = vsel %vm498_vm9, %v5626_v45, %v5625_v36  ;;  %v4872_v53 = vpop.permute.xlu1 %1135  ;;  %v1249_v56 = vsel %vm498_vm9, %v5627_v33, %v5626_v45  ;;  %v1195_v51 = vsel %vm102_vm3, %v5645_v49, %v4794_v42  ;;  %v5646_v14 = vld [vmem:[#allocation42_spill] sm:$0xff] }
 0x5c3   :  { %1818 = vmatpush2.msra.mxu0 %v1254_v15  ;;  %1891 = vmatpush2.msra.mxu1 %v1245_v29  ;;  %v1204_v60 = vsel %vm102_vm3, %v5640_v19, %v5643_v52  ;;  %v1199_v16 = vsel %vm102_vm3, %v5646_v14, %v5645_v49  ;;  %v1162_v36 = vsel %vm89_vm4, %v4834_v26, %v4812_v7 }
 0x5c4   :  { %1819 = vmatprep.subr.mxu0 %v1249_v56  ;;  %1892 = vmatprep.subr.mxu1 %v1256_v31  ;;  %v1144_v32 = vpop.permute.xlu0 %1143  ;;  %v1150_v46 = vsel %vm89_vm4, %v4828_v39, %v4834_v26  ;;  %v1203_v15 = vsel %vm102_vm3, %v5644_v17, %v5646_v14  ;;  %v1154_v33 = vsel %vm89_vm4, %v4823_v4, %v4828_v39  ;;  %v5647_v17 = vmov 0.0  }
 0x5c5   :  { %1820 = vmatpush2.msra.mxu0 %v1253_v48  ;;  %1893 = vmatpush2.msra.mxu1 %v1244_v25  ;;  %v1161_v42 = vsel %vm89_vm4, %v1144_v32, %v4840_v8  ;;  %v1149_v45 = vsel %vm89_vm4, %v4872_v53, %v1144_v32  ;;  %v1158_v56 = vsel %vm89_vm4, %v4812_v7, %v4823_v4  ;;  %v919_v7 = vld [vmem:[%s5227_s5 + $0x8] sm:$0xff] }
 0x5c6   :  { %1821 = vmatprep.subr.mxu0 %v1248_v62  ;;  %1894 = vmatprep.subr.mxu1 %v1255_v40  ;;  %v4906_v21 = vpop.permute.xlu1 %1117  ;;  %v1153_v39 = vsel %vm89_vm4, %v4853_v44, %v4872_v53  ;;  %v1157_v4 = vsel %vm89_vm4, %v4840_v8, %v4853_v44 }
 0x5c7   :  { %1822 = vmatpush2.msra.mxu0 %v1252_v35  ;;  %1895 = vmatpush2.msra.mxu1 %v1243_v43 }
 0x5c8   :  { %1823 = vmatprep.subr.mxu0 %v1247_v38  ;;  %1896 = vmatprep.subr.mxu1 %v1210_v22  ;;  %v1126_v3 = vpop.permute.xlu0 %1125 }
 0x5c9   :  { %1824 = vmatpush2.msra.mxu0 %v1251_v2  ;;  %1897 = vmatpush2.msra.mxu1 %v1198_v11  ;;  %v1156_v53 = vsel %vm89_vm4, %v4906_v21, %v1126_v3 }
 0x5ca   :  { %1825 = vmatprep.subr.mxu0 %v1202_v23  ;;  %1898 = vmatprep.subr.mxu1 %v1209_v1 }
 0x5cb   :  { %1826 = vmatpush2.msra.mxu0 %v1206_v57  ;;  %1899 = vmatpush2.msra.mxu1 %v1197_v34  ;;  %v1134_v10 = vpop.permute.xlu1 %1133 }
 0x5cc   :  { %1827 = vmatprep.subr.mxu0 %v1201_v47  ;;  %1900 = vmatprep.subr.mxu1 %v1208_v18  ;;  %v1152_v31 = vsel %vm89_vm4, %v1126_v3, %v1134_v10 }
 0x5cd   :  { %1828 = vmatpush2.msra.mxu0 %v1205_v0  ;;  %1901 = vmatpush2.msra.mxu1 %v1196_v54  ;;  %v1142_v61 = vpop.permute.xlu0 %1141  ;;  %v918_v0 = vld [vmem:[%s5227_s5] sm:$0xff] }
 0x5ce   :  { %1829 = vmatprep.subr.mxu0 %v1200_v63  ;;  %1902 = vmatprep.subr.mxu1 %v1207_v59  ;;  %v1160_v26 = vsel %vm89_vm4, %v1142_v61, %v4906_v21  ;;  %v1148_v41 = vsel %vm89_vm4, %v1134_v10, %v1142_v61 }
 0x5cf   :  { %1830 = vmatpush2.msra.mxu0 %v1204_v60  ;;  %1903 = vmatpush2.msra.mxu1 %v1195_v51 }
 0x5d0   :  { %1831 = vmatprep.subr.mxu0 %v1199_v16  ;;  %1904 = vmatprep.subr.mxu1 %v1162_v36  ;;  %v1116_v29 = vpop.permute.xlu1 %1115 }
 0x5d1   :  { %1832 = vmatpush2.msra.mxu0 %v1203_v15  ;;  %1905 = vmatpush2.msra.mxu1 %v1150_v46 }
 0x5d2   :  { %1833 = vmatprep.subr.mxu0 %v1154_v33  ;;  %1906 = vmatprep.subr.mxu1 %v1161_v42  ;;  %v1124_v30 = vpop.permute.xlu0 %1123 }
 0x5d3   :  { %1834 = vmatpush2.msra.mxu0 %v1158_v56  ;;  %1907 = vmatpush2.msra.mxu1 %v1149_v45  ;;  %v1155_v8 = vsel %vm89_vm4, %v1116_v29, %v1124_v30 }
 0x5d4   :  { %1835 = vmatprep.subr.mxu0 %v1153_v39  ;;  %1908 = vmatprep.subr.mxu1 %v1160_v26 }
 0x5d5   :  { %1836 = vmatpush2.msra.mxu0 %v1157_v4  ;;  %1909 = vmatpush2.msra.mxu1 %v1148_v41  ;;  %v1132_v48 = vpop.permute.xlu1 %1131  ;;  %v1941_v4 = vld [vmem:[%s5229_s8] sm:$0x7] }
 0x5d6   :  { %1837 = vmatprep.subr.mxu0 %v1152_v31  ;;  %v1151_v37 = vsel %vm89_vm4, %v1124_v30, %v1132_v48  ;;  %1849 = vmatprep.mubr.f32.mxu0 %v919_v7 }
 0x5d7   :  { %1838 = vmatpush2.msra.mxu0 %v1156_v53  ;;  %v1140_v25 = vpop.permute.xlu0 %1139  ;;  %1920 = vmatprep.mubr.f32.mxu1 %v919_v7 }
 0x5d8   :  { %1839 = vmatprep.subr.mxu0 %v1151_v37  ;;  %v1147_v44 = vsel %vm89_vm4, %v1132_v48, %v1140_v25  ;;  %v1159_v32 = vsel %vm89_vm4, %v1140_v25, %v1116_v29 }
 0x5d9   :  { %1840 = vmatpush2.msra.mxu0 %v1155_v8  ;;  %1910 = vmatprep.subr.mxu1 %v1159_v32 }
 0x5da   :  { %v1074_v12 = vpop.permute.xlu1 %1073  ;;  %1911 = vmatpush2.msra.mxu1 %v1147_v44 }
 0x5dc   :  { %v1082_v62 = vpop.permute.xlu0 %1081 }
 0x5dd   :  { %v1110_v40 = vsel %vm76_vm5, %v1074_v12, %v1082_v62 }
 0x5df   :  { %v1090_v50 = vpop.permute.xlu1 %1089 }
 0x5e0   :  { %v1106_v27 = vsel %vm76_vm5, %v1082_v62, %v1090_v50 }
 0x5e1   :  { %1841 = vmatprep.subr.mxu0 %v1106_v27  ;;  %v1098_v35 = vpop.permute.xlu0 %1097 }
 0x5e2   :  { %v1102_v28 = vsel %vm76_vm5, %v1090_v50, %v1098_v35  ;;  %1842 = vmatpush2.msra.mxu0 %v1110_v40  ;;  %v1114_v43 = vsel %vm76_vm5, %v1098_v35, %v1074_v12 }
 0x5e3   :  { %1912 = vmatprep.subr.mxu1 %v1114_v43 }
 0x5e4   :  { %v1072_v21 = vpop.permute.xlu1 %1071  ;;  %1913 = vmatpush2.msra.mxu1 %v1102_v28 }
 0x5e6   :  { %v1080_v20 = vpop.permute.xlu0 %1079 }
 0x5e7   :  { %v1109_v11 = vsel %vm76_vm5, %v1072_v21, %v1080_v20 }
 0x5e9   :  { %v1088_v38 = vpop.permute.xlu1 %1087 }
 0x5ea   :  { %v1105_v22 = vsel %vm76_vm5, %v1080_v20, %v1088_v38 }
 0x5eb   :  { %1843 = vmatprep.subr.mxu0 %v1105_v22  ;;  %v1096_v2 = vpop.permute.xlu0 %1095 }
 0x5ec   :  { %v1101_v3 = vsel %vm76_vm5, %v1088_v38, %v1096_v2  ;;  %1844 = vmatpush2.msra.mxu0 %v1109_v11  ;;  %v1113_v23 = vsel %vm76_vm5, %v1096_v2, %v1072_v21 }
 0x5ed   :  { %1914 = vmatprep.subr.mxu1 %v1113_v23 }
 0x5ee   :  { %v1070_v6 = vpop.permute.xlu1 %1069  ;;  %1915 = vmatpush2.msra.mxu1 %v1101_v3 }
 0x5f0   :  { %v1078_v58 = vpop.permute.xlu0 %1077 }
 0x5f1   :  { %v1108_v55 = vsel %vm76_vm5, %v1070_v6, %v1078_v58 }
 0x5f3   :  { %v1086_v1 = vpop.permute.xlu1 %1085 }
 0x5f4   :  { %v1104_v57 = vsel %vm76_vm5, %v1078_v58, %v1086_v1 }
 0x5f5   :  { %1845 = vmatprep.subr.mxu0 %v1104_v57  ;;  %v1094_v34 = vpop.permute.xlu0 %1093 }
 0x5f6   :  { %v1100_v5 = vsel %vm76_vm5, %v1086_v1, %v1094_v34  ;;  %1846 = vmatpush2.msra.mxu0 %v1108_v55  ;;  %v1112_v47 = vsel %vm76_vm5, %v1094_v34, %v1070_v6 }
 0x5f7   :  { %1916 = vmatprep.subr.mxu1 %v1112_v47 }
 0x5f8   :  { %v1068_v19 = vpop.permute.xlu1 %1067  ;;  %1917 = vmatpush2.msra.mxu1 %v1100_v5 }
 0x5fa   :  { %v1076_v24 = vpop.permute.xlu0 %1075 }
 0x5fb   :  { %v1107_v9 = vsel %vm76_vm5, %v1068_v19, %v1076_v24 }
 0x5fd   :  { %v1084_v18 = vpop.permute.xlu1 %1083 }
 0x5fe   :  { %v1103_v10 = vsel %vm76_vm5, %v1076_v24, %v1084_v18 }
 0x5ff   :  { %1847 = vmatprep.subr.mxu0 %v1103_v10  ;;  %v1092_v54 = vpop.permute.xlu0 %1091 }
 0x600   :  { %v1099_v52 = vsel %vm76_vm5, %v1084_v18, %v1092_v54  ;;  %1848 = vmatpush2.msra.mxu0 %v1107_v9  ;;  %v1111_v63 = vsel %vm76_vm5, %v1092_v54, %v1068_v19 }
 0x601   :  { %1850 = vmatmul.mubr.f32.vlgmr.msra.gmra.mxu0 %v918_v0  ;;  %1918 = vmatprep.subr.mxu1 %v1111_v63 }
 0x602   :  { %1919 = vmatpush2.msra.mxu1 %v1099_v52  ;;  %2110 = vmatprep.mubr.f32.mxu0 %v5647_v17 }
 0x603   :  { %1921 = vmatmul.mubr.f32.vlgmr.msra.gmra.mxu1 %v918_v0 }
 0x604   :  { %2181 = vmatprep.mubr.f32.mxu1 %v5647_v17 }
 0x60b   :  { %v1930_v14 = vpop.permute.xlu1 %1929 }
 0x660   :  { %v1780_v61 = vpop.f32.mrf.mxu1 }
 0x662   :  { %v1709_v59 = vpop.f32.mrf.mxu0  ;;  %v1782_v51 = vpop.f32.mrf.mxu1 }
 0x664   :  { %v1711_v49 = vpop.f32.mrf.mxu0 }
 0x6c1   :  { %v1851_v60 = vpop.f32.mrf.mxu0 }
 0x6c2   :  { %v1852_v16 = vadd.f32 %v1851_v60, %v1709_v59 }
 0x6c3   :  { %v1853_v36 = vpop.f32.mrf.mxu0  ;;  %v1922_v42 = vpop.f32.mrf.mxu1 }
 0x6c4   :  { %v1932_v46 = vadd.f32 %v1930_v14, %v1852_v16  ;;  %v1854_v15 = vadd.f32 %v1853_v36, %v1711_v49  ;;  %v1923_v45 = vadd.f32 %v1922_v42, %v1780_v61 }
 0x6c5   :  { %v1924_v29 = vpop.f32.mrf.mxu1 }
 0x6c6   :  { %v5068_v33 = vmax.f32 %v1932_v46, 0.0  ;;  %v1933_v26 = vadd.f32 %v1930_v14, %v1854_v15  ;;  %v1934_v56 = vadd.f32 %v1930_v14, %v1923_v45  ;;  %v1925_v41 = vadd.f32 %v1924_v29, %v1782_v51 }
 0x6c8   :  { %v5070_v30 = vmax.f32 %v1933_v26, 0.0  ;;  %v1935_v39 = vadd.f32 %v1930_v14, %v1925_v41  ;;  %2026 = vrot.lane.b32.xlu0 %v5068_v33, %s2231_s13  ;;  %v5074_v31 = vmax.f32 %v1934_v56, 0.0 }
 0x6ca   :  { %2028 = vrot.lane.b32.xlu1 %v5070_v30, %s2231_s13  ;;  %v5078_v7 = vmax.f32 %v1935_v39, 0.0 }
 0x6cc   :  { %2030 = vrot.lane.b32.xlu0 %v5074_v31, %s2231_s13 }
 0x6ce   :  { %2032 = vrot.lane.b32.xlu1 %v5078_v7, %s2231_s13 }
 0x6d0   :  { %2014 = vrot.lane.b32.xlu0 %v5068_v33, %s2232_s18 }
 0x6d2   :  { %2016 = vrot.lane.b32.xlu1 %v5070_v30, %s2232_s18 }
 0x6d4   :  { %2018 = vrot.lane.b32.xlu0 %v5074_v31, %s2232_s18 }
 0x6d6   :  { %2020 = vrot.lane.b32.xlu1 %v5078_v7, %s2232_s18 }
 0x6d8   :  { %2002 = vrot.lane.b32.xlu0 %v5068_v33, %s2233_s0 }
 0x6da   :  { %2004 = vrot.lane.b32.xlu1 %v5070_v30, %s2233_s0 }
 0x6dc   :  { %2006 = vrot.lane.b32.xlu0 %v5074_v31, %s2233_s0 }
 0x6de   :  { %2008 = vrot.lane.b32.xlu1 %v5078_v7, %s2233_s0 }
 0x6e0   :  { %1990 = vrot.lane.b32.xlu0 %v5068_v33, %s2234_s19 }
 0x6e2   :  { %1992 = vrot.lane.b32.xlu1 %v5070_v30, %s2234_s19 }
 0x6e4   :  { %1994 = vrot.lane.b32.xlu0 %v5074_v31, %s2234_s19 }
 0x6e6   :  { %1996 = vrot.lane.b32.xlu1 %v5078_v7, %s2234_s19 }
 0x6e8   :  { %1978 = vrot.lane.b32.xlu0 %v5068_v33, %s2235_s20 }
 0x6ea   :  { %1980 = vrot.lane.b32.xlu1 %v5070_v30, %s2235_s20 }
 0x6ec   :  { %1982 = vrot.lane.b32.xlu0 %v5074_v31, %s2235_s20 }
 0x6ee   :  { %1984 = vrot.lane.b32.xlu1 %v5078_v7, %s2235_s20 }
 0x6f0   :  { %1966 = vrot.lane.b32.xlu0 %v5068_v33, %s2236_s21 }
 0x6f2   :  { %1968 = vrot.lane.b32.xlu1 %v5070_v30, %s2236_s21 }
 0x6f4   :  { %1970 = vrot.lane.b32.xlu0 %v5074_v31, %s2236_s21 }
 0x6f6   :  { %1972 = vrot.lane.b32.xlu1 %v5078_v7, %s2236_s21 }
 0x6f8   :  { %1954 = vrot.lane.b32.xlu0 %v5068_v33, %s2237_s22 }
 0x6fa   :  { %1956 = vrot.lane.b32.xlu1 %v5070_v30, %s2237_s22 }
 0x6fc   :  { %1958 = vrot.lane.b32.xlu0 %v5074_v31, %s2237_s22 }
 0x6fe   :  { %1960 = vrot.lane.b32.xlu1 %v5078_v7, %s2237_s22 }
 0x700   :  { %1942 = vrot.lane.b32.xlu0 %v5068_v33, %s2240_s23 }
 0x702   :  { %1944 = vrot.lane.b32.xlu1 %v5070_v30, %s2240_s23 }
 0x704   :  { %1946 = vrot.lane.b32.xlu0 %v5074_v31, %s2240_s23 }
 0x706   :  { %1948 = vrot.lane.b32.xlu1 %v5078_v7, %s2240_s23 }
 0x708   :  { %2040 = vperm.xlu0 %2229, %v1941_v4  }
 0x73a   :  { %v2027_v48 = vpop.permute.xlu0 %2026 }
 0x73c   :  { %v2029_v53 = vpop.permute.xlu1 %2028 }
 0x73d   :  { %v2036_v8 = vsel %vm141_vm0, %v2027_v48, %v2029_v53 }
 0x73e   :  { %v2031_v37 = vpop.permute.xlu0 %2030 }
 0x73f   :  { %v2035_v25 = vsel %vm141_vm0, %v2029_v53, %v2031_v37 }
 0x740   :  { %v2033_v44 = vpop.permute.xlu1 %2032  ;;  %2060 = vmatprep.subr.mxu0 %v2035_v25 }
 0x741   :  { %v2034_v32 = vsel %vm141_vm0, %v2031_v37, %v2033_v44  ;;  %2061 = vmatpush1.msra.mxu0 %v2036_v8  ;;  %v2037_v12 = vsel %vm141_vm0, %v2033_v44, %v2027_v48  ;;  %v1940_v44 = vld [vmem:[%s5230_s7] sm:$0x7] }
 0x742   :  { %2131 = vmatprep.subr.mxu1 %v2037_v12  ;;  %v2015_v62 = vpop.permute.xlu0 %2014 }
 0x743   :  { %2132 = vmatpush1.msra.mxu1 %v2034_v32 }
 0x744   :  { %v2017_v50 = vpop.permute.xlu1 %2016 }
 0x745   :  { %v2024_v35 = vsel %vm128_vm1, %v2015_v62, %v2017_v50 }
 0x746   :  { %v2019_v27 = vpop.permute.xlu0 %2018 }
 0x747   :  { %v2023_v40 = vsel %vm128_vm1, %v2017_v50, %v2019_v27 }
 0x748   :  { %v2021_v28 = vpop.permute.xlu1 %2020  ;;  %2062 = vmatprep.subr.mxu0 %v2023_v40 }
 0x749   :  { %v2022_v43 = vsel %vm128_vm1, %v2019_v27, %v2021_v28  ;;  %2063 = vmatpush1.msra.mxu0 %v2024_v35  ;;  %v2025_v21 = vsel %vm128_vm1, %v2021_v28, %v2015_v62 }
 0x74a   :  { %2133 = vmatprep.subr.mxu1 %v2025_v21  ;;  %v2003_v20 = vpop.permute.xlu0 %2002 }
 0x74b   :  { %2134 = vmatpush1.msra.mxu1 %v2022_v43 }
 0x74c   :  { %v2005_v38 = vpop.permute.xlu1 %2004 }
 0x74d   :  { %v2012_v2 = vsel %vm115_vm2, %v2003_v20, %v2005_v38 }
 0x74e   :  { %v2007_v22 = vpop.permute.xlu0 %2006 }
 0x74f   :  { %v2011_v11 = vsel %vm115_vm2, %v2005_v38, %v2007_v22 }
 0x750   :  { %v2009_v3 = vpop.permute.xlu1 %2008  ;;  %2064 = vmatprep.subr.mxu0 %v2011_v11 }
 0x751   :  { %v2010_v23 = vsel %vm115_vm2, %v2007_v22, %v2009_v3  ;;  %2065 = vmatpush1.msra.mxu0 %v2012_v2  ;;  %v2013_v6 = vsel %vm115_vm2, %v2009_v3, %v2003_v20 }
 0x752   :  { %2135 = vmatprep.subr.mxu1 %v2013_v6  ;;  %v1991_v58 = vpop.permute.xlu0 %1990 }
 0x753   :  { %2136 = vmatpush1.msra.mxu1 %v2010_v23 }
 0x754   :  { %v1993_v1 = vpop.permute.xlu1 %1992 }
 0x755   :  { %v2000_v34 = vsel %vm102_vm3, %v1991_v58, %v1993_v1 }
 0x756   :  { %v1995_v57 = vpop.permute.xlu0 %1994 }
 0x757   :  { %v1999_v55 = vsel %vm102_vm3, %v1993_v1, %v1995_v57 }
 0x758   :  { %v1997_v5 = vpop.permute.xlu1 %1996  ;;  %2066 = vmatprep.subr.mxu0 %v1999_v55 }
 0x759   :  { %v1998_v47 = vsel %vm102_vm3, %v1995_v57, %v1997_v5  ;;  %2067 = vmatpush1.msra.mxu0 %v2000_v34  ;;  %v2001_v19 = vsel %vm102_vm3, %v1997_v5, %v1991_v58 }
 0x75a   :  { %2137 = vmatprep.subr.mxu1 %v2001_v19  ;;  %v1979_v24 = vpop.permute.xlu0 %1978 }
 0x75b   :  { %2138 = vmatpush1.msra.mxu1 %v1998_v47 }
 0x75c   :  { %v1981_v18 = vpop.permute.xlu1 %1980 }
 0x75d   :  { %v1988_v9 = vsel %vm89_vm4, %v1979_v24, %v1981_v18 }
 0x75e   :  { %v1983_v10 = vpop.permute.xlu0 %1982 }
 0x75f   :  { %v1987_v0 = vsel %vm89_vm4, %v1981_v18, %v1983_v10 }
 0x760   :  { %v1985_v54 = vpop.permute.xlu1 %1984  ;;  %2068 = vmatprep.subr.mxu0 %v1987_v0 }
 0x761   :  { %v1986_v52 = vsel %vm89_vm4, %v1983_v10, %v1985_v54  ;;  %2069 = vmatpush1.msra.mxu0 %v1988_v9  ;;  %v1989_v63 = vsel %vm89_vm4, %v1985_v54, %v1979_v24 }
 0x762   :  { %2139 = vmatprep.subr.mxu1 %v1989_v63  ;;  %v1967_v17 = vpop.permute.xlu0 %1966 }
 0x763   :  { %2140 = vmatpush1.msra.mxu1 %v1986_v52 }
 0x764   :  { %v1969_v59 = vpop.permute.xlu1 %1968 }
 0x765   :  { %v1976_v51 = vsel %vm76_vm5, %v1967_v17, %v1969_v59 }
 0x766   :  { %v1971_v61 = vpop.permute.xlu0 %1970 }
 0x767   :  { %v1975_v49 = vsel %vm76_vm5, %v1969_v59, %v1971_v61 }
 0x768   :  { %v1973_v60 = vpop.permute.xlu1 %1972  ;;  %2070 = vmatprep.subr.mxu0 %v1975_v49 }
 0x769   :  { %v1974_v14 = vsel %vm76_vm5, %v1971_v61, %v1973_v60  ;;  %2071 = vmatpush1.msra.mxu0 %v1976_v51  ;;  %v1977_v16 = vsel %vm76_vm5, %v1973_v60, %v1967_v17 }
 0x76a   :  { %2141 = vmatprep.subr.mxu1 %v1977_v16  ;;  %v1955_v36 = vpop.permute.xlu0 %1954 }
 0x76b   :  { %2142 = vmatpush1.msra.mxu1 %v1974_v14 }
 0x76c   :  { %v1957_v42 = vpop.permute.xlu1 %1956 }
 0x76d   :  { %v1964_v45 = vsel %vm63_vm6, %v1955_v36, %v1957_v42 }
 0x76e   :  { %v1959_v46 = vpop.permute.xlu0 %1958 }
 0x76f   :  { %v1963_v15 = vsel %vm63_vm6, %v1957_v42, %v1959_v46 }
 0x770   :  { %v1961_v29 = vpop.permute.xlu1 %1960  ;;  %2072 = vmatprep.subr.mxu0 %v1963_v15 }
 0x771   :  { %v1962_v26 = vsel %vm63_vm6, %v1959_v46, %v1961_v29  ;;  %2073 = vmatpush1.msra.mxu0 %v1964_v45  ;;  %v1965_v56 = vsel %vm63_vm6, %v1961_v29, %v1955_v36 }
 0x772   :  { %2143 = vmatprep.subr.mxu1 %v1965_v56  ;;  %v1943_v41 = vpop.permute.xlu0 %1942 }
 0x773   :  { %2144 = vmatpush1.msra.mxu1 %v1962_v26 }
 0x774   :  { %v1945_v39 = vpop.permute.xlu1 %1944 }
 0x775   :  { %v1952_v53 = vsel %vm50_vm7, %v1943_v41, %v1945_v39 }
 0x776   :  { %v1947_v4 = vpop.permute.xlu0 %1946 }
 0x777   :  { %v1951_v48 = vsel %vm50_vm7, %v1945_v39, %v1947_v4 }
 0x778   :  { %v1949_v37 = vpop.permute.xlu1 %1948  ;;  %2074 = vmatprep.subr.mxu0 %v1951_v48 }
 0x779   :  { %v1950_v25 = vsel %vm50_vm7, %v1947_v4, %v1949_v37  ;;  %2075 = vmatpush1.msra.mxu0 %v1952_v53  ;;  %v1953_v8 = vsel %vm50_vm7, %v1949_v37, %v1943_v41 }
 0x77a   :  { %2076 = vmatprep.subr.mxu0 %v5070_v30  ;;  %2145 = vmatprep.subr.mxu1 %v1953_v8 }
 0x77b   :  { %2077 = vmatpush1.msra.mxu0 %v5068_v33  ;;  %2146 = vmatpush1.msra.mxu1 %v1950_v25 }
 0x77c   :  { %2210 = vmatmul.mubr.msk.f32.vlgmr.msra.gmra.mxu0 %vm156_vm8, %v1940_v44  ;;  %2147 = vmatprep.subr.mxu1 %v5078_v7 }
 0x77d   :  { %2148 = vmatpush1.msra.mxu1 %v5074_v31 }
 0x77e   :  { %2211 = vmatmul.mubr.msk.f32.vlgmr.msra.gmra.mxu1 %vm156_vm8, %v1940_v44 }
 0x783   :  { %v2041_v13 = vpop.permute.xlu0 %2040 }
 0x83c   :  { %v2112_v32 = vpop.f32.mrf.mxu0 }
 0x83d   :  { %v2113_v12 = vadd.f32 %v2112_v32, %v2041_v13 }
 0x83e   :  { %v2114_v62 = vpop.f32.mrf.mxu0  ;;  %v2183_v50 = vpop.f32.mrf.mxu1 }
 0x83f   :  { %v2115_v27 = vadd.f32 %v2114_v62, %v2041_v13  ;;  %v2184_v40 = vadd.f32 %v2183_v50, %v2041_v13  ;;  %v2188_v35 = vmax.f32 %v2113_v12, 0.0 }
 0x840   :  { %v2185_v30 = vpop.f32.mrf.mxu1 }
 0x841   :  { %v2189_v28 = vmax.f32 %v2115_v27, 0.0  ;;  %v2186_v33 = vadd.f32 %v2185_v30, %v2041_v13  ;;  %v2190_v21 = vmax.f32 %v2184_v40, 0.0 }
 0x843   :  { %v2196_v43 = vcombine.low %v2188_v35, %v2189_v28  ;;  %v2191_v20 = vmax.f32 %v2186_v33, 0.0 }
 0x845   :  { %2200 = vst [vmem:[%s5231_s9] sm:$0x77] %v2196_v43  ;;  %v2197_v31 = vcombine.low %v2190_v21, %v2191_v20 }
 0x847   :  { %2201 = vst [vmem:[%s5231_s9 + $0x8] sm:$0x77] %v2197_v31 }

</bundles_post_ra>
